<compile_context>
chip_gen: v7x
topology: tpu7x:2x2x1
jax: 0.10.0
libtpu: 0.0.40
codegen_flags: <defaults>
</compile_context>

<pallas_src>
import random

import jax
import jax.numpy as jnp
from jax.experimental import pallas as pl
from jax.experimental.pallas import tpu as pltpu

# ----------------------------- small config ---------------------------------
INPUT_DIM = 256      # encoder vocab   (7853 in the original)
OUTPUT_DIM = 384     # decoder vocab   (5893 in the original) -- multiple of 128
EMB_DIM = 128        # embedding dim   (256 in the original)
HID_DIM = 128        # hidden dim      (512 in the original)
SRC_LEN = 6
TRG_LEN = 5
BATCH = 8


# ------------------------------ shared GRU math ------------------------------
def _gru_combine(gi, gh, h):
    """PyTorch nn.GRU cell. Gate order is [r, z, n]; gi/gh are (B, 3H) f32."""
    H = h.shape[-1]
    r = jax.nn.sigmoid(gi[:, 0 * H:1 * H] + gh[:, 0 * H:1 * H])
    z = jax.nn.sigmoid(gi[:, 1 * H:2 * H] + gh[:, 1 * H:2 * H])
    n = jnp.tanh(gi[:, 2 * H:3 * H] + r * gh[:, 2 * H:3 * H])
    return (1.0 - z) * n + z * h


# ------------------------------ fused Pallas kernel ---------------------------
def seq2seq_kernel(tf_ref,                                   # (T-1,) int32, SMEM
                   src_emb_ref, trg_emb_ref,                 # VMEM activations
                   enc_wih_ref, enc_whh_ref, enc_bih_ref, enc_bhh_ref,
                   emb_tbl_ref,                              # decoder emb table
                   dec_wih_e_ref, dec_wih_c_ref, dec_whh_ref,
                   dec_bih_ref, dec_bhh_ref,
                   fc_e_ref, fc_h_ref, fc_c_ref, fcb_ref,
                   out_ref,                                  # (T-1, B, V) f32
                   emb_scr):                                 # (B, EMB) bf16 scratch
    # ---------------- encoder ----------------
    # Batched input-to-hidden over all SRC_LEN steps: one (S*B, E)@(E, 3H).
    gi_all = (jnp.dot(src_emb_ref[...], enc_wih_ref[...],
                      preferred_element_type=jnp.float32)
              + enc_bih_ref[...])                            # (S*B, 3H) f32
    enc_whh = enc_whh_ref[...]
    enc_bhh = jnp.broadcast_to(enc_bhh_ref[...], (BATCH, 3 * HID_DIM))

    h = jnp.zeros((BATCH, HID_DIM), jnp.float32)             # PyTorch h0 = 0
    for t in range(SRC_LEN):                                 # static unroll
        gi = gi_all[t * BATCH:(t + 1) * BATCH]
        gh = jnp.dot(h.astype(jnp.bfloat16), enc_whh,
                     preferred_element_type=jnp.float32) + enc_bhh
        h = _gru_combine(gi, gh, h)
    context = h                                              # (B, H) f32

    # ---------------- decoder ----------------
    ctx_bf = context.astype(jnp.bfloat16)
    # Hoisted, constant across all decode steps (context never changes):
    gi_ctx = (jnp.dot(ctx_bf, dec_wih_c_ref[...],
                      preferred_element_type=jnp.float32) + dec_bih_ref[...])
    pred_ctx = (jnp.dot(ctx_bf, fc_c_ref[...],
                        preferred_element_type=jnp.float32) + fcb_ref[...])
    dec_wih_e = dec_wih_e_ref[...]
    dec_whh = dec_whh_ref[...]
    dec_bhh = jnp.broadcast_to(dec_bhh_ref[...], (BATCH, 3 * HID_DIM))
    fc_e = fc_e_ref[...]
    fc_h = fc_h_ref[...]

    hidden = context                                         # hidden = context
    prev = jnp.zeros((BATCH, OUTPUT_DIM), jnp.float32)

    for s in range(TRG_LEN - 1):                             # static unroll
        # ---- input token embedding -------------------------------------
        if s == 0:
            # First decode step always uses trg[0] (exact PyTorch semantics).
            emb_bf = trg_emb_ref[0]
        else:
            emb_scr[...] = trg_emb_ref[s]                    # teacher-forced emb

            @pl.when(tf_ref[s] == 0)                         # greedy only if TF off
            def _(prev=prev):
                m = jnp.max(prev, axis=1, keepdims=True)
                lane_ids = jax.lax.broadcasted_iota(jnp.int32, prev.shape, 1)
                # first argmax (lowest index on ties, like jnp.argmax)
                top1 = jnp.min(jnp.where(prev == m, lane_ids, OUTPUT_DIM),
                               axis=1, keepdims=True)
                onehot = (lane_ids == top1).astype(jnp.bfloat16)
                greedy = jnp.dot(onehot, emb_tbl_ref[...],
                                 preferred_element_type=jnp.float32)
                emb_scr[...] = greedy.astype(jnp.bfloat16)   # lossless: bf16 rows

            emb_bf = emb_scr[...]

        # ---- GRU cell over [embedded | context] (ctx part hoisted) ------
        gi = jnp.dot(emb_bf, dec_wih_e,
                     preferred_element_type=jnp.float32) + gi_ctx
        gh = jnp.dot(hidden.astype(jnp.bfloat16), dec_whh,
                     preferred_element_type=jnp.float32) + dec_bhh
        hidden = _gru_combine(gi, gh, hidden)

        # ---- fc_out over [embedded | hidden | context] (ctx hoisted) ----
        pred = (jnp.dot(emb_bf, fc_e, preferred_element_type=jnp.float32)
                + jnp.dot(hidden.astype(jnp.bfloat16), fc_h,
                          preferred_element_type=jnp.float32)
                + pred_ctx)

        out_ref[s] = pred                                    # static VMEM store
        prev = pred


# ------------------------------ wrapper --------------------------------------
def fused_forward(tf_sel, src_emb, trg_emb, p):
    """tf_sel: (T-1,) int32; src_emb: (S*B, E) bf16; trg_emb: (T, B, E) bf16.
    Returns decoder logits for steps 1..T-1: (T-1, B, V) f32."""
    smem = pl.BlockSpec(memory_space=pltpu.MemorySpace.SMEM)
    vmem = pl.BlockSpec(memory_space=pltpu.MemorySpace.VMEM)
    return pl.pallas_call(
        seq2seq_kernel,
        out_shape=jax.ShapeDtypeStruct((TRG_LEN - 1, BATCH, OUTPUT_DIM),
                                       jnp.float32),
        in_specs=[smem] + [vmem] * 16,
        out_specs=vmem,
        scratch_shapes=[pltpu.VMEM((BATCH, EMB_DIM), jnp.bfloat16)],
    )(tf_sel, src_emb, trg_emb,
      p["enc_wih_t"], p["enc_whh_t"], p["enc_bih"], p["enc_bhh"],
      p["dec_emb"],
      p["dec_wih_e_t"], p["dec_wih_c_t"], p["dec_whh_t"],
      p["dec_bih"], p["dec_bhh"],
      p["fc_e_t"], p["fc_h_t"], p["fc_c_t"], p["fc_b"])


@jax.jit
def seq2seq_forward(params, src, trg, tf_sel):
    """src: (SRC_LEN, B) int32, trg: (TRG_LEN, B) int32,
    tf_sel: (TRG_LEN-1,) int32 teacher-forcing selectors (tf_sel[0] unused,
    first step is always teacher-forced in-kernel).
    Returns (TRG_LEN, B, OUTPUT_DIM) with outputs[0] == 0."""
    src_emb = jnp.take(params["enc_emb"], src.reshape(-1), axis=0)   # (S*B, E)
    trg_emb = jnp.take(params["dec_emb"], trg, axis=0)               # (T, B, E)
    dec_out = fused_forward(tf_sel, src_emb, trg_emb, params)        # (T-1, B, V)
    zeros = jnp.zeros((1, trg.shape[1], OUTPUT_DIM), jnp.float32)
    return jnp.concatenate([zeros, dec_out], axis=0)


# ------------------------------ params ----------------------------------------
def init_params(key):
    ks = jax.random.split(key, 16)
    s = 1.0 / jnp.sqrt(HID_DIM)
    uf = lambda k, shape, sc: jax.random.uniform(k, shape, jnp.float32, -sc, sc)
    ub = lambda k, shape, sc: uf(k, shape, sc).astype(jnp.bfloat16)
    return dict(
        # encoder
        enc_emb=ub(ks[0], (INPUT_DIM, EMB_DIM), 0.1),
        enc_wih_t=ub(ks[1], (EMB_DIM, 3 * HID_DIM), s),
        enc_whh_t=ub(ks[2], (HID_DIM, 3 * HID_DIM), s),
        enc_bih=uf(ks[3], (1, 3 * HID_DIM), s),
        enc_bhh=uf(ks[4], (1, 3 * HID_DIM), s),
        # decoder (W_ih^T split into [emb | ctx] row blocks)
        dec_emb=ub(ks[5], (OUTPUT_DIM, EMB_DIM), 0.1),
        dec_wih_e_t=ub(ks[6], (EMB_DIM, 3 * HID_DIM), s),
        dec_wih_c_t=ub(ks[7], (HID_DIM, 3 * HID_DIM), s),
        dec_whh_t=ub(ks[8], (HID_DIM, 3 * HID_DIM), s),
        dec_bih=uf(ks[9], (1, 3 * HID_DIM), s),
        dec_bhh=uf(ks[10], (1, 3 * HID_DIM), s),
        # fc_out: Linear(EMB + 2*HID -> V), stored as W^T split [emb | h | ctx]
        fc_e_t=ub(ks[11], (EMB_DIM, OUTPUT_DIM), s),
        fc_h_t=ub(ks[12], (HID_DIM, OUTPUT_DIM), s),
        fc_c_t=ub(ks[13], (HID_DIM, OUTPUT_DIM), s),
        fc_b=uf(ks[14], (1, OUTPUT_DIM), s),
    )


# ------------------------------ pure-JAX reference ----------------------------
def reference_forward(p, src, trg, tf_sel):
    # encoder
    src_emb = jnp.take(p["enc_emb"], src, axis=0)
    h = jnp.zeros((BATCH, HID_DIM), jnp.float32)
    for t in range(SRC_LEN):
        gi = jnp.dot(src_emb[t], p["enc_wih_t"],
                     preferred_element_type=jnp.float32) + p["enc_bih"]
        gh = jnp.dot(h.astype(jnp.bfloat16), p["enc_whh_t"],
                     preferred_element_type=jnp.float32) + p["enc_bhh"]
        h = _gru_combine(gi, gh, h)
    context = h
    hidden = context
    ctx_bf = context.astype(jnp.bfloat16)

    trg_emb = jnp.take(p["dec_emb"], trg, axis=0)
    outputs = [jnp.zeros((BATCH, OUTPUT_DIM), jnp.float32)]
    prev = jnp.zeros((BATCH, OUTPUT_DIM), jnp.float32)
    for s in range(TRG_LEN - 1):
        if s == 0:
            embedded = trg_emb[0].astype(jnp.float32)
        else:
            w_tf = (tf_sel[s] > 0).astype(jnp.float32)
            top1 = jnp.argmax(prev, axis=1)
            greedy = jnp.take(p["dec_emb"], top1, axis=0).astype(jnp.float32)
            embedded = w_tf * trg_emb[s].astype(jnp.float32) + (1.0 - w_tf) * greedy
        emb_bf = embedded.astype(jnp.bfloat16)
        gi = (jnp.dot(emb_bf, p["dec_wih_e_t"], preferred_element_type=jnp.float32)
              + jnp.dot(ctx_bf, p["dec_wih_c_t"], preferred_element_type=jnp.float32)
              + p["dec_bih"])
        gh = jnp.dot(hidden.astype(jnp.bfloat16), p["dec_whh_t"],
                     preferred_element_type=jnp.float32) + p["dec_bhh"]
        hidden = _gru_combine(gi, gh, hidden)
        pred = (jnp.dot(emb_bf, p["fc_e_t"], preferred_element_type=jnp.float32)
                + jnp.dot(hidden.astype(jnp.bfloat16), p["fc_h_t"],
                          preferred_element_type=jnp.float32)
                + jnp.dot(ctx_bf, p["fc_c_t"], preferred_element_type=jnp.float32)
                + p["fc_b"])
        outputs.append(pred)
        prev = pred
    return jnp.stack(outputs, axis=0)


# ---------------------------------- main -------------------------------------
if __name__ == "__main__":
    key = jax.random.PRNGKey(0)
    pkey, skey, tkey = jax.random.split(key, 3)
    params = init_params(pkey)

    src = jax.random.randint(skey, (SRC_LEN, BATCH), 0, INPUT_DIM, jnp.int32)
    trg = jax.random.randint(tkey, (TRG_LEN, BATCH), 0, OUTPUT_DIM, jnp.int32)

    # Host-side teacher-forcing draws (same count/order as the PyTorch loop);
    # passed into the jitted forward as data. tf_sel[0] corresponds to the
    # first decode step, which is always teacher-forced (trg[0]).
    teacher_forcing_ratio = 1.0
    random.seed(0)
    draws = [random.random() < teacher_forcing_ratio for _ in range(1, TRG_LEN)]
    tf_sel = jnp.asarray([1] + [int(d) for d in draws[:TRG_LEN - 2]], jnp.int32)

    # --- teacher-forced path ---
    outputs = seq2seq_forward(params, src, trg, tf_sel)
    outputs = jax.block_until_ready(outputs)
    ref = reference_forward(params, src, trg, tf_sel)

    assert outputs.shape == (TRG_LEN, BATCH, OUTPUT_DIM)
    assert bool(jnp.all(outputs[0] == 0.0))
    assert bool(jnp.all(jnp.isfinite(outputs)))
    assert bool(jnp.allclose(outputs, ref, rtol=1e-2, atol=1e-2))

    # --- greedy-feedback path (exercises the pl.when(tf==0) branch) ---
    tf_sel_greedy = jnp.asarray([1] + [0] * (TRG_LEN - 2), jnp.int32)
    outputs_g = jax.block_until_ready(
        seq2seq_forward(params, src, trg, tf_sel_greedy))
    ref_g = reference_forward(params, src, trg, tf_sel_greedy)
    assert bool(jnp.all(jnp.isfinite(outputs_g)))
    assert bool(jnp.allclose(outputs_g, ref_g, rtol=1e-2, atol=1e-2))

    print("KERNEL_OK")
</pallas_src>

<mosaic_0001>
module attributes {stable_mosaic.version = 11 : i64} {
  func.func @seq2seq_kernel(%arg0: memref<4xi32, #tpu.memory_space<smem>>, %arg1: memref<48x128xbf16, #tpu.memory_space<vmem>>, %arg2: memref<5x8x128xbf16, #tpu.memory_space<vmem>>, %arg3: memref<128x384xbf16, #tpu.memory_space<vmem>>, %arg4: memref<128x384xbf16, #tpu.memory_space<vmem>>, %arg5: memref<1x384xf32, #tpu.memory_space<vmem>>, %arg6: memref<1x384xf32, #tpu.memory_space<vmem>>, %arg7: memref<384x128xbf16, #tpu.memory_space<vmem>>, %arg8: memref<128x384xbf16, #tpu.memory_space<vmem>>, %arg9: memref<128x384xbf16, #tpu.memory_space<vmem>>, %arg10: memref<128x384xbf16, #tpu.memory_space<vmem>>, %arg11: memref<1x384xf32, #tpu.memory_space<vmem>>, %arg12: memref<1x384xf32, #tpu.memory_space<vmem>>, %arg13: memref<128x384xbf16, #tpu.memory_space<vmem>>, %arg14: memref<128x384xbf16, #tpu.memory_space<vmem>>, %arg15: memref<128x384xbf16, #tpu.memory_space<vmem>>, %arg16: memref<1x384xf32, #tpu.memory_space<vmem>>, %arg17: memref<4x8x384xf32, #tpu.memory_space<vmem>>, %arg18: memref<8x128xbf16, #tpu.memory_space<vmem>>) attributes {dimension_semantics = [], scalar_prefetch = 0 : i64, scratch_operands = 1 : i64, tpu.core_type = #tpu.core_type<tc>} {
    %c0 = arith.constant 0 : index
    %c0_0 = arith.constant 0 : index
    %0 = vector.load %arg1[%c0, %c0_0] : memref<48x128xbf16, #tpu.memory_space<vmem>>, vector<48x128xbf16>
    %c0_1 = arith.constant 0 : index
    %c0_2 = arith.constant 0 : index
    %1 = vector.load %arg3[%c0_1, %c0_2] : memref<128x384xbf16, #tpu.memory_space<vmem>>, vector<128x384xbf16>
    %cst = arith.constant dense<0.000000e+00> : vector<48x384xf32>
    %2 = tpu.matmul %0, %1, %cst {dimension_numbers = #tpu.dot_dimension_numbers<[1], [0], [0], [1], [0, 0, 1, 1], [], []>} : vector<48x128xbf16>, vector<128x384xbf16>, vector<48x384xf32> -> vector<48x384xf32>
    %c0_3 = arith.constant 0 : index
    %c0_4 = arith.constant 0 : index
    %3 = vector.load %arg5[%c0_3, %c0_4] : memref<1x384xf32, #tpu.memory_space<vmem>>, vector<1x384xf32>
    %4 = vector.broadcast %3 : vector<1x384xf32> to vector<48x384xf32>
    %5 = arith.addf %2, %4 : vector<48x384xf32>
    %c0_5 = arith.constant 0 : index
    %c0_6 = arith.constant 0 : index
    %6 = vector.load %arg4[%c0_5, %c0_6] : memref<128x384xbf16, #tpu.memory_space<vmem>>, vector<128x384xbf16>
    %c0_7 = arith.constant 0 : index
    %c0_8 = arith.constant 0 : index
    %7 = vector.load %arg6[%c0_7, %c0_8] : memref<1x384xf32, #tpu.memory_space<vmem>>, vector<1x384xf32>
    %8 = vector.shape_cast %7 : vector<1x384xf32> to vector<1x384xf32>
    %9 = vector.broadcast %8 : vector<1x384xf32> to vector<8x384xf32>
    %cst_9 = arith.constant 0.000000e+00 : f32
    %10 = vector.broadcast %cst_9 : f32 to vector<8x128xf32>
    %11 = vector.extract_strided_slice %5 {offsets = [0, 0], sizes = [8, 384], strides = [1, 1]} : vector<48x384xf32> to vector<8x384xf32>
    %12 = arith.truncf %10 : vector<8x128xf32> to vector<8x128xbf16>
    %cst_10 = arith.constant dense<0.000000e+00> : vector<8x384xf32>
    %13 = tpu.matmul %12, %6, %cst_10 {dimension_numbers = #tpu.dot_dimension_numbers<[1], [0], [0], [1], [0, 0, 1, 1], [], []>} : vector<8x128xbf16>, vector<128x384xbf16>, vector<8x384xf32> -> vector<8x384xf32>
    %14 = arith.addf %13, %9 : vector<8x384xf32>
    %15 = vector.extract_strided_slice %11 {offsets = [0, 0], sizes = [8, 128], strides = [1, 1]} : vector<8x384xf32> to vector<8x128xf32>
    %16 = vector.extract_strided_slice %14 {offsets = [0, 0], sizes = [8, 128], strides = [1, 1]} : vector<8x384xf32> to vector<8x128xf32>
    %17 = arith.addf %15, %16 : vector<8x128xf32>
    %18 = arith.negf %17 : vector<8x128xf32>
    %19 = math.exp %18 : vector<8x128xf32>
    %cst_11 = arith.constant 1.000000e+00 : f32
    %20 = vector.broadcast %cst_11 : f32 to vector<8x128xf32>
    %21 = arith.addf %20, %19 : vector<8x128xf32>
    %22 = arith.divf %20, %21 : vector<8x128xf32>
    %23 = vector.extract_strided_slice %11 {offsets = [0, 128], sizes = [8, 128], strides = [1, 1]} : vector<8x384xf32> to vector<8x128xf32>
    %24 = vector.extract_strided_slice %14 {offsets = [0, 128], sizes = [8, 128], strides = [1, 1]} : vector<8x384xf32> to vector<8x128xf32>
    %25 = arith.addf %23, %24 : vector<8x128xf32>
    %26 = arith.negf %25 : vector<8x128xf32>
    %27 = math.exp %26 : vector<8x128xf32>
    %cst_12 = arith.constant 1.000000e+00 : f32
    %28 = vector.broadcast %cst_12 : f32 to vector<8x128xf32>
    %29 = arith.addf %28, %27 : vector<8x128xf32>
    %30 = arith.divf %28, %29 : vector<8x128xf32>
    %31 = vector.extract_strided_slice %11 {offsets = [0, 256], sizes = [8, 128], strides = [1, 1]} : vector<8x384xf32> to vector<8x128xf32>
    %32 = vector.extract_strided_slice %14 {offsets = [0, 256], sizes = [8, 128], strides = [1, 1]} : vector<8x384xf32> to vector<8x128xf32>
    %33 = arith.mulf %22, %32 : vector<8x128xf32>
    %34 = arith.addf %31, %33 : vector<8x128xf32>
    %35 = math.tanh %34 : vector<8x128xf32>
    %cst_13 = arith.constant 1.000000e+00 : f32
    %36 = vector.broadcast %cst_13 : f32 to vector<8x128xf32>
    %37 = arith.subf %36, %30 : vector<8x128xf32>
    %38 = arith.mulf %37, %35 : vector<8x128xf32>
    %39 = arith.mulf %30, %10 : vector<8x128xf32>
    %40 = arith.addf %38, %39 : vector<8x128xf32>
    %41 = vector.extract_strided_slice %5 {offsets = [8, 0], sizes = [8, 384], strides = [1, 1]} : vector<48x384xf32> to vector<8x384xf32>
    %42 = arith.truncf %40 : vector<8x128xf32> to vector<8x128xbf16>
    %cst_14 = arith.constant dense<0.000000e+00> : vector<8x384xf32>
    %43 = tpu.matmul %42, %6, %cst_14 {dimension_numbers = #tpu.dot_dimension_numbers<[1], [0], [0], [1], [0, 0, 1, 1], [], []>} : vector<8x128xbf16>, vector<128x384xbf16>, vector<8x384xf32> -> vector<8x384xf32>
    %44 = arith.addf %43, %9 : vector<8x384xf32>
    %45 = vector.extract_strided_slice %41 {offsets = [0, 0], sizes = [8, 128], strides = [1, 1]} : vector<8x384xf32> to vector<8x128xf32>
    %46 = vector.extract_strided_slice %44 {offsets = [0, 0], sizes = [8, 128], strides = [1, 1]} : vector<8x384xf32> to vector<8x128xf32>
    %47 = arith.addf %45, %46 : vector<8x128xf32>
    %48 = arith.negf %47 : vector<8x128xf32>
    %49 = math.exp %48 : vector<8x128xf32>
    %cst_15 = arith.constant 1.000000e+00 : f32
    %50 = vector.broadcast %cst_15 : f32 to vector<8x128xf32>
    %51 = arith.addf %50, %49 : vector<8x128xf32>
    %52 = arith.divf %50, %51 : vector<8x128xf32>
    %53 = vector.extract_strided_slice %41 {offsets = [0, 128], sizes = [8, 128], strides = [1, 1]} : vector<8x384xf32> to vector<8x128xf32>
    %54 = vector.extract_strided_slice %44 {offsets = [0, 128], sizes = [8, 128], strides = [1, 1]} : vector<8x384xf32> to vector<8x128xf32>
    %55 = arith.addf %53, %54 : vector<8x128xf32>
    %56 = arith.negf %55 : vector<8x128xf32>
    %57 = math.exp %56 : vector<8x128xf32>
    %cst_16 = arith.constant 1.000000e+00 : f32
    %58 = vector.broadcast %cst_16 : f32 to vector<8x128xf32>
    %59 = arith.addf %58, %57 : vector<8x128xf32>
    %60 = arith.divf %58, %59 : vector<8x128xf32>
    %61 = vector.extract_strided_slice %41 {offsets = [0, 256], sizes = [8, 128], strides = [1, 1]} : vector<8x384xf32> to vector<8x128xf32>
    %62 = vector.extract_strided_slice %44 {offsets = [0, 256], sizes = [8, 128], strides = [1, 1]} : vector<8x384xf32> to vector<8x128xf32>
    %63 = arith.mulf %52, %62 : vector<8x128xf32>
    %64 = arith.addf %61, %63 : vector<8x128xf32>
    %65 = math.tanh %64 : vector<8x128xf32>
    %cst_17 = arith.constant 1.000000e+00 : f32
    %66 = vector.broadcast %cst_17 : f32 to vector<8x128xf32>
    %67 = arith.subf %66, %60 : vector<8x128xf32>
    %68 = arith.mulf %67, %65 : vector<8x128xf32>
    %69 = arith.mulf %60, %40 : vector<8x128xf32>
    %70 = arith.addf %68, %69 : vector<8x128xf32>
    %71 = vector.extract_strided_slice %5 {offsets = [16, 0], sizes = [8, 384], strides = [1, 1]} : vector<48x384xf32> to vector<8x384xf32>
    %72 = arith.truncf %70 : vector<8x128xf32> to vector<8x128xbf16>
    %cst_18 = arith.constant dense<0.000000e+00> : vector<8x384xf32>
    %73 = tpu.matmul %72, %6, %cst_18 {dimension_numbers = #tpu.dot_dimension_numbers<[1], [0], [0], [1], [0, 0, 1, 1], [], []>} : vector<8x128xbf16>, vector<128x384xbf16>, vector<8x384xf32> -> vector<8x384xf32>
    %74 = arith.addf %73, %9 : vector<8x384xf32>
    %75 = vector.extract_strided_slice %71 {offsets = [0, 0], sizes = [8, 128], strides = [1, 1]} : vector<8x384xf32> to vector<8x128xf32>
    %76 = vector.extract_strided_slice %74 {offsets = [0, 0], sizes = [8, 128], strides = [1, 1]} : vector<8x384xf32> to vector<8x128xf32>
    %77 = arith.addf %75, %76 : vector<8x128xf32>
    %78 = arith.negf %77 : vector<8x128xf32>
    %79 = math.exp %78 : vector<8x128xf32>
    %cst_19 = arith.constant 1.000000e+00 : f32
    %80 = vector.broadcast %cst_19 : f32 to vector<8x128xf32>
    %81 = arith.addf %80, %79 : vector<8x128xf32>
    %82 = arith.divf %80, %81 : vector<8x128xf32>
    %83 = vector.extract_strided_slice %71 {offsets = [0, 128], sizes = [8, 128], strides = [1, 1]} : vector<8x384xf32> to vector<8x128xf32>
    %84 = vector.extract_strided_slice %74 {offsets = [0, 128], sizes = [8, 128], strides = [1, 1]} : vector<8x384xf32> to vector<8x128xf32>
    %85 = arith.addf %83, %84 : vector<8x128xf32>
    %86 = arith.negf %85 : vector<8x128xf32>
    %87 = math.exp %86 : vector<8x128xf32>
    %cst_20 = arith.constant 1.000000e+00 : f32
    %88 = vector.broadcast %cst_20 : f32 to vector<8x128xf32>
    %89 = arith.addf %88, %87 : vector<8x128xf32>
    %90 = arith.divf %88, %89 : vector<8x128xf32>
    %91 = vector.extract_strided_slice %71 {offsets = [0, 256], sizes = [8, 128], strides = [1, 1]} : vector<8x384xf32> to vector<8x128xf32>
    %92 = vector.extract_strided_slice %74 {offsets = [0, 256], sizes = [8, 128], strides = [1, 1]} : vector<8x384xf32> to vector<8x128xf32>
    %93 = arith.mulf %82, %92 : vector<8x128xf32>
    %94 = arith.addf %91, %93 : vector<8x128xf32>
    %95 = math.tanh %94 : vector<8x128xf32>
    %cst_21 = arith.constant 1.000000e+00 : f32
    %96 = vector.broadcast %cst_21 : f32 to vector<8x128xf32>
    %97 = arith.subf %96, %90 : vector<8x128xf32>
    %98 = arith.mulf %97, %95 : vector<8x128xf32>
    %99 = arith.mulf %90, %70 : vector<8x128xf32>
    %100 = arith.addf %98, %99 : vector<8x128xf32>
    %101 = vector.extract_strided_slice %5 {offsets = [24, 0], sizes = [8, 384], strides = [1, 1]} : vector<48x384xf32> to vector<8x384xf32>
    %102 = arith.truncf %100 : vector<8x128xf32> to vector<8x128xbf16>
    %cst_22 = arith.constant dense<0.000000e+00> : vector<8x384xf32>
    %103 = tpu.matmul %102, %6, %cst_22 {dimension_numbers = #tpu.dot_dimension_numbers<[1], [0], [0], [1], [0, 0, 1, 1], [], []>} : vector<8x128xbf16>, vector<128x384xbf16>, vector<8x384xf32> -> vector<8x384xf32>
    %104 = arith.addf %103, %9 : vector<8x384xf32>
    %105 = vector.extract_strided_slice %101 {offsets = [0, 0], sizes = [8, 128], strides = [1, 1]} : vector<8x384xf32> to vector<8x128xf32>
    %106 = vector.extract_strided_slice %104 {offsets = [0, 0], sizes = [8, 128], strides = [1, 1]} : vector<8x384xf32> to vector<8x128xf32>
    %107 = arith.addf %105, %106 : vector<8x128xf32>
    %108 = arith.negf %107 : vector<8x128xf32>
    %109 = math.exp %108 : vector<8x128xf32>
    %cst_23 = arith.constant 1.000000e+00 : f32
    %110 = vector.broadcast %cst_23 : f32 to vector<8x128xf32>
    %111 = arith.addf %110, %109 : vector<8x128xf32>
    %112 = arith.divf %110, %111 : vector<8x128xf32>
    %113 = vector.extract_strided_slice %101 {offsets = [0, 128], sizes = [8, 128], strides = [1, 1]} : vector<8x384xf32> to vector<8x128xf32>
    %114 = vector.extract_strided_slice %104 {offsets = [0, 128], sizes = [8, 128], strides = [1, 1]} : vector<8x384xf32> to vector<8x128xf32>
    %115 = arith.addf %113, %114 : vector<8x128xf32>
    %116 = arith.negf %115 : vector<8x128xf32>
    %117 = math.exp %116 : vector<8x128xf32>
    %cst_24 = arith.constant 1.000000e+00 : f32
    %118 = vector.broadcast %cst_24 : f32 to vector<8x128xf32>
    %119 = arith.addf %118, %117 : vector<8x128xf32>
    %120 = arith.divf %118, %119 : vector<8x128xf32>
    %121 = vector.extract_strided_slice %101 {offsets = [0, 256], sizes = [8, 128], strides = [1, 1]} : vector<8x384xf32> to vector<8x128xf32>
    %122 = vector.extract_strided_slice %104 {offsets = [0, 256], sizes = [8, 128], strides = [1, 1]} : vector<8x384xf32> to vector<8x128xf32>
    %123 = arith.mulf %112, %122 : vector<8x128xf32>
    %124 = arith.addf %121, %123 : vector<8x128xf32>
    %125 = math.tanh %124 : vector<8x128xf32>
    %cst_25 = arith.constant 1.000000e+00 : f32
    %126 = vector.broadcast %cst_25 : f32 to vector<8x128xf32>
    %127 = arith.subf %126, %120 : vector<8x128xf32>
    %128 = arith.mulf %127, %125 : vector<8x128xf32>
    %129 = arith.mulf %120, %100 : vector<8x128xf32>
    %130 = arith.addf %128, %129 : vector<8x128xf32>
    %131 = vector.extract_strided_slice %5 {offsets = [32, 0], sizes = [8, 384], strides = [1, 1]} : vector<48x384xf32> to vector<8x384xf32>
    %132 = arith.truncf %130 : vector<8x128xf32> to vector<8x128xbf16>
    %cst_26 = arith.constant dense<0.000000e+00> : vector<8x384xf32>
    %133 = tpu.matmul %132, %6, %cst_26 {dimension_numbers = #tpu.dot_dimension_numbers<[1], [0], [0], [1], [0, 0, 1, 1], [], []>} : vector<8x128xbf16>, vector<128x384xbf16>, vector<8x384xf32> -> vector<8x384xf32>
    %134 = arith.addf %133, %9 : vector<8x384xf32>
    %135 = vector.extract_strided_slice %131 {offsets = [0, 0], sizes = [8, 128], strides = [1, 1]} : vector<8x384xf32> to vector<8x128xf32>
    %136 = vector.extract_strided_slice %134 {offsets = [0, 0], sizes = [8, 128], strides = [1, 1]} : vector<8x384xf32> to vector<8x128xf32>
    %137 = arith.addf %135, %136 : vector<8x128xf32>
    %138 = arith.negf %137 : vector<8x128xf32>
    %139 = math.exp %138 : vector<8x128xf32>
    %cst_27 = arith.constant 1.000000e+00 : f32
    %140 = vector.broadcast %cst_27 : f32 to vector<8x128xf32>
    %141 = arith.addf %140, %139 : vector<8x128xf32>
    %142 = arith.divf %140, %141 : vector<8x128xf32>
    %143 = vector.extract_strided_slice %131 {offsets = [0, 128], sizes = [8, 128], strides = [1, 1]} : vector<8x384xf32> to vector<8x128xf32>
    %144 = vector.extract_strided_slice %134 {offsets = [0, 128], sizes = [8, 128], strides = [1, 1]} : vector<8x384xf32> to vector<8x128xf32>
    %145 = arith.addf %143, %144 : vector<8x128xf32>
    %146 = arith.negf %145 : vector<8x128xf32>
    %147 = math.exp %146 : vector<8x128xf32>
    %cst_28 = arith.constant 1.000000e+00 : f32
    %148 = vector.broadcast %cst_28 : f32 to vector<8x128xf32>
    %149 = arith.addf %148, %147 : vector<8x128xf32>
    %150 = arith.divf %148, %149 : vector<8x128xf32>
    %151 = vector.extract_strided_slice %131 {offsets = [0, 256], sizes = [8, 128], strides = [1, 1]} : vector<8x384xf32> to vector<8x128xf32>
    %152 = vector.extract_strided_slice %134 {offsets = [0, 256], sizes = [8, 128], strides = [1, 1]} : vector<8x384xf32> to vector<8x128xf32>
    %153 = arith.mulf %142, %152 : vector<8x128xf32>
    %154 = arith.addf %151, %153 : vector<8x128xf32>
    %155 = math.tanh %154 : vector<8x128xf32>
    %cst_29 = arith.constant 1.000000e+00 : f32
    %156 = vector.broadcast %cst_29 : f32 to vector<8x128xf32>
    %157 = arith.subf %156, %150 : vector<8x128xf32>
    %158 = arith.mulf %157, %155 : vector<8x128xf32>
    %159 = arith.mulf %150, %130 : vector<8x128xf32>
    %160 = arith.addf %158, %159 : vector<8x128xf32>
    %161 = vector.extract_strided_slice %5 {offsets = [40, 0], sizes = [8, 384], strides = [1, 1]} : vector<48x384xf32> to vector<8x384xf32>
    %162 = arith.truncf %160 : vector<8x128xf32> to vector<8x128xbf16>
    %cst_30 = arith.constant dense<0.000000e+00> : vector<8x384xf32>
    %163 = tpu.matmul %162, %6, %cst_30 {dimension_numbers = #tpu.dot_dimension_numbers<[1], [0], [0], [1], [0, 0, 1, 1], [], []>} : vector<8x128xbf16>, vector<128x384xbf16>, vector<8x384xf32> -> vector<8x384xf32>
    %164 = arith.addf %163, %9 : vector<8x384xf32>
    %165 = vector.extract_strided_slice %161 {offsets = [0, 0], sizes = [8, 128], strides = [1, 1]} : vector<8x384xf32> to vector<8x128xf32>
    %166 = vector.extract_strided_slice %164 {offsets = [0, 0], sizes = [8, 128], strides = [1, 1]} : vector<8x384xf32> to vector<8x128xf32>
    %167 = arith.addf %165, %166 : vector<8x128xf32>
    %168 = arith.negf %167 : vector<8x128xf32>
    %169 = math.exp %168 : vector<8x128xf32>
    %cst_31 = arith.constant 1.000000e+00 : f32
    %170 = vector.broadcast %cst_31 : f32 to vector<8x128xf32>
    %171 = arith.addf %170, %169 : vector<8x128xf32>
    %172 = arith.divf %170, %171 : vector<8x128xf32>
    %173 = vector.extract_strided_slice %161 {offsets = [0, 128], sizes = [8, 128], strides = [1, 1]} : vector<8x384xf32> to vector<8x128xf32>
    %174 = vector.extract_strided_slice %164 {offsets = [0, 128], sizes = [8, 128], strides = [1, 1]} : vector<8x384xf32> to vector<8x128xf32>
    %175 = arith.addf %173, %174 : vector<8x128xf32>
    %176 = arith.negf %175 : vector<8x128xf32>
    %177 = math.exp %176 : vector<8x128xf32>
    %cst_32 = arith.constant 1.000000e+00 : f32
    %178 = vector.broadcast %cst_32 : f32 to vector<8x128xf32>
    %179 = arith.addf %178, %177 : vector<8x128xf32>
    %180 = arith.divf %178, %179 : vector<8x128xf32>
    %181 = vector.extract_strided_slice %161 {offsets = [0, 256], sizes = [8, 128], strides = [1, 1]} : vector<8x384xf32> to vector<8x128xf32>
    %182 = vector.extract_strided_slice %164 {offsets = [0, 256], sizes = [8, 128], strides = [1, 1]} : vector<8x384xf32> to vector<8x128xf32>
    %183 = arith.mulf %172, %182 : vector<8x128xf32>
    %184 = arith.addf %181, %183 : vector<8x128xf32>
    %185 = math.tanh %184 : vector<8x128xf32>
    %cst_33 = arith.constant 1.000000e+00 : f32
    %186 = vector.broadcast %cst_33 : f32 to vector<8x128xf32>
    %187 = arith.subf %186, %180 : vector<8x128xf32>
    %188 = arith.mulf %187, %185 : vector<8x128xf32>
    %189 = arith.mulf %180, %160 : vector<8x128xf32>
    %190 = arith.addf %188, %189 : vector<8x128xf32>
    %191 = arith.truncf %190 : vector<8x128xf32> to vector<8x128xbf16>
    %c0_34 = arith.constant 0 : index
    %c0_35 = arith.constant 0 : index
    %192 = vector.load %arg9[%c0_34, %c0_35] : memref<128x384xbf16, #tpu.memory_space<vmem>>, vector<128x384xbf16>
    %cst_36 = arith.constant dense<0.000000e+00> : vector<8x384xf32>
    %193 = tpu.matmul %191, %192, %cst_36 {dimension_numbers = #tpu.dot_dimension_numbers<[1], [0], [0], [1], [0, 0, 1, 1], [], []>} : vector<8x128xbf16>, vector<128x384xbf16>, vector<8x384xf32> -> vector<8x384xf32>
    %c0_37 = arith.constant 0 : index
    %c0_38 = arith.constant 0 : index
    %194 = vector.load %arg11[%c0_37, %c0_38] : memref<1x384xf32, #tpu.memory_space<vmem>>, vector<1x384xf32>
    %195 = vector.broadcast %194 : vector<1x384xf32> to vector<8x384xf32>
    %196 = arith.addf %193, %195 : vector<8x384xf32>
    %c0_39 = arith.constant 0 : index
    %c0_40 = arith.constant 0 : index
    %197 = vector.load %arg15[%c0_39, %c0_40] : memref<128x384xbf16, #tpu.memory_space<vmem>>, vector<128x384xbf16>
    %cst_41 = arith.constant dense<0.000000e+00> : vector<8x384xf32>
    %198 = tpu.matmul %191, %197, %cst_41 {dimension_numbers = #tpu.dot_dimension_numbers<[1], [0], [0], [1], [0, 0, 1, 1], [], []>} : vector<8x128xbf16>, vector<128x384xbf16>, vector<8x384xf32> -> vector<8x384xf32>
    %c0_42 = arith.constant 0 : index
    %c0_43 = arith.constant 0 : index
    %199 = vector.load %arg16[%c0_42, %c0_43] : memref<1x384xf32, #tpu.memory_space<vmem>>, vector<1x384xf32>
    %200 = vector.broadcast %199 : vector<1x384xf32> to vector<8x384xf32>
    %201 = arith.addf %198, %200 : vector<8x384xf32>
    %c0_44 = arith.constant 0 : index
    %c0_45 = arith.constant 0 : index
    %202 = vector.load %arg8[%c0_44, %c0_45] : memref<128x384xbf16, #tpu.memory_space<vmem>>, vector<128x384xbf16>
    %c0_46 = arith.constant 0 : index
    %c0_47 = arith.constant 0 : index
    %203 = vector.load %arg10[%c0_46, %c0_47] : memref<128x384xbf16, #tpu.memory_space<vmem>>, vector<128x384xbf16>
    %c0_48 = arith.constant 0 : index
    %c0_49 = arith.constant 0 : index
    %204 = vector.load %arg12[%c0_48, %c0_49] : memref<1x384xf32, #tpu.memory_space<vmem>>, vector<1x384xf32>
    %205 = vector.shape_cast %204 : vector<1x384xf32> to vector<1x384xf32>
    %206 = vector.broadcast %205 : vector<1x384xf32> to vector<8x384xf32>
    %c0_50 = arith.constant 0 : index
    %c0_51 = arith.constant 0 : index
    %207 = vector.load %arg13[%c0_50, %c0_51] : memref<128x384xbf16, #tpu.memory_space<vmem>>, vector<128x384xbf16>
    %c0_52 = arith.constant 0 : index
    %c0_53 = arith.constant 0 : index
    %208 = vector.load %arg14[%c0_52, %c0_53] : memref<128x384xbf16, #tpu.memory_space<vmem>>, vector<128x384xbf16>
    %c0_54 = arith.constant 0 : index
    %c0_55 = arith.constant 0 : index
    %c0_56 = arith.constant 0 : index
    %209 = vector.load %arg2[%c0_54, %c0_55, %c0_56] : memref<5x8x128xbf16, #tpu.memory_space<vmem>>, vector<1x8x128xbf16>
    %210 = vector.shape_cast %209 : vector<1x8x128xbf16> to vector<8x128xbf16>
    %cst_57 = arith.constant dense<0.000000e+00> : vector<8x384xf32>
    %211 = tpu.matmul %210, %202, %cst_57 {dimension_numbers = #tpu.dot_dimension_numbers<[1], [0], [0], [1], [0, 0, 1, 1], [], []>} : vector<8x128xbf16>, vector<128x384xbf16>, vector<8x384xf32> -> vector<8x384xf32>
    %212 = arith.addf %211, %196 : vector<8x384xf32>
    %213 = arith.truncf %190 : vector<8x128xf32> to vector<8x128xbf16>
    %cst_58 = arith.constant dense<0.000000e+00> : vector<8x384xf32>
    %214 = tpu.matmul %213, %203, %cst_58 {dimension_numbers = #tpu.dot_dimension_numbers<[1], [0], [0], [1], [0, 0, 1, 1], [], []>} : vector<8x128xbf16>, vector<128x384xbf16>, vector<8x384xf32> -> vector<8x384xf32>
    %215 = arith.addf %214, %206 : vector<8x384xf32>
    %216 = vector.extract_strided_slice %212 {offsets = [0, 0], sizes = [8, 128], strides = [1, 1]} : vector<8x384xf32> to vector<8x128xf32>
    %217 = vector.extract_strided_slice %215 {offsets = [0, 0], sizes = [8, 128], strides = [1, 1]} : vector<8x384xf32> to vector<8x128xf32>
    %218 = arith.addf %216, %217 : vector<8x128xf32>
    %219 = arith.negf %218 : vector<8x128xf32>
    %220 = math.exp %219 : vector<8x128xf32>
    %cst_59 = arith.constant 1.000000e+00 : f32
    %221 = vector.broadcast %cst_59 : f32 to vector<8x128xf32>
    %222 = arith.addf %221, %220 : vector<8x128xf32>
    %223 = arith.divf %221, %222 : vector<8x128xf32>
    %224 = vector.extract_strided_slice %212 {offsets = [0, 128], sizes = [8, 128], strides = [1, 1]} : vector<8x384xf32> to vector<8x128xf32>
    %225 = vector.extract_strided_slice %215 {offsets = [0, 128], sizes = [8, 128], strides = [1, 1]} : vector<8x384xf32> to vector<8x128xf32>
    %226 = arith.addf %224, %225 : vector<8x128xf32>
    %227 = arith.negf %226 : vector<8x128xf32>
    %228 = math.exp %227 : vector<8x128xf32>
    %cst_60 = arith.constant 1.000000e+00 : f32
    %229 = vector.broadcast %cst_60 : f32 to vector<8x128xf32>
    %230 = arith.addf %229, %228 : vector<8x128xf32>
    %231 = arith.divf %229, %230 : vector<8x128xf32>
    %232 = vector.extract_strided_slice %212 {offsets = [0, 256], sizes = [8, 128], strides = [1, 1]} : vector<8x384xf32> to vector<8x128xf32>
    %233 = vector.extract_strided_slice %215 {offsets = [0, 256], sizes = [8, 128], strides = [1, 1]} : vector<8x384xf32> to vector<8x128xf32>
    %234 = arith.mulf %223, %233 : vector<8x128xf32>
    %235 = arith.addf %232, %234 : vector<8x128xf32>
    %236 = math.tanh %235 : vector<8x128xf32>
    %cst_61 = arith.constant 1.000000e+00 : f32
    %237 = vector.broadcast %cst_61 : f32 to vector<8x128xf32>
    %238 = arith.subf %237, %231 : vector<8x128xf32>
    %239 = arith.mulf %238, %236 : vector<8x128xf32>
    %240 = arith.mulf %231, %190 : vector<8x128xf32>
    %241 = arith.addf %239, %240 : vector<8x128xf32>
    %cst_62 = arith.constant dense<0.000000e+00> : vector<8x384xf32>
    %242 = tpu.matmul %210, %207, %cst_62 {dimension_numbers = #tpu.dot_dimension_numbers<[1], [0], [0], [1], [0, 0, 1, 1], [], []>} : vector<8x128xbf16>, vector<128x384xbf16>, vector<8x384xf32> -> vector<8x384xf32>
    %243 = arith.truncf %241 : vector<8x128xf32> to vector<8x128xbf16>
    %cst_63 = arith.constant dense<0.000000e+00> : vector<8x384xf32>
    %244 = tpu.matmul %243, %208, %cst_63 {dimension_numbers = #tpu.dot_dimension_numbers<[1], [0], [0], [1], [0, 0, 1, 1], [], []>} : vector<8x128xbf16>, vector<128x384xbf16>, vector<8x384xf32> -> vector<8x384xf32>
    %245 = arith.addf %242, %244 : vector<8x384xf32>
    %246 = arith.addf %245, %201 : vector<8x384xf32>
    %c0_64 = arith.constant 0 : index
    %c0_65 = arith.constant 0 : index
    %c0_66 = arith.constant 0 : index
    %247 = vector.load %arg17[%c0_64, %c0_65, %c0_66] : memref<4x8x384xf32, #tpu.memory_space<vmem>>, vector<1x8x384xf32>
    %248 = vector.shape_cast %247 : vector<1x8x384xf32> to vector<8x384xf32>
    %249 = vector.shape_cast %246 : vector<8x384xf32> to vector<1x8x384xf32>
    tpu.vector_store %arg17[%c0_64, %c0_65, %c0_66], %249 {strides = array<i32>} : memref<4x8x384xf32, #tpu.memory_space<vmem>>, vector<1x8x384xf32>,
    %c1 = arith.constant 1 : index
    %c0_67 = arith.constant 0 : index
    %c0_68 = arith.constant 0 : index
    %250 = vector.load %arg2[%c1, %c0_67, %c0_68] : memref<5x8x128xbf16, #tpu.memory_space<vmem>>, vector<1x8x128xbf16>
    %251 = vector.shape_cast %250 : vector<1x8x128xbf16> to vector<8x128xbf16>
    %c0_69 = arith.constant 0 : index
    %c0_70 = arith.constant 0 : index
    %252 = vector.load %arg18[%c0_69, %c0_70] : memref<8x128xbf16, #tpu.memory_space<vmem>>, vector<8x128xbf16>
    tpu.vector_store %arg18[%c0_69, %c0_70], %251 {strides = array<i32>} : memref<8x128xbf16, #tpu.memory_space<vmem>>, vector<8x128xbf16>,
    %c1_71 = arith.constant 1 : index
    %253 = memref.load %arg0[%c1_71] : memref<4xi32, #tpu.memory_space<smem>>
    %c0_i32 = arith.constant 0 : i32
    %254 = arith.cmpi eq, %253, %c0_i32 : i32
    %255 = arith.extui %254 : i1 to i32
    %c0_i32_72 = arith.constant 0 : i32
    %256 = arith.cmpi ne, %255, %c0_i32_72 : i32
    scf.if %256 {
      %cst_123 = arith.constant dense<0xFF800000> : vector<8xf32>
      %391 = vector.multi_reduction <maximumf>, %246, %cst_123 [1] : vector<8x384xf32> to vector<8xf32>
      %392 = vector.shape_cast %391 : vector<8xf32> to vector<8x1xf32>
      %393 = tpu.iota {dimensions = array<i32: 1>} : vector<8x384xi32>
      %394 = vector.broadcast %392 : vector<8x1xf32> to vector<8x384xf32>
      %395 = arith.cmpf oeq, %246, %394 : vector<8x384xf32>
      %c384_i32 = arith.constant 384 : i32
      %396 = vector.broadcast %c384_i32 : i32 to vector<8x384xi32>
      %397 = arith.select %395, %393, %396 : vector<8x384xi1>, vector<8x384xi32>
      %cst_124 = arith.constant dense<2147483647> : vector<8xi32>
      %398 = vector.multi_reduction <minsi>, %397, %cst_124 [1] : vector<8x384xi32> to vector<8xi32>
      %399 = vector.shape_cast %398 : vector<8xi32> to vector<8x1xi32>
      %400 = vector.broadcast %399 : vector<8x1xi32> to vector<8x384xi32>
      %401 = arith.cmpi eq, %393, %400 : vector<8x384xi32>
      %402 = arith.extui %401 : vector<8x384xi1> to vector<8x384xi32>
      %403 = arith.sitofp %402 : vector<8x384xi32> to vector<8x384xf32>
      %404 = arith.truncf %403 : vector<8x384xf32> to vector<8x384xbf16>
      %c0_125 = arith.constant 0 : index
      %c0_126 = arith.constant 0 : index
      %405 = vector.load %arg7[%c0_125, %c0_126] : memref<384x128xbf16, #tpu.memory_space<vmem>>, vector<384x128xbf16>
      %cst_127 = arith.constant dense<0.000000e+00> : vector<8x128xf32>
      %406 = tpu.matmul %404, %405, %cst_127 {dimension_numbers = #tpu.dot_dimension_numbers<[1], [0], [0], [1], [0, 0, 1, 1], [], []>} : vector<8x384xbf16>, vector<384x128xbf16>, vector<8x128xf32> -> vector<8x128xf32>
      %407 = arith.truncf %406 : vector<8x128xf32> to vector<8x128xbf16>
      %c0_128 = arith.constant 0 : index
      %c0_129 = arith.constant 0 : index
      %408 = vector.load %arg18[%c0_128, %c0_129] : memref<8x128xbf16, #tpu.memory_space<vmem>>, vector<8x128xbf16>
      tpu.vector_store %arg18[%c0_128, %c0_129], %407 {strides = array<i32>} : memref<8x128xbf16, #tpu.memory_space<vmem>>, vector<8x128xbf16>,
    } else {
    }
    %c0_73 = arith.constant 0 : index
    %c0_74 = arith.constant 0 : index
    %257 = vector.load %arg18[%c0_73, %c0_74] : memref<8x128xbf16, #tpu.memory_space<vmem>>, vector<8x128xbf16>
    %cst_75 = arith.constant dense<0.000000e+00> : vector<8x384xf32>
    %258 = tpu.matmul %257, %202, %cst_75 {dimension_numbers = #tpu.dot_dimension_numbers<[1], [0], [0], [1], [0, 0, 1, 1], [], []>} : vector<8x128xbf16>, vector<128x384xbf16>, vector<8x384xf32> -> vector<8x384xf32>
    %259 = arith.addf %258, %196 : vector<8x384xf32>
    %260 = arith.truncf %241 : vector<8x128xf32> to vector<8x128xbf16>
    %cst_76 = arith.constant dense<0.000000e+00> : vector<8x384xf32>
    %261 = tpu.matmul %260, %203, %cst_76 {dimension_numbers = #tpu.dot_dimension_numbers<[1], [0], [0], [1], [0, 0, 1, 1], [], []>} : vector<8x128xbf16>, vector<128x384xbf16>, vector<8x384xf32> -> vector<8x384xf32>
    %262 = arith.addf %261, %206 : vector<8x384xf32>
    %263 = vector.extract_strided_slice %259 {offsets = [0, 0], sizes = [8, 128], strides = [1, 1]} : vector<8x384xf32> to vector<8x128xf32>
    %264 = vector.extract_strided_slice %262 {offsets = [0, 0], sizes = [8, 128], strides = [1, 1]} : vector<8x384xf32> to vector<8x128xf32>
    %265 = arith.addf %263, %264 : vector<8x128xf32>
    %266 = arith.negf %265 : vector<8x128xf32>
    %267 = math.exp %266 : vector<8x128xf32>
    %cst_77 = arith.constant 1.000000e+00 : f32
    %268 = vector.broadcast %cst_77 : f32 to vector<8x128xf32>
    %269 = arith.addf %268, %267 : vector<8x128xf32>
    %270 = arith.divf %268, %269 : vector<8x128xf32>
    %271 = vector.extract_strided_slice %259 {offsets = [0, 128], sizes = [8, 128], strides = [1, 1]} : vector<8x384xf32> to vector<8x128xf32>
    %272 = vector.extract_strided_slice %262 {offsets = [0, 128], sizes = [8, 128], strides = [1, 1]} : vector<8x384xf32> to vector<8x128xf32>
    %273 = arith.addf %271, %272 : vector<8x128xf32>
    %274 = arith.negf %273 : vector<8x128xf32>
    %275 = math.exp %274 : vector<8x128xf32>
    %cst_78 = arith.constant 1.000000e+00 : f32
    %276 = vector.broadcast %cst_78 : f32 to vector<8x128xf32>
    %277 = arith.addf %276, %275 : vector<8x128xf32>
    %278 = arith.divf %276, %277 : vector<8x128xf32>
    %279 = vector.extract_strided_slice %259 {offsets = [0, 256], sizes = [8, 128], strides = [1, 1]} : vector<8x384xf32> to vector<8x128xf32>
    %280 = vector.extract_strided_slice %262 {offsets = [0, 256], sizes = [8, 128], strides = [1, 1]} : vector<8x384xf32> to vector<8x128xf32>
    %281 = arith.mulf %270, %280 : vector<8x128xf32>
    %282 = arith.addf %279, %281 : vector<8x128xf32>
    %283 = math.tanh %282 : vector<8x128xf32>
    %cst_79 = arith.constant 1.000000e+00 : f32
    %284 = vector.broadcast %cst_79 : f32 to vector<8x128xf32>
    %285 = arith.subf %284, %278 : vector<8x128xf32>
    %286 = arith.mulf %285, %283 : vector<8x128xf32>
    %287 = arith.mulf %278, %241 : vector<8x128xf32>
    %288 = arith.addf %286, %287 : vector<8x128xf32>
    %cst_80 = arith.constant dense<0.000000e+00> : vector<8x384xf32>
    %289 = tpu.matmul %257, %207, %cst_80 {dimension_numbers = #tpu.dot_dimension_numbers<[1], [0], [0], [1], [0, 0, 1, 1], [], []>} : vector<8x128xbf16>, vector<128x384xbf16>, vector<8x384xf32> -> vector<8x384xf32>
    %290 = arith.truncf %288 : vector<8x128xf32> to vector<8x128xbf16>
    %cst_81 = arith.constant dense<0.000000e+00> : vector<8x384xf32>
    %291 = tpu.matmul %290, %208, %cst_81 {dimension_numbers = #tpu.dot_dimension_numbers<[1], [0], [0], [1], [0, 0, 1, 1], [], []>} : vector<8x128xbf16>, vector<128x384xbf16>, vector<8x384xf32> -> vector<8x384xf32>
    %292 = arith.addf %289, %291 : vector<8x384xf32>
    %293 = arith.addf %292, %201 : vector<8x384xf32>
    %c1_82 = arith.constant 1 : index
    %c0_83 = arith.constant 0 : index
    %c0_84 = arith.constant 0 : index
    %294 = vector.load %arg17[%c1_82, %c0_83, %c0_84] : memref<4x8x384xf32, #tpu.memory_space<vmem>>, vector<1x8x384xf32>
    %295 = vector.shape_cast %294 : vector<1x8x384xf32> to vector<8x384xf32>
    %296 = vector.shape_cast %293 : vector<8x384xf32> to vector<1x8x384xf32>
    tpu.vector_store %arg17[%c1_82, %c0_83, %c0_84], %296 {strides = array<i32>} : memref<4x8x384xf32, #tpu.memory_space<vmem>>, vector<1x8x384xf32>,
    %c2 = arith.constant 2 : index
    %c0_85 = arith.constant 0 : index
    %c0_86 = arith.constant 0 : index
    %297 = vector.load %arg2[%c2, %c0_85, %c0_86] : memref<5x8x128xbf16, #tpu.memory_space<vmem>>, vector<1x8x128xbf16>
    %298 = vector.shape_cast %297 : vector<1x8x128xbf16> to vector<8x128xbf16>
    %c0_87 = arith.constant 0 : index
    %c0_88 = arith.constant 0 : index
    %299 = vector.load %arg18[%c0_87, %c0_88] : memref<8x128xbf16, #tpu.memory_space<vmem>>, vector<8x128xbf16>
    tpu.vector_store %arg18[%c0_87, %c0_88], %298 {strides = array<i32>} : memref<8x128xbf16, #tpu.memory_space<vmem>>, vector<8x128xbf16>,
    %c2_89 = arith.constant 2 : index
    %300 = memref.load %arg0[%c2_89] : memref<4xi32, #tpu.memory_space<smem>>
    %c0_i32_90 = arith.constant 0 : i32
    %301 = arith.cmpi eq, %300, %c0_i32_90 : i32
    %302 = arith.extui %301 : i1 to i32
    %c0_i32_91 = arith.constant 0 : i32
    %303 = arith.cmpi ne, %302, %c0_i32_91 : i32
    scf.if %303 {
      %cst_123 = arith.constant dense<0xFF800000> : vector<8xf32>
      %391 = vector.multi_reduction <maximumf>, %293, %cst_123 [1] : vector<8x384xf32> to vector<8xf32>
      %392 = vector.shape_cast %391 : vector<8xf32> to vector<8x1xf32>
      %393 = tpu.iota {dimensions = array<i32: 1>} : vector<8x384xi32>
      %394 = vector.broadcast %392 : vector<8x1xf32> to vector<8x384xf32>
      %395 = arith.cmpf oeq, %293, %394 : vector<8x384xf32>
      %c384_i32 = arith.constant 384 : i32
      %396 = vector.broadcast %c384_i32 : i32 to vector<8x384xi32>
      %397 = arith.select %395, %393, %396 : vector<8x384xi1>, vector<8x384xi32>
      %cst_124 = arith.constant dense<2147483647> : vector<8xi32>
      %398 = vector.multi_reduction <minsi>, %397, %cst_124 [1] : vector<8x384xi32> to vector<8xi32>
      %399 = vector.shape_cast %398 : vector<8xi32> to vector<8x1xi32>
      %400 = vector.broadcast %399 : vector<8x1xi32> to vector<8x384xi32>
      %401 = arith.cmpi eq, %393, %400 : vector<8x384xi32>
      %402 = arith.extui %401 : vector<8x384xi1> to vector<8x384xi32>
      %403 = arith.sitofp %402 : vector<8x384xi32> to vector<8x384xf32>
      %404 = arith.truncf %403 : vector<8x384xf32> to vector<8x384xbf16>
      %c0_125 = arith.constant 0 : index
      %c0_126 = arith.constant 0 : index
      %405 = vector.load %arg7[%c0_125, %c0_126] : memref<384x128xbf16, #tpu.memory_space<vmem>>, vector<384x128xbf16>
      %cst_127 = arith.constant dense<0.000000e+00> : vector<8x128xf32>
      %406 = tpu.matmul %404, %405, %cst_127 {dimension_numbers = #tpu.dot_dimension_numbers<[1], [0], [0], [1], [0, 0, 1, 1], [], []>} : vector<8x384xbf16>, vector<384x128xbf16>, vector<8x128xf32> -> vector<8x128xf32>
      %407 = arith.truncf %406 : vector<8x128xf32> to vector<8x128xbf16>
      %c0_128 = arith.constant 0 : index
      %c0_129 = arith.constant 0 : index
      %408 = vector.load %arg18[%c0_128, %c0_129] : memref<8x128xbf16, #tpu.memory_space<vmem>>, vector<8x128xbf16>
      tpu.vector_store %arg18[%c0_128, %c0_129], %407 {strides = array<i32>} : memref<8x128xbf16, #tpu.memory_space<vmem>>, vector<8x128xbf16>,
    } else {
    }
    %c0_92 = arith.constant 0 : index
    %c0_93 = arith.constant 0 : index
    %304 = vector.load %arg18[%c0_92, %c0_93] : memref<8x128xbf16, #tpu.memory_space<vmem>>, vector<8x128xbf16>
    %cst_94 = arith.constant dense<0.000000e+00> : vector<8x384xf32>
    %305 = tpu.matmul %304, %202, %cst_94 {dimension_numbers = #tpu.dot_dimension_numbers<[1], [0], [0], [1], [0, 0, 1, 1], [], []>} : vector<8x128xbf16>, vector<128x384xbf16>, vector<8x384xf32> -> vector<8x384xf32>
    %306 = arith.addf %305, %196 : vector<8x384xf32>
    %307 = arith.truncf %288 : vector<8x128xf32> to vector<8x128xbf16>
    %cst_95 = arith.constant dense<0.000000e+00> : vector<8x384xf32>
    %308 = tpu.matmul %307, %203, %cst_95 {dimension_numbers = #tpu.dot_dimension_numbers<[1], [0], [0], [1], [0, 0, 1, 1], [], []>} : vector<8x128xbf16>, vector<128x384xbf16>, vector<8x384xf32> -> vector<8x384xf32>
    %309 = arith.addf %308, %206 : vector<8x384xf32>
    %310 = vector.extract_strided_slice %306 {offsets = [0, 0], sizes = [8, 128], strides = [1, 1]} : vector<8x384xf32> to vector<8x128xf32>
    %311 = vector.extract_strided_slice %309 {offsets = [0, 0], sizes = [8, 128], strides = [1, 1]} : vector<8x384xf32> to vector<8x128xf32>
    %312 = arith.addf %310, %311 : vector<8x128xf32>
    %313 = arith.negf %312 : vector<8x128xf32>
    %314 = math.exp %313 : vector<8x128xf32>
    %cst_96 = arith.constant 1.000000e+00 : f32
    %315 = vector.broadcast %cst_96 : f32 to vector<8x128xf32>
    %316 = arith.addf %315, %314 : vector<8x128xf32>
    %317 = arith.divf %315, %316 : vector<8x128xf32>
    %318 = vector.extract_strided_slice %306 {offsets = [0, 128], sizes = [8, 128], strides = [1, 1]} : vector<8x384xf32> to vector<8x128xf32>
    %319 = vector.extract_strided_slice %309 {offsets = [0, 128], sizes = [8, 128], strides = [1, 1]} : vector<8x384xf32> to vector<8x128xf32>
    %320 = arith.addf %318, %319 : vector<8x128xf32>
    %321 = arith.negf %320 : vector<8x128xf32>
    %322 = math.exp %321 : vector<8x128xf32>
    %cst_97 = arith.constant 1.000000e+00 : f32
    %323 = vector.broadcast %cst_97 : f32 to vector<8x128xf32>
    %324 = arith.addf %323, %322 : vector<8x128xf32>
    %325 = arith.divf %323, %324 : vector<8x128xf32>
    %326 = vector.extract_strided_slice %306 {offsets = [0, 256], sizes = [8, 128], strides = [1, 1]} : vector<8x384xf32> to vector<8x128xf32>
    %327 = vector.extract_strided_slice %309 {offsets = [0, 256], sizes = [8, 128], strides = [1, 1]} : vector<8x384xf32> to vector<8x128xf32>
    %328 = arith.mulf %317, %327 : vector<8x128xf32>
    %329 = arith.addf %326, %328 : vector<8x128xf32>
    %330 = math.tanh %329 : vector<8x128xf32>
    %cst_98 = arith.constant 1.000000e+00 : f32
    %331 = vector.broadcast %cst_98 : f32 to vector<8x128xf32>
    %332 = arith.subf %331, %325 : vector<8x128xf32>
    %333 = arith.mulf %332, %330 : vector<8x128xf32>
    %334 = arith.mulf %325, %288 : vector<8x128xf32>
    %335 = arith.addf %333, %334 : vector<8x128xf32>
    %cst_99 = arith.constant dense<0.000000e+00> : vector<8x384xf32>
    %336 = tpu.matmul %304, %207, %cst_99 {dimension_numbers = #tpu.dot_dimension_numbers<[1], [0], [0], [1], [0, 0, 1, 1], [], []>} : vector<8x128xbf16>, vector<128x384xbf16>, vector<8x384xf32> -> vector<8x384xf32>
    %337 = arith.truncf %335 : vector<8x128xf32> to vector<8x128xbf16>
    %cst_100 = arith.constant dense<0.000000e+00> : vector<8x384xf32>
    %338 = tpu.matmul %337, %208, %cst_100 {dimension_numbers = #tpu.dot_dimension_numbers<[1], [0], [0], [1], [0, 0, 1, 1], [], []>} : vector<8x128xbf16>, vector<128x384xbf16>, vector<8x384xf32> -> vector<8x384xf32>
    %339 = arith.addf %336, %338 : vector<8x384xf32>
    %340 = arith.addf %339, %201 : vector<8x384xf32>
    %c2_101 = arith.constant 2 : index
    %c0_102 = arith.constant 0 : index
    %c0_103 = arith.constant 0 : index
    %341 = vector.load %arg17[%c2_101, %c0_102, %c0_103] : memref<4x8x384xf32, #tpu.memory_space<vmem>>, vector<1x8x384xf32>
    %342 = vector.shape_cast %341 : vector<1x8x384xf32> to vector<8x384xf32>
    %343 = vector.shape_cast %340 : vector<8x384xf32> to vector<1x8x384xf32>
    tpu.vector_store %arg17[%c2_101, %c0_102, %c0_103], %343 {strides = array<i32>} : memref<4x8x384xf32, #tpu.memory_space<vmem>>, vector<1x8x384xf32>,
    %c3 = arith.constant 3 : index
    %c0_104 = arith.constant 0 : index
    %c0_105 = arith.constant 0 : index
    %344 = vector.load %arg2[%c3, %c0_104, %c0_105] : memref<5x8x128xbf16, #tpu.memory_space<vmem>>, vector<1x8x128xbf16>
    %345 = vector.shape_cast %344 : vector<1x8x128xbf16> to vector<8x128xbf16>
    %c0_106 = arith.constant 0 : index
    %c0_107 = arith.constant 0 : index
    %346 = vector.load %arg18[%c0_106, %c0_107] : memref<8x128xbf16, #tpu.memory_space<vmem>>, vector<8x128xbf16>
    tpu.vector_store %arg18[%c0_106, %c0_107], %345 {strides = array<i32>} : memref<8x128xbf16, #tpu.memory_space<vmem>>, vector<8x128xbf16>,
    %c3_108 = arith.constant 3 : index
    %347 = memref.load %arg0[%c3_108] : memref<4xi32, #tpu.memory_space<smem>>
    %c0_i32_109 = arith.constant 0 : i32
    %348 = arith.cmpi eq, %347, %c0_i32_109 : i32
    %349 = arith.extui %348 : i1 to i32
    %c0_i32_110 = arith.constant 0 : i32
    %350 = arith.cmpi ne, %349, %c0_i32_110 : i32
    scf.if %350 {
      %cst_123 = arith.constant dense<0xFF800000> : vector<8xf32>
      %391 = vector.multi_reduction <maximumf>, %340, %cst_123 [1] : vector<8x384xf32> to vector<8xf32>
      %392 = vector.shape_cast %391 : vector<8xf32> to vector<8x1xf32>
      %393 = tpu.iota {dimensions = array<i32: 1>} : vector<8x384xi32>
      %394 = vector.broadcast %392 : vector<8x1xf32> to vector<8x384xf32>
      %395 = arith.cmpf oeq, %340, %394 : vector<8x384xf32>
      %c384_i32 = arith.constant 384 : i32
      %396 = vector.broadcast %c384_i32 : i32 to vector<8x384xi32>
      %397 = arith.select %395, %393, %396 : vector<8x384xi1>, vector<8x384xi32>
      %cst_124 = arith.constant dense<2147483647> : vector<8xi32>
      %398 = vector.multi_reduction <minsi>, %397, %cst_124 [1] : vector<8x384xi32> to vector<8xi32>
      %399 = vector.shape_cast %398 : vector<8xi32> to vector<8x1xi32>
      %400 = vector.broadcast %399 : vector<8x1xi32> to vector<8x384xi32>
      %401 = arith.cmpi eq, %393, %400 : vector<8x384xi32>
      %402 = arith.extui %401 : vector<8x384xi1> to vector<8x384xi32>
      %403 = arith.sitofp %402 : vector<8x384xi32> to vector<8x384xf32>
      %404 = arith.truncf %403 : vector<8x384xf32> to vector<8x384xbf16>
      %c0_125 = arith.constant 0 : index
      %c0_126 = arith.constant 0 : index
      %405 = vector.load %arg7[%c0_125, %c0_126] : memref<384x128xbf16, #tpu.memory_space<vmem>>, vector<384x128xbf16>
      %cst_127 = arith.constant dense<0.000000e+00> : vector<8x128xf32>
      %406 = tpu.matmul %404, %405, %cst_127 {dimension_numbers = #tpu.dot_dimension_numbers<[1], [0], [0], [1], [0, 0, 1, 1], [], []>} : vector<8x384xbf16>, vector<384x128xbf16>, vector<8x128xf32> -> vector<8x128xf32>
      %407 = arith.truncf %406 : vector<8x128xf32> to vector<8x128xbf16>
      %c0_128 = arith.constant 0 : index
      %c0_129 = arith.constant 0 : index
      %408 = vector.load %arg18[%c0_128, %c0_129] : memref<8x128xbf16, #tpu.memory_space<vmem>>, vector<8x128xbf16>
      tpu.vector_store %arg18[%c0_128, %c0_129], %407 {strides = array<i32>} : memref<8x128xbf16, #tpu.memory_space<vmem>>, vector<8x128xbf16>,
    } else {
    }
    %c0_111 = arith.constant 0 : index
    %c0_112 = arith.constant 0 : index
    %351 = vector.load %arg18[%c0_111, %c0_112] : memref<8x128xbf16, #tpu.memory_space<vmem>>, vector<8x128xbf16>
    %cst_113 = arith.constant dense<0.000000e+00> : vector<8x384xf32>
    %352 = tpu.matmul %351, %202, %cst_113 {dimension_numbers = #tpu.dot_dimension_numbers<[1], [0], [0], [1], [0, 0, 1, 1], [], []>} : vector<8x128xbf16>, vector<128x384xbf16>, vector<8x384xf32> -> vector<8x384xf32>
    %353 = arith.addf %352, %196 : vector<8x384xf32>
    %354 = arith.truncf %335 : vector<8x128xf32> to vector<8x128xbf16>
    %cst_114 = arith.constant dense<0.000000e+00> : vector<8x384xf32>
    %355 = tpu.matmul %354, %203, %cst_114 {dimension_numbers = #tpu.dot_dimension_numbers<[1], [0], [0], [1], [0, 0, 1, 1], [], []>} : vector<8x128xbf16>, vector<128x384xbf16>, vector<8x384xf32> -> vector<8x384xf32>
    %356 = arith.addf %355, %206 : vector<8x384xf32>
    %357 = vector.extract_strided_slice %353 {offsets = [0, 0], sizes = [8, 128], strides = [1, 1]} : vector<8x384xf32> to vector<8x128xf32>
    %358 = vector.extract_strided_slice %356 {offsets = [0, 0], sizes = [8, 128], strides = [1, 1]} : vector<8x384xf32> to vector<8x128xf32>
    %359 = arith.addf %357, %358 : vector<8x128xf32>
    %360 = arith.negf %359 : vector<8x128xf32>
    %361 = math.exp %360 : vector<8x128xf32>
    %cst_115 = arith.constant 1.000000e+00 : f32
    %362 = vector.broadcast %cst_115 : f32 to vector<8x128xf32>
    %363 = arith.addf %362, %361 : vector<8x128xf32>
    %364 = arith.divf %362, %363 : vector<8x128xf32>
    %365 = vector.extract_strided_slice %353 {offsets = [0, 128], sizes = [8, 128], strides = [1, 1]} : vector<8x384xf32> to vector<8x128xf32>
    %366 = vector.extract_strided_slice %356 {offsets = [0, 128], sizes = [8, 128], strides = [1, 1]} : vector<8x384xf32> to vector<8x128xf32>
    %367 = arith.addf %365, %366 : vector<8x128xf32>
    %368 = arith.negf %367 : vector<8x128xf32>
    %369 = math.exp %368 : vector<8x128xf32>
    %cst_116 = arith.constant 1.000000e+00 : f32
    %370 = vector.broadcast %cst_116 : f32 to vector<8x128xf32>
    %371 = arith.addf %370, %369 : vector<8x128xf32>
    %372 = arith.divf %370, %371 : vector<8x128xf32>
    %373 = vector.extract_strided_slice %353 {offsets = [0, 256], sizes = [8, 128], strides = [1, 1]} : vector<8x384xf32> to vector<8x128xf32>
    %374 = vector.extract_strided_slice %356 {offsets = [0, 256], sizes = [8, 128], strides = [1, 1]} : vector<8x384xf32> to vector<8x128xf32>
    %375 = arith.mulf %364, %374 : vector<8x128xf32>
    %376 = arith.addf %373, %375 : vector<8x128xf32>
    %377 = math.tanh %376 : vector<8x128xf32>
    %cst_117 = arith.constant 1.000000e+00 : f32
    %378 = vector.broadcast %cst_117 : f32 to vector<8x128xf32>
    %379 = arith.subf %378, %372 : vector<8x128xf32>
    %380 = arith.mulf %379, %377 : vector<8x128xf32>
    %381 = arith.mulf %372, %335 : vector<8x128xf32>
    %382 = arith.addf %380, %381 : vector<8x128xf32>
    %cst_118 = arith.constant dense<0.000000e+00> : vector<8x384xf32>
    %383 = tpu.matmul %351, %207, %cst_118 {dimension_numbers = #tpu.dot_dimension_numbers<[1], [0], [0], [1], [0, 0, 1, 1], [], []>} : vector<8x128xbf16>, vector<128x384xbf16>, vector<8x384xf32> -> vector<8x384xf32>
    %384 = arith.truncf %382 : vector<8x128xf32> to vector<8x128xbf16>
    %cst_119 = arith.constant dense<0.000000e+00> : vector<8x384xf32>
    %385 = tpu.matmul %384, %208, %cst_119 {dimension_numbers = #tpu.dot_dimension_numbers<[1], [0], [0], [1], [0, 0, 1, 1], [], []>} : vector<8x128xbf16>, vector<128x384xbf16>, vector<8x384xf32> -> vector<8x384xf32>
    %386 = arith.addf %383, %385 : vector<8x384xf32>
    %387 = arith.addf %386, %201 : vector<8x384xf32>
    %c3_120 = arith.constant 3 : index
    %c0_121 = arith.constant 0 : index
    %c0_122 = arith.constant 0 : index
    %388 = vector.load %arg17[%c3_120, %c0_121, %c0_122] : memref<4x8x384xf32, #tpu.memory_space<vmem>>, vector<1x8x384xf32>
    %389 = vector.shape_cast %388 : vector<1x8x384xf32> to vector<8x384xf32>
    %390 = vector.shape_cast %387 : vector<8x384xf32> to vector<1x8x384xf32>
    tpu.vector_store %arg17[%c3_120, %c0_121, %c0_122], %390 {strides = array<i32>} : memref<4x8x384xf32, #tpu.memory_space<vmem>>, vector<1x8x384xf32>,
    return
  }
}

</mosaic_0001>

<bundles_post_ra>
// kernel: seq2seq_forward.1
= control target key start
LH: loop header
LB: loop body
LE: loop exit
PB: predicated region body
PF: predicated region fallthrough
CT: control target
= control target key end

     0   :  { %s8905_s0 = inlined_call_operand.vmem [shape: s32[4], index: 0, kind: input, shape index: {}]   ;;  %s8906_s1 = inlined_call_operand.vmem [shape: bf16[48,128], index: 1, kind: input, shape index: {}]   ;;  %s8907_s2 = inlined_call_operand.vmem [shape: bf16[5,8,128], index: 2, kind: input, shape index: {}]   ;;  %s8908_s3 = inlined_call_operand.vmem [shape: bf16[128,384], index: 3, kind: input, shape index: {}]   ;;  %s8909_s4 = inlined_call_operand.vmem [shape: bf16[128,384], index: 4, kind: input, shape index: {}]   ;;  %s8910_s5 = inlined_call_operand.vmem [shape: f32[1,384], index: 5, kind: input, shape index: {}]   ;;  %s8911_s6 = inlined_call_operand.hbm [shape: f32[1,384], index: 6, kind: input, shape index: {}]   ;;  %s8912_s7 = inlined_call_operand.vmem [shape: bf16[384,128], index: 7, kind: input, shape index: {}]   ;;  %s8913_s8 = inlined_call_operand.hbm [shape: bf16[128,384], index: 8, kind: input, shape index: {}]   ;;  %s8914_s9 = inlined_call_operand.hbm [shape: bf16[128,384], index: 9, kind: input, shape index: {}]   ;;  %s8915_s10 = inlined_call_operand.hbm [shape: bf16[128,384], index: 10, kind: input, shape index: {}]   ;;  %s8916_s11 = inlined_call_operand.hbm [shape: f32[1,384], index: 11, kind: input, shape index: {}]   ;;  %s8917_s12 = inlined_call_operand.hbm [shape: f32[1,384], index: 12, kind: input, shape index: {}]   ;;  %s8918_s13 = inlined_call_operand.hbm [shape: bf16[128,384], index: 13, kind: input, shape index: {}]   ;;  %s8919_s14 = inlined_call_operand.hbm [shape: bf16[128,384], index: 14, kind: input, shape index: {}]   ;;  %s8920_s15 = inlined_call_operand.hbm [shape: bf16[128,384], index: 15, kind: input, shape index: {}]   ;;  %s8921_s16 = inlined_call_operand.vmem [shape: f32[1,384], index: 16, kind: input, shape index: {}]   ;;  %s8922_s17 = inlined_call_operand.vmem [shape: f32[4,8,384], index: 17, kind: output, shape index: {}]  }
   0x1   :  { %9004 = sst [smem:[#allocation87_spill]] %s8905_s0 }
   0x2   :  { %9005 = sst [smem:[#allocation88_spill]] %s8906_s1 }
   0x3   :  { %9006 = sst [smem:[#allocation89_spill]] %s8912_s7 }
   0x4   :  { %22 = vsyncpa [#allocation5], 0 }
   0x5   :  { %23 = vsyncpa [#allocation4], 0 }
   0x6   :  { %24 = vsyncpa [#allocation8], 0 }
   0x7   :  { %25 = vsyncpa [#allocation11], 0 }
   0x8   :  { %26 = vsyncpa [#allocation14], 0 }
   0x9   :  { %27 = vsyncpa [#allocation17], 0  ;;  %s6829_s24 = smov [#allocation7]   ;;  %s6607_s28 = scalar_lea.hbm %s8913_s8, 3072 }
   0xa   :  { %s65_s25 = sshll.u32 %s6829_s24, 4  ;;  %p6608_p0 = scmp.ne.s32.totalorder %s8913_s8, %s6607_s28  ;;  %s66_s25 = int_to_ptr.vmem [resolvable:$true] %s65_s25 }
   0xb   :  { %p6611_p1 = scmp.lt.u32.totalorder %s6607_s28, %s8913_s8 }
   0xd   :  { %p6613_p2 = pnand %p6611_p1, %p6608_p0 }
   0xf   :  { %6616 = shalt.err (!%p6613_p2)
}
  0x10   :  { %s6617_s19 = scalar_lea.vmem %s66_s25, 3072  ;;  %p6622_p4 = scmp.lt.s32.totalorder %s66_s25, %s66_s25 }
  0x11   :  { %p6618_p3 = scmp.ne.s32.totalorder %s66_s25, %s6617_s19  ;;  %p6623_p5 = scmp.lt.s32.totalorder %s6617_s19, %s6617_s19 }
  0x13   :  { %p6624_p6 = por %p6623_p5, %p6622_p4 }
  0x15   :  { %p6625_p7 = pnand %p6624_p6, %p6618_p3 }
  0x17   :  { %6628 = shalt.err (!%p6625_p7)
}
  0x18   :  { %s6830_s1 = smov 192   ;;  %s6831_s20 = smov 12  }
  0x19   :  { %71 = dma.hbm_to_vmem [thread:$0]  %s8913_s8, 3072, %s66_s25, [#allocation8], %s6830_s1, %s6830_s1, %s6831_s20  }
  0x1a   :  { %s6832_s23 = smov [#allocation10]   ;;  %s6833_s26 = smov [#allocation13]  }
  0x1b   :  { %s89_s24 = sshll.u32 %s6832_s23, 4  ;;  %s112_s27 = sshll.u32 %s6833_s26, 4  ;;  %s90_s24 = int_to_ptr.vmem [resolvable:$true] %s89_s24  ;;  %s113_s27 = int_to_ptr.vmem [resolvable:$true] %s112_s27 }
  0x1c   :  { %s6629_s0 = scalar_lea.hbm %s8915_s10, 3072 }
  0x1d   :  { %p6630_p8 = scmp.ne.s32.totalorder %s8915_s10, %s6629_s0  ;;  %p6633_p9 = scmp.lt.u32.totalorder %s6629_s0, %s8915_s10 }
  0x1f   :  { %p6635_p10 = pnand %p6633_p9, %p6630_p8 }
  0x21   :  { %6638 = shalt.err (!%p6635_p10)
}
  0x22   :  { %s6639_s8 = scalar_lea.vmem %s90_s24, 3072  ;;  %p6644_p12 = scmp.lt.s32.totalorder %s90_s24, %s90_s24 }
  0x23   :  { %p6640_p11 = scmp.ne.s32.totalorder %s90_s24, %s6639_s8  ;;  %p6645_p13 = scmp.lt.s32.totalorder %s6639_s8, %s6639_s8 }
  0x25   :  { %p6646_p0 = por %p6645_p13, %p6644_p12 }
  0x27   :  { %p6647_p1 = pnand %p6646_p0, %p6640_p11 }
  0x29   :  { %6650 = shalt.err (!%p6647_p1)
}
  0x2a   :  { %95 = dma.hbm_to_vmem [thread:$0]  %s8915_s10, 3072, %s90_s24, [#allocation11], %s6830_s1, %s6830_s1, %s6831_s20  }
  0x2b   :  { %s6651_s23 = scalar_lea.hbm %s8917_s12, 48 }
  0x2c   :  { %p6652_p2 = scmp.ne.s32.totalorder %s8917_s12, %s6651_s23  ;;  %p6655_p3 = scmp.lt.u32.totalorder %s6651_s23, %s8917_s12 }
  0x2e   :  { %p6657_p4 = pnand %p6655_p3, %p6652_p2 }
  0x30   :  { %6660 = shalt.err (!%p6657_p4)
}
  0x31   :  { %s6661_s30 = scalar_lea.vmem %s113_s27, 48  ;;  %s6665_s18 = scalar_lea.vmem %s113_s27, 64 }
  0x32   :  { %p6662_p5 = scmp.ne.s32.totalorder %s113_s27, %s6661_s30  ;;  %p6666_p6 = scmp.lt.s32.totalorder %s113_s27, %s113_s27 }
  0x33   :  { %p6667_p7 = scmp.lt.s32.totalorder %s6665_s18, %s6661_s30 }
  0x35   :  { %p6668_p8 = por %p6667_p7, %p6666_p6 }
  0x37   :  { %p6669_p9 = pnand %p6668_p8, %p6662_p5 }
  0x39   :  { %6672 = shalt.err (!%p6669_p9)
}
  0x3a   :  { %115 = dma.hbm_to_vmem [thread:$0]  %s8917_s12, 48, %s113_s27, [#allocation14]  }
  0x3b   :  { %s6834_s19 = smov [#allocation16]   ;;  %s9007_s22 = sld [smem:[#allocation87_spill]] }
  0x3c   :  { %s133_s8 = sshll.u32 %s6834_s19, 4  ;;  %s6673_s28 = scalar_lea.hbm %s8919_s14, 3072  ;;  %s134_s8 = int_to_ptr.vmem [resolvable:$true] %s133_s8 }
  0x3d   :  { %p6674_p10 = scmp.ne.s32.totalorder %s8919_s14, %s6673_s28  ;;  %p6677_p11 = scmp.lt.u32.totalorder %s6673_s28, %s8919_s14 }
  0x3f   :  { %p6679_p12 = pnand %p6677_p11, %p6674_p10 }
  0x41   :  { %s34_s7 = sshll.u32 %s9007_s22, 4  ;;  %s35_s7 = int_to_ptr.vmem [resolvable:$true] %s34_s7 }
  0x42   :  { %6682 = shalt.err (!%p6679_p12)
}
  0x43   :  { %s6683_s12 = scalar_lea.vmem %s134_s8, 3072  ;;  %p6688_p0 = scmp.lt.s32.totalorder %s134_s8, %s134_s8 }
  0x44   :  { %p6684_p13 = scmp.ne.s32.totalorder %s134_s8, %s6683_s12  ;;  %p6689_p1 = scmp.lt.s32.totalorder %s6683_s12, %s6683_s12 }
  0x46   :  { %p6690_p2 = por %p6689_p1, %p6688_p0 }
  0x48   :  { %p6691_p3 = pnand %p6690_p2, %p6684_p13 }
  0x4a   :  { %6694 = shalt.err (!%p6691_p3)
}
  0x4b   :  { %139 = dma.hbm_to_vmem [thread:$0]  %s8919_s14, 3072, %s134_s8, [#allocation17], %s6830_s1, %s6830_s1, %s6831_s20  }
  0x4c   :  { %s6695_s24 = scalar_lea.vmem %s35_s7, 16  ;;  %p6700_p5 = scmp.lt.s32.totalorder %s35_s7, %s35_s7 }
  0x4d   :  { %p6696_p4 = scmp.ne.s32.totalorder %s35_s7, %s6695_s24  ;;  %p6701_p6 = scmp.lt.s32.totalorder %s6695_s24, %s6695_s24 }
  0x4f   :  { %p6702_p7 = por %p6701_p6, %p6700_p5 }
  0x51   :  { %p6703_p8 = pnand %p6702_p7, %p6696_p4 }
  0x53   :  { %6706 = shalt.err (!%p6703_p8)
}
  0x54   :  { %s6835_s19 = smov [#allocation3]   ;;  %s6836_s25 = smov [#allocation6]  }
  0x55   :  { %37 = dma.vmem_to_smem %s35_s7, 16, %s6835_s19, [#allocation5]  }
  0x56   :  { %s54_s21 = sshll.u32 %s6836_s25, 4  ;;  %s6837_s22 = smov [#allocation9]   ;;  %s55_s21 = int_to_ptr.vmem [resolvable:$true] %s54_s21 }
  0x57   :  { %s77_s23 = sshll.u32 %s6837_s22, 4  ;;  %s6707_s29 = scalar_lea.hbm %s8911_s6, 48  ;;  %s78_s23 = int_to_ptr.vmem [resolvable:$true] %s77_s23 }
  0x58   :  { %p6708_p9 = scmp.ne.s32.totalorder %s8911_s6, %s6707_s29  ;;  %p6711_p10 = scmp.lt.u32.totalorder %s6707_s29, %s8911_s6 }
  0x5a   :  { %p6713_p11 = pnand %p6711_p10, %p6708_p9 }
  0x5c   :  { %6716 = shalt.err (!%p6713_p11)
}
  0x5d   :  { %s6717_s7 = scalar_lea.vmem %s55_s21, 48  ;;  %s6721_s18 = scalar_lea.vmem %s55_s21, 64 }
  0x5e   :  { %p6718_p12 = scmp.ne.s32.totalorder %s55_s21, %s6717_s7  ;;  %p6722_p13 = scmp.lt.s32.totalorder %s55_s21, %s55_s21 }
  0x5f   :  { %p6723_p0 = scmp.lt.s32.totalorder %s6721_s18, %s6717_s7 }
  0x61   :  { %p6724_p1 = por %p6723_p0, %p6722_p13 }
  0x63   :  { %p6725_p2 = pnand %p6724_p1, %p6718_p12 }
  0x65   :  { %6728 = shalt.err (!%p6725_p2)
}
  0x66   :  { %57 = dma.hbm_to_vmem [thread:$0]  %s8911_s6, 48, %s55_s21, [#allocation4]  }
  0x67   :  { %s6729_s19 = scalar_lea.hbm %s8914_s9, 3072 }
  0x68   :  { %p6730_p3 = scmp.ne.s32.totalorder %s8914_s9, %s6729_s19  ;;  %p6733_p4 = scmp.lt.u32.totalorder %s6729_s19, %s8914_s9 }
  0x6a   :  { %p6735_p5 = pnand %p6733_p4, %p6730_p3 }
  0x6c   :  { %6738 = shalt.err (!%p6735_p5)
}
  0x6d   :  { %s6739_s29 = scalar_lea.vmem %s78_s23, 3072  ;;  %p6744_p7 = scmp.lt.s32.totalorder %s78_s23, %s78_s23 }
  0x6e   :  { %p6740_p6 = scmp.ne.s32.totalorder %s78_s23, %s6739_s29  ;;  %p6745_p8 = scmp.lt.s32.totalorder %s6739_s29, %s6739_s29 }
  0x70   :  { %p6746_p9 = por %p6745_p8, %p6744_p7 }
  0x72   :  { %p6747_p10 = pnand %p6746_p9, %p6740_p6 }
  0x74   :  { %6750 = shalt.err (!%p6747_p10)
}
  0x75   :  { %83 = dma.hbm_to_vmem [thread:$0]  %s8914_s9, 3072, %s78_s23, [#allocation8], %s6830_s1, %s6830_s1, %s6831_s20  }
  0x76   :  { %s6838_s0 = smov [#allocation12]   ;;  %s6839_s8 = smov [#allocation15]  }
  0x77   :  { %s102_s14 = sshll.u32 %s6838_s0, 4  ;;  %s121_s30 = sshll.u32 %s6839_s8, 4  ;;  %s103_s14 = int_to_ptr.vmem [resolvable:$true] %s102_s14  ;;  %s122_s30 = int_to_ptr.vmem [resolvable:$true] %s121_s30 }
  0x78   :  { %s6751_s12 = scalar_lea.hbm %s8916_s11, 48 }
  0x79   :  { %p6752_p11 = scmp.ne.s32.totalorder %s8916_s11, %s6751_s12  ;;  %p6755_p12 = scmp.lt.u32.totalorder %s6751_s12, %s8916_s11 }
  0x7b   :  { %p6757_p13 = pnand %p6755_p12, %p6752_p11 }
  0x7d   :  { %6760 = shalt.err (!%p6757_p13)
}
  0x7e   :  { %s6761_s9 = scalar_lea.vmem %s103_s14, 48  ;;  %s6765_s23 = scalar_lea.vmem %s103_s14, 64 }
  0x7f   :  { %p6762_p0 = scmp.ne.s32.totalorder %s103_s14, %s6761_s9  ;;  %p6766_p1 = scmp.lt.s32.totalorder %s103_s14, %s103_s14 }
  0x80   :  { %p6767_p2 = scmp.lt.s32.totalorder %s6765_s23, %s6761_s9 }
  0x82   :  { %p6768_p3 = por %p6767_p2, %p6766_p1 }
  0x84   :  { %p6769_p4 = pnand %p6768_p3, %p6762_p0 }
  0x86   :  { %6772 = shalt.err (!%p6769_p4)
}
  0x87   :  { %105 = dma.hbm_to_vmem [thread:$0]  %s8916_s11, 48, %s103_s14, [#allocation11]  }
  0x88   :  { %s6773_s29 = scalar_lea.hbm %s8918_s13, 3072 }
  0x89   :  { %p6774_p5 = scmp.ne.s32.totalorder %s8918_s13, %s6773_s29  ;;  %p6777_p6 = scmp.lt.u32.totalorder %s6773_s29, %s8918_s13 }
  0x8b   :  { %p6779_p7 = pnand %p6777_p6, %p6774_p5 }
  0x8d   :  { %6782 = shalt.err (!%p6779_p7)
}
  0x8e   :  { %s6783_s7 = scalar_lea.vmem %s122_s30, 3072  ;;  %p6788_p9 = scmp.lt.s32.totalorder %s122_s30, %s122_s30 }
  0x8f   :  { %p6784_p8 = scmp.ne.s32.totalorder %s122_s30, %s6783_s7  ;;  %p6789_p10 = scmp.lt.s32.totalorder %s6783_s7, %s6783_s7 }
  0x91   :  { %p6790_p11 = por %p6789_p10, %p6788_p9 }
  0x93   :  { %p6791_p12 = pnand %p6790_p11, %p6784_p8 }
  0x95   :  { %6794 = shalt.err (!%p6791_p12)
}
  0x96   :  { %127 = dma.hbm_to_vmem [thread:$0]  %s8918_s13, 3072, %s122_s30, [#allocation14], %s6830_s1, %s6830_s1, %s6831_s20  }
  0x97   :  { %s6840_s18 = smov [#allocation18]   ;;  %s6795_s24 = scalar_lea.hbm %s8920_s15, 3072 }
  0x98   :  { %s145_s12 = sshll.u32 %s6840_s18, 4  ;;  %p6796_p13 = scmp.ne.s32.totalorder %s8920_s15, %s6795_s24  ;;  %s146_s12 = int_to_ptr.vmem [resolvable:$true] %s145_s12 }
  0x99   :  { %p6799_p0 = scmp.lt.u32.totalorder %s6795_s24, %s8920_s15 }
  0x9b   :  { %p6801_p1 = pnand %p6799_p0, %p6796_p13 }
  0x9d   :  { %6804 = shalt.err (!%p6801_p1)
}
  0x9e   :  { %s6805_s22 = scalar_lea.vmem %s146_s12, 3072  ;;  %p6810_p3 = scmp.lt.s32.totalorder %s146_s12, %s146_s12 }
  0x9f   :  { %p6806_p2 = scmp.ne.s32.totalorder %s146_s12, %s6805_s22  ;;  %p6811_p4 = scmp.lt.s32.totalorder %s6805_s22, %s6805_s22 }
  0xa1   :  { %p6812_p5 = por %p6811_p4, %p6810_p3 }
  0xa3   :  { %p6813_p6 = pnand %p6812_p5, %p6806_p2 }
  0xa5   :  { %6816 = shalt.err (!%p6813_p6)
}
  0xa6   :  { %151 = dma.hbm_to_vmem [thread:$0]  %s8920_s15, 3072, %s146_s12, [#allocation17], %s6830_s1, %s6830_s1, %s6831_s20  }
  0xa7   :  { %6817 = dma.done.wait [#allocation5], 16  }
  0xa8   :  { %6818 = vsyncadd [#allocation5], 4294967280 }
  0xa9   :  { %6819 = dma.done.wait [#allocation4], 48  }
  0xaa   :  { %6820 = vsyncadd [#allocation4], 4294967248 }
  0xab   :  { %6821 = dma.done.wait [#allocation8], 6144  }
  0xac   :  { %6822 = vsyncadd [#allocation8], 4294961152 }
  0xad   :  { %6823 = dma.done.wait [#allocation11], 3120  }
  0xae   :  { %6824 = vsyncadd [#allocation11], 4294964176 }
  0xaf   :  { %6825 = dma.done.wait [#allocation14], 3120  }
  0xb0   :  { %6826 = vsyncadd [#allocation14], 4294964176 }
  0xb1   :  { %6827 = dma.done.wait [#allocation17], 6144  }
  0xb2   :  { %6828 = vsyncadd [#allocation17], 4294961152 }
  0xb3   :  { %184 = sfence }
  0xb4   :  { %v6154_v0 = vld [vmem:[%s8908_s3 + $0x4] ss:$12 sps:$4 sm:$0xff]   ;;  %v6156_v1 = vld [vmem:[%s8908_s3] ss:$12 sps:$4 sm:$0xff]   ;;  %v8933_v2 = vmov 0.0   ;;  %v8928_v3 = vmov 0   ;;  %v8927_v53 = vlaneseq }
  0xb5   :  { %5530 = vmatprep.subr.bf16.mxu1 %v8933_v2  ;;  %419 = vmatprep.mubr.bf16.mxu0 %v8928_v3  ;;  %v6157_v4 = vld [vmem:[%s8908_s3 + $0x1c] ss:$12 sps:$4 sm:$0xff]   ;;  %vm6843_vm0 = vmmov 0   ;;  %v6159_v5 = vld [vmem:[%s8908_s3 + $0x18] ss:$12 sps:$4 sm:$0xff]   ;;  %s9008_s13 = sld [smem:[#allocation88_spill]] }
  0xb6   :  { %387 = vmatprep.subr.bf16.mxu0 %v6154_v0  ;;  %5546 = vmatprep.mubr.msk.bf16.mxu1 %vm6843_vm0, %v8933_v2  ;;  %v6160_v6 = vld [vmem:[%s8908_s3 + $0x34] ss:$12 sps:$4 sm:$0xff]   ;;  %v6162_v7 = vld [vmem:[%s8908_s3 + $0x30] ss:$12 sps:$4 sm:$0xff]   ;;  %v6163_v8 = vld [vmem:[%s8908_s3 + $0x4c] ss:$12 sps:$4 sm:$0xff]  }
  0xb7   :  { %388 = vmatpush1.bf16.msra.mxu0 %v6156_v1  ;;  %v6175_v9 = vld [vmem:[%s8908_s3 + $0x8] ss:$12 sps:$4 sm:$0xff]   ;;  %v6166_v11 = vld [vmem:[%s8908_s3 + $0x64] ss:$12 sps:$4 sm:$0xff]   ;;  %v6179_v12 = vld [vmem:[%s8908_s3 + $0x20] ss:$12 sps:$4 sm:$0xff]  }
  0xb8   :  { %389 = vmatprep.subr.bf16.mxu0 %v6157_v4  ;;  %v6165_v10 = vld [vmem:[%s8908_s3 + $0x48] ss:$12 sps:$4 sm:$0xff]   ;;  %5531 = vmatpush3.bf16.msra.mxu1 %v6175_v9  ;;  %v6168_v13 = vld [vmem:[%s8908_s3 + $0x60] ss:$12 sps:$4 sm:$0xff]   ;;  %v6184_v15 = vld [vmem:[%s8908_s3 + $0x38] ss:$12 sps:$4 sm:$0xff]  }
  0xb9   :  { %5532 = vmatprep.subr.bf16.mxu1 %v8933_v2  ;;  %v6169_v14 = vld [vmem:[%s8908_s3 + $0x7c] ss:$12 sps:$4 sm:$0xff]   ;;  %v6171_v16 = vld [vmem:[%s8908_s3 + $0x78] ss:$12 sps:$4 sm:$0xff]   ;;  %v6172_v17 = vld [vmem:[%s8908_s3 + $0x94] ss:$12 sps:$4 sm:$0xff]  }
  0xba   :  { %v6188_v18 = vld [vmem:[%s8908_s3 + $0x50] ss:$12 sps:$4 sm:$0xff]   ;;  %v6176_v20 = vld [vmem:[%s8908_s3 + $0xac] ss:$12 sps:$4 sm:$0xff]   ;;  %v6192_v21 = vld [vmem:[%s8908_s3 + $0x68] ss:$12 sps:$4 sm:$0xff]  }
  0xbb   :  { %390 = vmatpush1.bf16.msra.mxu0 %v6159_v5  ;;  %v6174_v19 = vld [vmem:[%s8908_s3 + $0x90] ss:$12 sps:$4 sm:$0xff]   ;;  %v6178_v22 = vld [vmem:[%s8908_s3 + $0xa8] ss:$12 sps:$4 sm:$0xff]   ;;  %v6197_v24 = vld [vmem:[%s8908_s3 + $0x80] ss:$12 sps:$4 sm:$0xff]  }
  0xbc   :  { %391 = vmatprep.subr.bf16.mxu0 %v6160_v6  ;;  %5533 = vmatpush3.bf16.msra.mxu1 %v6179_v12  ;;  %v7146_v23 = vld [vmem:[%s8909_s4 + $0x4] ss:$12 sps:$4 sm:$0xff]   ;;  %v7158_v26 = vld [vmem:[%s8909_s4] ss:$12 sps:$4 sm:$0xff]   ;;  %v7163_v27 = vld [vmem:[%s8909_s4 + $0x1c] ss:$12 sps:$4 sm:$0xff]  }
  0xbd   :  { %5534 = vmatprep.subr.bf16.mxu1 %v8933_v2  ;;  %v6180_v25 = vld [vmem:[%s9008_s13] sm:$0xff]   ;;  %v6206_v31 = vld [vmem:[%s8908_s3 + $0xb0] ss:$12 sps:$4 sm:$0xff]   ;;  %v6195_v32 = vld [vmem:[%s9008_s13 + $0x8] sm:$0xff]   ;;  %v227_v54 = vshrl.u32 %v8927_v53, 7  ;;  %s8097_s25 = sld [smem:[#allocation3 + $0x1]] }
  0xbe   :  { %v6201_v28 = vld [vmem:[%s8908_s3 + $0x98] ss:$12 sps:$4 sm:$0xff]   ;;  %v7179_v30 = vld [vmem:[%s8909_s4 + $0x34] ss:$12 sps:$4 sm:$0xff]   ;;  %v7194_v33 = vld [vmem:[%s8909_s4 + $0x30] ss:$12 sps:$4 sm:$0xff]  }
  0xbf   :  { %392 = vmatpush1.bf16.msra.mxu0 %v6162_v7  ;;  %v7173_v29 = vld [vmem:[%s8909_s4 + $0x18] ss:$12 sps:$4 sm:$0xff]   ;;  %v7205_v35 = vld [vmem:[%s8909_s4 + $0x8] ss:$12 sps:$4 sm:$0xff]   ;;  %v7223_v38 = vld [vmem:[%s8909_s4 + $0x20] ss:$12 sps:$4 sm:$0xff]  }
  0xc0   :  { %393 = vmatprep.subr.bf16.mxu0 %v6163_v8  ;;  %5535 = vmatpush3.bf16.msra.mxu1 %v6184_v15  ;;  %v7200_v34 = vld [vmem:[%s8909_s4 + $0x4c] ss:$12 sps:$4 sm:$0xff]   ;;  %v7210_v36 = vld [vmem:[%s8909_s4 + $0x48] ss:$12 sps:$4 sm:$0xff]   ;;  %v7216_v37 = vld [vmem:[%s8909_s4 + $0x64] ss:$12 sps:$4 sm:$0xff]  }
  0xc1   :  { %5536 = vmatprep.subr.bf16.mxu1 %v8933_v2  ;;  %v6204_v39 = vld [vmem:[%s9008_s13 + $0x10] sm:$0xff]   ;;  %v7232_v40 = vld [vmem:[%s8909_s4 + $0x60] ss:$12 sps:$4 sm:$0xff]   ;;  %v7240_v41 = vld [vmem:[%s8909_s4 + $0x7c] ss:$12 sps:$4 sm:$0xff]   ;;  %v7365_v55 = vsub.s32 0, %v227_v54 }
  0xc2   :  { %v7247_v42 = vld [vmem:[%s8909_s4 + $0x38] ss:$12 sps:$4 sm:$0xff]   ;;  %v7259_v44 = vld [vmem:[%s8909_s4 + $0x94] ss:$12 sps:$4 sm:$0xff]   ;;  %v7267_v45 = vld [vmem:[%s8909_s4 + $0x50] ss:$12 sps:$4 sm:$0xff]  }
  0xc3   :  { %394 = vmatpush1.bf16.msra.mxu0 %v6165_v10  ;;  %v7253_v43 = vld [vmem:[%s8909_s4 + $0x78] ss:$12 sps:$4 sm:$0xff]   ;;  %v7273_v46 = vld [vmem:[%s8909_s4 + $0x90] ss:$12 sps:$4 sm:$0xff]   ;;  %v7288_v48 = vld [vmem:[%s8909_s4 + $0x68] ss:$12 sps:$4 sm:$0xff]  }
  0xc4   :  { %395 = vmatprep.subr.bf16.mxu0 %v6166_v11  ;;  %5537 = vmatpush3.bf16.msra.mxu1 %v6188_v18  ;;  %v7281_v47 = vld [vmem:[%s8909_s4 + $0xac] ss:$12 sps:$4 sm:$0xff]   ;;  %v7294_v49 = vld [vmem:[%s8909_s4 + $0xa8] ss:$12 sps:$4 sm:$0xff]   ;;  %v7322_v52 = vld [vmem:[%s8909_s4 + $0xb0] ss:$12 sps:$4 sm:$0xff]  }
  0xc5   :  { %5538 = vmatprep.subr.bf16.mxu1 %v8933_v2  ;;  %v7302_v50 = vld [vmem:[%s8909_s4 + $0x80] ss:$12 sps:$4 sm:$0xff]   ;;  %v7313_v51 = vld [vmem:[%s8909_s4 + $0x98] ss:$12 sps:$4 sm:$0xff]   ;;  %9009 = vst [vmem:[#allocation25_spill] sm:$0xff] %v7365_v55  ;;  %v7370_v57 = vsub.s32 1, %v227_v54 }
  0xc6   :  { %v224_v56 = vld [vmem:[%s8910_s5] sm:$0x7]  ;;  %v7378_v4 = vsub.s32 2, %v227_v54  ;;  %p5089_p7 = scmp.ne.s32.totalorder %s8097_s25, 0 }
  0xc7   :  { %396 = vmatpush1.bf16.msra.mxu0 %v6168_v13  ;;  %9010 = vst [vmem:[#allocation26_spill] sm:$0xff] %v7370_v57  ;;  %v229_v58 = vrot.slane %v224_v56, %v7365_v55  ;;  %v233_v61 = vrot.slane %v224_v56, %v7370_v57  ;;  %s9082_s13 = sld [smem:[#allocation89_spill]] (!%p5089_p7)  ;;  %vm6845_vm7 = vmmov (!%p5089_p7), 0  }
  0xc8   :  { %397 = vmatprep.subr.bf16.mxu0 %v6169_v14  ;;  %5539 = vmatpush3.bf16.msra.mxu1 %v6192_v21  ;;  %v237_v8 = vrot.slane %v224_v56, %v7378_v4 }
  0xc9   :  { %5540 = vmatprep.subr.bf16.mxu1 %v8933_v2 }
  0xcb   :  { %398 = vmatpush1.bf16.msra.mxu0 %v6171_v16 }
  0xcc   :  { %399 = vmatprep.subr.bf16.mxu0 %v6172_v17  ;;  %5541 = vmatpush3.bf16.msra.mxu1 %v6197_v24 }
  0xcd   :  { %5542 = vmatprep.subr.bf16.mxu1 %v8933_v2 }
  0xcf   :  { %400 = vmatpush1.bf16.msra.mxu0 %v6174_v19 }
  0xd0   :  { %401 = vmatprep.subr.bf16.mxu0 %v6176_v20  ;;  %5543 = vmatpush3.bf16.msra.mxu1 %v6201_v28 }
  0xd1   :  { %5544 = vmatprep.subr.bf16.mxu1 %v8933_v2 }
  0xd3   :  { %402 = vmatpush1.bf16.msra.mxu0 %v6178_v22 }
  0xd4   :  { %684 = vmatprep.subr.bf16.mxu0 %v7146_v23  ;;  %5545 = vmatpush3.bf16.msra.mxu1 %v6206_v31 }
  0xd5   :  { %5558 = vmatprep.subr.bf16.mxu1 %v8933_v2 }
  0xd6   :  { %420 = vmatmul.mubr.bf16.vlgmr.msra.gmra.mrb[0].mxu0 %v6180_v25 }
  0xd7   :  { %685 = vmatpush1.bf16.msra.mxu0 %v7158_v26  ;;  %429 = vmatprep.mubr.bf16.mxu0 %v8928_v3 }
  0xd8   :  { %686 = vmatprep.subr.bf16.mxu0 %v7163_v27  ;;  %5547 = vmatmul.mubr.bf16.vlgmr.msra.gmra.mrb[0].mxu1 %v6180_v25 }
  0xd9   :  { %5559 = vmatpush3.bf16.msra.mxu1 %v7205_v35  ;;  %5550 = vmatprep.mubr.msk.bf16.mxu1 %vm6843_vm0, %v8933_v2 }
  0xda   :  { %5560 = vmatprep.subr.bf16.mxu1 %v8933_v2 }
  0xdb   :  { %687 = vmatpush1.bf16.msra.mxu0 %v7173_v29 }
  0xdc   :  { %688 = vmatprep.subr.bf16.mxu0 %v7179_v30 }
  0xdd   :  { %5561 = vmatpush3.bf16.msra.mxu1 %v7223_v38 }
  0xde   :  { %430 = vmatmul.mubr.bf16.gmra.mrb[4].mxu0 %v6195_v32  ;;  %5562 = vmatprep.subr.bf16.mxu1 %v8933_v2 }
  0xdf   :  { %689 = vmatpush1.bf16.msra.mxu0 %v7194_v33  ;;  %439 = vmatprep.mubr.bf16.mxu0 %v8928_v3 }
  0xe0   :  { %690 = vmatprep.subr.bf16.mxu0 %v7200_v34  ;;  %5551 = vmatmul.mubr.bf16.gmra.mrb[4].mxu1 %v6195_v32 }
  0xe1   :  { %5563 = vmatpush3.bf16.msra.mxu1 %v7247_v42  ;;  %5554 = vmatprep.mubr.msk.bf16.mxu1 %vm6843_vm0, %v8933_v2 }
  0xe2   :  { %5564 = vmatprep.subr.bf16.mxu1 %v8933_v2 }
  0xe3   :  { %691 = vmatpush1.bf16.msra.mxu0 %v7210_v36 }
  0xe4   :  { %692 = vmatprep.subr.bf16.mxu0 %v7216_v37 }
  0xe5   :  { %5565 = vmatpush3.bf16.msra.mxu1 %v7267_v45 }
  0xe6   :  { %440 = vmatmul.mubr.bf16.gmra.mrb[8].mxu0 %v6204_v39  ;;  %5566 = vmatprep.subr.bf16.mxu1 %v8933_v2 }
  0xe7   :  { %693 = vmatpush1.bf16.msra.mxu0 %v7232_v40  ;;  %716 = vmatprep.mubr.bf16.mxu0 %v8928_v3 }
  0xe8   :  { %694 = vmatprep.subr.bf16.mxu0 %v7240_v41  ;;  %5555 = vmatmul.mubr.bf16.gmra.mrb[8].mxu1 %v6204_v39 }
  0xe9   :  { %5567 = vmatpush3.bf16.msra.mxu1 %v7288_v48  ;;  %5574 = vmatprep.mubr.msk.bf16.mxu1 %vm6843_vm0, %v8933_v2 }
  0xea   :  { %5568 = vmatprep.subr.bf16.mxu1 %v8933_v2 }
  0xeb   :  { %695 = vmatpush1.bf16.msra.mxu0 %v7253_v43 }
  0xec   :  { %696 = vmatprep.subr.bf16.mxu0 %v7259_v44 }
  0xed   :  { %5569 = vmatpush3.bf16.msra.mxu1 %v7302_v50 }
  0xee   :  { %5570 = vmatprep.subr.bf16.mxu1 %v8933_v2 }
  0xef   :  { %697 = vmatpush1.bf16.msra.mxu0 %v7273_v46 }
  0xf0   :  { %698 = vmatprep.subr.bf16.mxu0 %v7281_v47 }
  0xf1   :  { %5571 = vmatpush3.bf16.msra.mxu1 %v7313_v51 }
  0xf2   :  { %5572 = vmatprep.subr.bf16.mxu1 %v8933_v2 }
  0xf3   :  { %699 = vmatpush1.bf16.msra.mxu0 %v7294_v49 }
  0xf4   :  { %787 = vmatprep.subr.bf16.mxu0 %v7146_v23 }
  0xf5   :  { %5573 = vmatpush3.bf16.msra.mxu1 %v7322_v52 }
  0xf6   :  { %717 = vmatmul.mubr.bf16.vlgmr.msra.gmra.mrb[12].mxu0 %v8928_v3  ;;  %5578 = vmatprep.subr.bf16.mxu1 %v8933_v2 }
  0xf7   :  { %788 = vmatpush1.bf16.msra.mxu0 %v7158_v26  ;;  %819 = vmatprep.mubr.bf16.mxu0 %v8928_v3 }
  0xf8   :  { %789 = vmatprep.subr.bf16.mxu0 %v7163_v27  ;;  %5575 = vmatmul.mubr.bf16.vlgmr.msra.gmra.mrb[12].mxu1 %v8928_v3 }
  0xf9   :  { %5579 = vmatpush3.bf16.msra.mxu1 %v7205_v35  ;;  %5594 = vmatprep.mubr.msk.bf16.mxu1 %vm6843_vm0, %v8933_v2 }
  0xfa   :  { %5580 = vmatprep.subr.bf16.mxu1 %v8933_v2 }
  0xfb   :  { %790 = vmatpush1.bf16.msra.mxu0 %v7173_v29 }
  0xfc   :  { %791 = vmatprep.subr.bf16.mxu0 %v7179_v30 }
  0xfd   :  { %5581 = vmatpush3.bf16.msra.mxu1 %v7223_v38 }
  0xfe   :  { %5582 = vmatprep.subr.bf16.mxu1 %v8933_v2 }
  0xff   :  { %792 = vmatpush1.bf16.msra.mxu0 %v7194_v33 }
 0x100   :  { %793 = vmatprep.subr.bf16.mxu0 %v7200_v34 }
 0x101   :  { %5583 = vmatpush3.bf16.msra.mxu1 %v7247_v42 }
 0x102   :  { %5584 = vmatprep.subr.bf16.mxu1 %v8933_v2 }
 0x103   :  { %794 = vmatpush1.bf16.msra.mxu0 %v7210_v36 }
 0x104   :  { %795 = vmatprep.subr.bf16.mxu0 %v7216_v37 }
 0x105   :  { %5585 = vmatpush3.bf16.msra.mxu1 %v7267_v45 }
 0x106   :  { %5586 = vmatprep.subr.bf16.mxu1 %v8933_v2 }
 0x107   :  { %796 = vmatpush1.bf16.msra.mxu0 %v7232_v40 }
 0x108   :  { %797 = vmatprep.subr.bf16.mxu0 %v7240_v41 }
 0x109   :  { %5587 = vmatpush3.bf16.msra.mxu1 %v7288_v48 }
 0x10a   :  { %5588 = vmatprep.subr.bf16.mxu1 %v8933_v2 }
 0x10b   :  { %798 = vmatpush1.bf16.msra.mxu0 %v7253_v43 }
 0x10c   :  { %799 = vmatprep.subr.bf16.mxu0 %v7259_v44 }
 0x10d   :  { %5589 = vmatpush3.bf16.msra.mxu1 %v7302_v50 }
 0x10e   :  { %5590 = vmatprep.subr.bf16.mxu1 %v8933_v2 }
 0x10f   :  { %800 = vmatpush1.bf16.msra.mxu0 %v7273_v46 }
 0x110   :  { %801 = vmatprep.subr.bf16.mxu0 %v7281_v47 }
 0x111   :  { %5591 = vmatpush3.bf16.msra.mxu1 %v7313_v51 }
 0x112   :  { %5592 = vmatprep.subr.bf16.mxu1 %v8933_v2 }
 0x113   :  { %802 = vmatpush1.bf16.msra.mxu0 %v7294_v49 }
 0x114   :  { %890 = vmatprep.subr.bf16.mxu0 %v7146_v23 }
 0x115   :  { %5593 = vmatpush3.bf16.msra.mxu1 %v7322_v52 }
 0x116   :  { %5598 = vmatprep.subr.bf16.mxu1 %v8933_v2 }
 0x1a9   :  { %v421_v59 = vpop.f32.mrb[0].mxu0 }
 0x1aa   :  { %v423_v60 = vpop.f32.mrb[1].mxu0 }
 0x1ab   :  { %v425_v62 = vpop.f32.mrb[2].mxu0  ;;  %v484_v11 = vpop.f32.mrb[0].mxu1 }
 0x1ac   :  { %v7374_v63 = vadd.f32 %v425_v62, %v229_v58  ;;  %v427_v0 = vpop.f32.mrb[3].mxu0  ;;  %v5548_v14 = vpop.f32.mrb[1].mxu1 }
 0x1ad   :  { %v7376_v1 = vadd.f32 %v427_v0, %v233_v61  ;;  %v487_v16 = vpop.f32.mrb[2].mxu1 }
 0x1ae   :  { %v7389_v17 = vadd.f32 %v487_v16, %v237_v8  ;;  %v5549_v18 = vpop.f32.mrb[3].mxu1 }
 0x1b1   :  { %v431_v5 = vpop.f32.mrb[4].mxu0 }
 0x1b2   :  { %v7380_v6 = vadd.f32 %v431_v5, %v229_v58  ;;  %v433_v7 = vpop.f32.mrb[5].mxu0  ;;  %v539_v5 = vld [vmem:[#allocation6] sm:$0x7] }
 0x1b3   :  { %v7383_v9 = vadd.f32 %v433_v7, %v233_v61  ;;  %v435_v10 = vpop.f32.mrb[6].mxu0  ;;  %v492_v25 = vpop.f32.mrb[4].mxu1  ;;  %v7406_v16 = vrot.slane %v539_v5, %v7365_v55 }
 0x1b4   :  { %v7385_v12 = vadd.f32 %v435_v10, %v229_v58  ;;  %v437_v13 = vpop.f32.mrb[7].mxu0  ;;  %v7397_v32 = vadd.f32 %v492_v25, %v237_v8  ;;  %v5552_v39 = vpop.f32.mrb[5].mxu1  ;;  %v422_v25 = vadd.f32 %v421_v59, %v229_v58  ;;  %v7416_v59 = vrot.slane %v539_v5, %v7378_v4 }
 0x1b5   :  { %v7387_v15 = vadd.f32 %v437_v13, %v233_v61  ;;  %v495_v56 = vpop.f32.mrb[6].mxu1 }
 0x1b6   :  { %v7401_v62 = vadd.f32 %v495_v56, %v237_v8  ;;  %v5553_v0 = vpop.f32.mrb[7].mxu1  ;;  %v424_v56 = vadd.f32 %v423_v60, %v233_v61 }
 0x1b9   :  { %v441_v19 = vpop.f32.mrb[8].mxu0 }
 0x1ba   :  { %v7391_v20 = vadd.f32 %v441_v19, %v229_v58  ;;  %v443_v21 = vpop.f32.mrb[9].mxu0 }
 0x1bb   :  { %v7393_v22 = vadd.f32 %v443_v21, %v233_v61  ;;  %v445_v24 = vpop.f32.mrb[10].mxu0  ;;  %v500_v7 = vpop.f32.mrb[8].mxu1  ;;  %v7411_v21 = vrot.slane %v539_v5, %v7370_v57 }
 0x1bc   :  { %v7395_v28 = vadd.f32 %v445_v24, %v229_v58  ;;  %v447_v31 = vpop.f32.mrb[11].mxu0  ;;  %v7403_v10 = vadd.f32 %v500_v7, %v237_v8  ;;  %v5556_v13 = vpop.f32.mrb[9].mxu1 }
 0x1bd   :  { %v7399_v54 = vadd.f32 %v447_v31, %v233_v61  ;;  %v503_v14 = vpop.f32.mrb[10].mxu1 }
 0x1be   :  { %v7408_v18 = vadd.f32 %v503_v14, %v237_v8  ;;  %v5557_v19 = vpop.f32.mrb[11].mxu1 }
 0x1bf   :  { %9011 = vst [vmem:[#allocation27_spill] sm:$0xff] %v7399_v54 }
 0x1c0   :  { %9012 = vst [vmem:[#allocation28_spill] sm:$0xff] %v7408_v18 }
 0x1c9   :  { %v718_v24 = vpop.f32.mrb[12].mxu0 }
 0x1ca   :  { %v719_v31 = vadd.f32 %v718_v24, %v7406_v16  ;;  %v720_v39 = vpop.f32.mrb[13].mxu0 }
 0x1cb   :  { %v721_v0 = vadd.f32 %v720_v39, %v7411_v21  ;;  %v722_v7 = vpop.f32.mrb[14].mxu0  ;;  %v759_v55 = vpop.f32.mrb[12].mxu1 }
 0x1cc   :  { %v765_v13 = vadd.f32 %v719_v31, %v422_v25  ;;  %v723_v53 = vpop.f32.mrb[15].mxu0  ;;  %v5576_v19 = vpop.f32.mrb[13].mxu1  ;;  %v760_v24 = vadd.f32 %v759_v55, %v7416_v59  ;;  %v485_v25 = vadd.f32 %v484_v11, %v237_v8  ;;  %v9013_v55 = vmov 0.0  }
 0x1cd   :  { %v772_v3 = vadd.f32 %v721_v0, %v424_v56  ;;  %v762_v18 = vpop.f32.mrb[14].mxu1  ;;  %v9014_v8 = vmov 0  }
 0x1ce   :  { %v4929_v2 = vmul.f32 -1.442695, %v765_v13  ;;  %v5577_v57 = vpop.f32.mrb[15].mxu1 }
 0x1cf   :  { %v4930_v14 = vmul.f32 -1.442695, %v772_v3 }
 0x1d0   :  { %6413 = vpow2.f32 %v4929_v2 }
 0x1d1   :  { %6415 = vpow2.f32 %v4930_v14 }
 0x1da   :  { %v6414_v54 = vpop.eup %6413 }
 0x1db   :  { %v769_v58 = vadd.f32 1.0, %v6414_v54  ;;  %v6416_v60 = vpop.eup %6415 }
 0x1dc   :  { %v776_v61 = vadd.f32 1.0, %v6416_v60 }
 0x1dd   :  { %6417 = vrcp.f32 %v769_v58 }
 0x1de   :  { %6419 = vrcp.f32 %v776_v61 }
 0x1e7   :  { %v6418_v53 = vpop.eup %6417 }
 0x1e8   :  { %v779_v2 = vmul.f32 %v6418_v53, %v760_v24  ;;  %v6420_v31 = vpop.eup %6419 }
 0x1e9   :  { %v782_v18 = vsub.f32 1.0, %v6420_v31  ;;  %v784_v56 = vmul.f32 0.0, %v6420_v31 }
 0x1ea   :  { %v780_v3 = vadd.f32 %v779_v2, %v485_v25 }
 0x1ec   :  { %6421 = vtanh.f32 %v780_v3 }
 0x1f6   :  { %v6422_v57 = vpop.eup %6421 }
 0x1f7   :  { %v783_v39 = vmul.f32 %v6422_v57, %v782_v18 }
 0x1f9   :  { %v7419_v54 = vadd.f32 %v784_v56, %v783_v39 }
 0x1fb   :  { %v786_v5 = vpack.c.bf16 %v7419_v54, %v7419_v54 }
 0x1fd   :  { %820 = vmatmul.mubr.bf16.vlgmr.msra.gmra.mrb[16].mxu0 %v786_v5  ;;  %5595 = vmatmul.mubr.bf16.vlgmr.msra.gmra.mrb[16].mxu1 %v786_v5 }
 0x1fe   :  { %891 = vmatpush1.bf16.msra.mxu0 %v7158_v26  ;;  %5599 = vmatpush3.bf16.msra.mxu1 %v7205_v35 }
 0x1ff   :  { %892 = vmatprep.subr.bf16.mxu0 %v7163_v27  ;;  %5600 = vmatprep.subr.bf16.mxu1 %v9013_v55 }
 0x200   :  { %922 = vmatprep.mubr.bf16.mxu0 %v9014_v8  ;;  %5614 = vmatprep.mubr.msk.bf16.mxu1 %vm6843_vm0, %v9013_v55 }
 0x202   :  { %893 = vmatpush1.bf16.msra.mxu0 %v7173_v29  ;;  %5601 = vmatpush3.bf16.msra.mxu1 %v7223_v38 }
 0x203   :  { %894 = vmatprep.subr.bf16.mxu0 %v7179_v30  ;;  %5602 = vmatprep.subr.bf16.mxu1 %v9013_v55 }
 0x206   :  { %895 = vmatpush1.bf16.msra.mxu0 %v7194_v33  ;;  %5603 = vmatpush3.bf16.msra.mxu1 %v7247_v42 }
 0x207   :  { %896 = vmatprep.subr.bf16.mxu0 %v7200_v34  ;;  %5604 = vmatprep.subr.bf16.mxu1 %v9013_v55 }
 0x20a   :  { %897 = vmatpush1.bf16.msra.mxu0 %v7210_v36  ;;  %5605 = vmatpush3.bf16.msra.mxu1 %v7267_v45 }
 0x20b   :  { %898 = vmatprep.subr.bf16.mxu0 %v7216_v37  ;;  %5606 = vmatprep.subr.bf16.mxu1 %v9013_v55 }
 0x20e   :  { %899 = vmatpush1.bf16.msra.mxu0 %v7232_v40  ;;  %5607 = vmatpush3.bf16.msra.mxu1 %v7288_v48 }
 0x20f   :  { %900 = vmatprep.subr.bf16.mxu0 %v7240_v41  ;;  %5608 = vmatprep.subr.bf16.mxu1 %v9013_v55 }
 0x212   :  { %901 = vmatpush1.bf16.msra.mxu0 %v7253_v43  ;;  %5609 = vmatpush3.bf16.msra.mxu1 %v7302_v50 }
 0x213   :  { %902 = vmatprep.subr.bf16.mxu0 %v7259_v44  ;;  %5610 = vmatprep.subr.bf16.mxu1 %v9013_v55 }
 0x216   :  { %903 = vmatpush1.bf16.msra.mxu0 %v7273_v46  ;;  %5611 = vmatpush3.bf16.msra.mxu1 %v7313_v51 }
 0x217   :  { %904 = vmatprep.subr.bf16.mxu0 %v7281_v47  ;;  %5612 = vmatprep.subr.bf16.mxu1 %v9013_v55 }
 0x21a   :  { %905 = vmatpush1.bf16.msra.mxu0 %v7294_v49  ;;  %5613 = vmatpush3.bf16.msra.mxu1 %v7322_v52 }
 0x21b   :  { %993 = vmatprep.subr.bf16.mxu0 %v7146_v23  ;;  %5618 = vmatprep.subr.bf16.mxu1 %v9013_v55 }
 0x2d0   :  { %v821_v11 = vpop.f32.mrb[16].mxu0  ;;  %v862_v0 = vpop.f32.mrb[16].mxu1 }
 0x2d1   :  { %v822_v7 = vadd.f32 %v821_v11, %v7406_v16  ;;  %v823_v13 = vpop.f32.mrb[17].mxu0  ;;  %v5596_v14 = vpop.f32.mrb[17].mxu1  ;;  %v863_v39 = vadd.f32 %v862_v0, %v7416_v59 }
 0x2d2   :  { %v824_v19 = vadd.f32 %v823_v13, %v7411_v21  ;;  %v825_v58 = vpop.f32.mrb[18].mxu0  ;;  %v865_v60 = vpop.f32.mrb[18].mxu1 }
 0x2d3   :  { %v868_v61 = vadd.f32 %v822_v7, %v7374_v63  ;;  %v826_v24 = vpop.f32.mrb[19].mxu0  ;;  %v5597_v53 = vpop.f32.mrb[19].mxu1 }
 0x2d4   :  { %v875_v25 = vadd.f32 %v824_v19, %v7376_v1 }
 0x2d5   :  { %v4931_v2 = vmul.f32 -1.442695, %v868_v61 }
 0x2d6   :  { %v4932_v23 = vmul.f32 -1.442695, %v875_v25 }
 0x2d7   :  { %6423 = vpow2.f32 %v4931_v2 }
 0x2d8   :  { %6425 = vpow2.f32 %v4932_v23 }
 0x2e1   :  { %v6424_v3 = vpop.eup %6423 }
 0x2e2   :  { %v872_v31 = vadd.f32 1.0, %v6424_v3  ;;  %v6426_v18 = vpop.eup %6425 }
 0x2e3   :  { %v879_v57 = vadd.f32 1.0, %v6426_v18 }
 0x2e4   :  { %6427 = vrcp.f32 %v872_v31 }
 0x2e5   :  { %6429 = vrcp.f32 %v879_v57 }
 0x2ee   :  { %v6428_v56 = vpop.eup %6427 }
 0x2ef   :  { %v882_v5 = vmul.f32 %v6428_v56, %v863_v39  ;;  %v6430_v11 = vpop.eup %6429 }
 0x2f0   :  { %v885_v7 = vsub.f32 1.0, %v6430_v11  ;;  %v887_v14 = vmul.f32 %v6430_v11, %v7419_v54 }
 0x2f1   :  { %v883_v63 = vadd.f32 %v882_v5, %v7389_v17 }
 0x2f3   :  { %6431 = vtanh.f32 %v883_v63 }
 0x2fd   :  { %v6432_v1 = vpop.eup %6431 }
 0x2fe   :  { %v886_v13 = vmul.f32 %v6432_v1, %v885_v7  ;;  %v7523_v7 = vld [vmem:[%s8909_s4] ss:$12 sps:$4 sm:$0xff]   ;;  %v7535_v1 = vld [vmem:[%s8909_s4 + $0x1c] ss:$12 sps:$4 sm:$0xff]  }
 0x300   :  { %v7465_v19 = vadd.f32 %v887_v14, %v886_v13  ;;  %v7545_v13 = vld [vmem:[%s8909_s4 + $0x18] ss:$12 sps:$4 sm:$0xff]   ;;  %v7552_v14 = vld [vmem:[%s8909_s4 + $0x34] ss:$12 sps:$4 sm:$0xff]  }
 0x302   :  { %v889_v58 = vpack.c.bf16 %v7465_v19, %v7465_v19 }
 0x304   :  { %923 = vmatmul.mubr.bf16.vlgmr.msra.gmra.mrb[20].mxu0 %v889_v58  ;;  %5615 = vmatmul.mubr.bf16.vlgmr.msra.gmra.mrb[20].mxu1 %v889_v58  ;;  %v7573_v58 = vld [vmem:[%s8909_s4 + $0x48] ss:$12 sps:$4 sm:$0xff]  }
 0x305   :  { %994 = vmatpush1.bf16.msra.mxu0 %v7158_v26  ;;  %5619 = vmatpush3.bf16.msra.mxu1 %v7205_v35  ;;  %v7505_v26 = vld [vmem:[%s8909_s4 + $0x4] ss:$12 sps:$4 sm:$0xff]  }
 0x306   :  { %995 = vmatprep.subr.bf16.mxu0 %v7163_v27  ;;  %5620 = vmatprep.subr.bf16.mxu1 %v9013_v55 }
 0x307   :  { %1025 = vmatprep.mubr.bf16.mxu0 %v9014_v8  ;;  %5634 = vmatprep.mubr.msk.bf16.mxu1 %vm6843_vm0, %v9013_v55 }
 0x309   :  { %996 = vmatpush1.bf16.msra.mxu0 %v7173_v29  ;;  %5621 = vmatpush3.bf16.msra.mxu1 %v7223_v38 }
 0x30a   :  { %997 = vmatprep.subr.bf16.mxu0 %v7179_v30  ;;  %5622 = vmatprep.subr.bf16.mxu1 %v9013_v55 }
 0x30d   :  { %998 = vmatpush1.bf16.msra.mxu0 %v7194_v33  ;;  %5623 = vmatpush3.bf16.msra.mxu1 %v7247_v42 }
 0x30e   :  { %999 = vmatprep.subr.bf16.mxu0 %v7200_v34  ;;  %5624 = vmatprep.subr.bf16.mxu1 %v9013_v55 }
 0x311   :  { %1000 = vmatpush1.bf16.msra.mxu0 %v7210_v36  ;;  %5625 = vmatpush3.bf16.msra.mxu1 %v7267_v45 }
 0x312   :  { %1001 = vmatprep.subr.bf16.mxu0 %v7216_v37  ;;  %5626 = vmatprep.subr.bf16.mxu1 %v9013_v55 }
 0x315   :  { %1002 = vmatpush1.bf16.msra.mxu0 %v7232_v40  ;;  %5627 = vmatpush3.bf16.msra.mxu1 %v7288_v48 }
 0x316   :  { %1003 = vmatprep.subr.bf16.mxu0 %v7240_v41  ;;  %5628 = vmatprep.subr.bf16.mxu1 %v9013_v55 }
 0x319   :  { %1004 = vmatpush1.bf16.msra.mxu0 %v7253_v43  ;;  %5629 = vmatpush3.bf16.msra.mxu1 %v7302_v50 }
 0x31a   :  { %1005 = vmatprep.subr.bf16.mxu0 %v7259_v44  ;;  %5630 = vmatprep.subr.bf16.mxu1 %v9013_v55 }
 0x31d   :  { %1006 = vmatpush1.bf16.msra.mxu0 %v7273_v46  ;;  %5631 = vmatpush3.bf16.msra.mxu1 %v7313_v51 }
 0x31e   :  { %1007 = vmatprep.subr.bf16.mxu0 %v7281_v47  ;;  %5632 = vmatprep.subr.bf16.mxu1 %v9013_v55 }
 0x321   :  { %1008 = vmatpush1.bf16.msra.mxu0 %v7294_v49  ;;  %5633 = vmatpush3.bf16.msra.mxu1 %v7322_v52 }
 0x322   :  { %1096 = vmatprep.subr.bf16.mxu0 %v7505_v26  ;;  %5638 = vmatprep.subr.bf16.mxu1 %v9013_v55 }
 0x3d7   :  { %v924_v27 = vpop.f32.mrb[20].mxu0  ;;  %v965_v29 = vpop.f32.mrb[20].mxu1 }
 0x3d8   :  { %v925_v30 = vadd.f32 %v924_v27, %v7406_v16  ;;  %v926_v33 = vpop.f32.mrb[21].mxu0  ;;  %v5616_v34 = vpop.f32.mrb[21].mxu1  ;;  %v966_v3 = vadd.f32 %v965_v29, %v7416_v59 }
 0x3d9   :  { %v927_v35 = vadd.f32 %v926_v33, %v7411_v21  ;;  %v928_v36 = vpop.f32.mrb[22].mxu0  ;;  %v968_v37 = vpop.f32.mrb[22].mxu1 }
 0x3da   :  { %v971_v17 = vadd.f32 %v925_v30, %v7380_v6  ;;  %v929_v54 = vpop.f32.mrb[23].mxu0  ;;  %v5617_v0 = vpop.f32.mrb[23].mxu1 }
 0x3db   :  { %v978_v60 = vadd.f32 %v927_v35, %v7383_v9 }
 0x3dc   :  { %v4933_v61 = vmul.f32 -1.442695, %v971_v17 }
 0x3dd   :  { %v4934_v24 = vmul.f32 -1.442695, %v978_v60 }
 0x3de   :  { %6433 = vpow2.f32 %v4933_v61 }
 0x3df   :  { %6435 = vpow2.f32 %v4934_v24 }
 0x3e8   :  { %v6434_v53 = vpop.eup %6433 }
 0x3e9   :  { %v975_v25 = vadd.f32 1.0, %v6434_v53  ;;  %v6436_v2 = vpop.eup %6435 }
 0x3ea   :  { %v982_v23 = vadd.f32 1.0, %v6436_v2  ;;  %v6494_v2 = vld [vmem:[%s8909_s4 + $0x38] ss:$12 sps:$4 sm:$0xff]  }
 0x3eb   :  { %6437 = vrcp.f32 %v975_v25 }
 0x3ec   :  { %6439 = vrcp.f32 %v982_v23  ;;  %v6495_v23 = vld [vmem:[%s8909_s4 + $0x50] ss:$12 sps:$4 sm:$0xff]  }
 0x3f5   :  { %v6438_v31 = vpop.eup %6437 }
 0x3f6   :  { %v985_v18 = vmul.f32 %v6438_v31, %v966_v3  ;;  %v6440_v57 = vpop.eup %6439  ;;  %v6496_v3 = vld [vmem:[%s8909_s4 + $0x60] ss:$12 sps:$4 sm:$0xff]   ;;  %v6497_v31 = vld [vmem:[%s8909_s4 + $0x68] ss:$12 sps:$4 sm:$0xff]  }
 0x3f7   :  { %v988_v39 = vsub.f32 1.0, %v6440_v57  ;;  %v990_v5 = vmul.f32 %v6440_v57, %v7465_v19  ;;  %v7559_v19 = vld [vmem:[%s8909_s4 + $0x30] ss:$12 sps:$4 sm:$0xff]   ;;  %v6500_v57 = vld [vmem:[%s8909_s4 + $0x80] ss:$12 sps:$4 sm:$0xff]  }
 0x3f8   :  { %v986_v6 = vadd.f32 %v985_v18, %v7397_v32  ;;  %v7529_v32 = vld [vmem:[%s8909_s4 + $0x8] ss:$12 sps:$4 sm:$0xff]  }
 0x3f9   :  { %v6498_v18 = vld [vmem:[%s8909_s4 + $0x7c] ss:$12 sps:$4 sm:$0xff]  }
 0x3fa   :  { %6441 = vtanh.f32 %v986_v6  ;;  %v6499_v6 = vld [vmem:[%s8909_s4 + $0x78] ss:$12 sps:$4 sm:$0xff]  }
 0x404   :  { %v6442_v9 = vpop.eup %6441 }
 0x405   :  { %v989_v56 = vmul.f32 %v6442_v9, %v988_v39  ;;  %v6501_v39 = vld [vmem:[%s8909_s4 + $0x94] ss:$12 sps:$4 sm:$0xff]   ;;  %v6502_v9 = vld [vmem:[%s8909_s4 + $0x90] ss:$12 sps:$4 sm:$0xff]  }
 0x407   :  { %v7516_v63 = vadd.f32 %v990_v5, %v989_v56  ;;  %v6503_v56 = vld [vmem:[%s8909_s4 + $0xac] ss:$12 sps:$4 sm:$0xff]   ;;  %v6504_v5 = vld [vmem:[%s8909_s4 + $0xa8] ss:$12 sps:$4 sm:$0xff]  }
 0x409   :  { %v992_v11 = vpack.c.bf16 %v7516_v63, %v7516_v63 }
 0x40b   :  { %1026 = vmatmul.mubr.bf16.vlgmr.msra.gmra.mrb[24].mxu0 %v992_v11  ;;  %5635 = vmatmul.mubr.bf16.vlgmr.msra.gmra.mrb[24].mxu1 %v992_v11 }
 0x40c   :  { %1097 = vmatpush1.bf16.msra.mxu0 %v7523_v7  ;;  %5639 = vmatpush3.bf16.msra.mxu1 %v7529_v32 }
 0x40d   :  { %1098 = vmatprep.subr.bf16.mxu0 %v7535_v1  ;;  %5640 = vmatprep.subr.bf16.mxu1 %v9013_v55 }
 0x40e   :  { %1128 = vmatprep.mubr.bf16.mxu0 %v9014_v8  ;;  %5654 = vmatprep.mubr.msk.bf16.mxu1 %vm6843_vm0, %v9013_v55 }
 0x410   :  { %1099 = vmatpush1.bf16.msra.mxu0 %v7545_v13  ;;  %5641 = vmatpush3.bf16.msra.mxu1 %v7223_v38  ;;  %v7566_v38 = vld [vmem:[%s8909_s4 + $0x4c] ss:$12 sps:$4 sm:$0xff]  }
 0x411   :  { %1100 = vmatprep.subr.bf16.mxu0 %v7552_v14  ;;  %5642 = vmatprep.subr.bf16.mxu1 %v9013_v55 }
 0x414   :  { %1101 = vmatpush1.bf16.msra.mxu0 %v7559_v19  ;;  %5643 = vmatpush3.bf16.msra.mxu1 %v7247_v42  ;;  %v7580_v42 = vld [vmem:[%s8909_s4 + $0x64] ss:$12 sps:$4 sm:$0xff]  }
 0x415   :  { %1102 = vmatprep.subr.bf16.mxu0 %v7566_v38  ;;  %5644 = vmatprep.subr.bf16.mxu1 %v9013_v55 }
 0x418   :  { %1103 = vmatpush1.bf16.msra.mxu0 %v7573_v58  ;;  %5645 = vmatpush3.bf16.msra.mxu1 %v7267_v45 }
 0x419   :  { %1104 = vmatprep.subr.bf16.mxu0 %v7580_v42  ;;  %5646 = vmatprep.subr.bf16.mxu1 %v9013_v55 }
 0x41c   :  { %1105 = vmatpush1.bf16.msra.mxu0 %v7232_v40  ;;  %5647 = vmatpush3.bf16.msra.mxu1 %v7288_v48 }
 0x41d   :  { %1106 = vmatprep.subr.bf16.mxu0 %v7240_v41  ;;  %5648 = vmatprep.subr.bf16.mxu1 %v9013_v55 }
 0x420   :  { %1107 = vmatpush1.bf16.msra.mxu0 %v7253_v43  ;;  %5649 = vmatpush3.bf16.msra.mxu1 %v7302_v50 }
 0x421   :  { %1108 = vmatprep.subr.bf16.mxu0 %v7259_v44  ;;  %5650 = vmatprep.subr.bf16.mxu1 %v9013_v55 }
 0x424   :  { %1109 = vmatpush1.bf16.msra.mxu0 %v7273_v46  ;;  %5651 = vmatpush3.bf16.msra.mxu1 %v7313_v51 }
 0x425   :  { %1110 = vmatprep.subr.bf16.mxu0 %v7281_v47  ;;  %5652 = vmatprep.subr.bf16.mxu1 %v9013_v55 }
 0x428   :  { %1111 = vmatpush1.bf16.msra.mxu0 %v7294_v49  ;;  %5653 = vmatpush3.bf16.msra.mxu1 %v7322_v52 }
 0x429   :  { %1199 = vmatprep.subr.bf16.mxu0 %v7505_v26  ;;  %5658 = vmatprep.subr.bf16.mxu1 %v9013_v55 }
 0x4de   :  { %v1027_v40 = vpop.f32.mrb[24].mxu0  ;;  %v1068_v41 = vpop.f32.mrb[24].mxu1 }
 0x4df   :  { %v1028_v43 = vadd.f32 %v1027_v40, %v7406_v16  ;;  %v1029_v44 = vpop.f32.mrb[25].mxu0  ;;  %v5636_v45 = vpop.f32.mrb[25].mxu1  ;;  %v1069_v37 = vadd.f32 %v1068_v41, %v7416_v59 }
 0x4e0   :  { %v1030_v46 = vadd.f32 %v1029_v44, %v7411_v21  ;;  %v1031_v48 = vpop.f32.mrb[26].mxu0  ;;  %v1071_v47 = vpop.f32.mrb[26].mxu1 }
 0x4e1   :  { %v1074_v50 = vadd.f32 %v1028_v43, %v7385_v12  ;;  %v1032_v27 = vpop.f32.mrb[27].mxu0  ;;  %v5637_v49 = vpop.f32.mrb[27].mxu1 }
 0x4e2   :  { %v1081_v29 = vadd.f32 %v1030_v46, %v7387_v15 }
 0x4e3   :  { %v4935_v30 = vmul.f32 -1.442695, %v1074_v50 }
 0x4e4   :  { %v4936_v26 = vmul.f32 -1.442695, %v1081_v29 }
 0x4e5   :  { %6443 = vpow2.f32 %v4935_v30 }
 0x4e6   :  { %6445 = vpow2.f32 %v4936_v26 }
 0x4ef   :  { %v6444_v33 = vpop.eup %6443 }
 0x4f0   :  { %v1078_v34 = vadd.f32 1.0, %v6444_v33  ;;  %v6446_v35 = vpop.eup %6445  ;;  %v6221_v33 = vld [vmem:[#allocation9] ss:$12 sps:$4 sm:$0xff]  }
 0x4f1   :  { %v1085_v36 = vadd.f32 1.0, %v6446_v35  ;;  %v6227_v35 = vld [vmem:[#allocation9 + $0x1c] ss:$12 sps:$4 sm:$0xff]  }
 0x4f2   :  { %6447 = vrcp.f32 %v1078_v34  ;;  %v6224_v34 = vld [vmem:[#allocation9 + $0x8] ss:$12 sps:$4 sm:$0xff]  }
 0x4f3   :  { %6449 = vrcp.f32 %v1085_v36  ;;  %v6225_v36 = vld [vmem:[#allocation9 + $0x18] ss:$12 sps:$4 sm:$0xff]  }
 0x4fc   :  { %v6448_v17 = vpop.eup %6447 }
 0x4fd   :  { %v1088_v54 = vmul.f32 %v6448_v17, %v1069_v37  ;;  %v6450_v0 = vpop.eup %6449  ;;  %v6228_v37 = vld [vmem:[#allocation9 + $0x20] ss:$12 sps:$4 sm:$0xff]  }
 0x4fe   :  { %v1091_v60 = vsub.f32 1.0, %v6450_v0  ;;  %v1093_v24 = vmul.f32 %v6450_v0, %v7516_v63  ;;  %v6231_v17 = vld [vmem:[#allocation9 + $0x34] ss:$12 sps:$4 sm:$0xff]   ;;  %v6235_v0 = vld [vmem:[#allocation9 + $0x4c] ss:$12 sps:$4 sm:$0xff]  }
 0x4ff   :  { %v1089_v12 = vadd.f32 %v1088_v54, %v7401_v62  ;;  %v6493_v62 = vld [vmem:[%s8909_s4 + $0x20] ss:$12 sps:$4 sm:$0xff]   ;;  %v6229_v54 = vld [vmem:[#allocation9 + $0x30] ss:$12 sps:$4 sm:$0xff]  }
 0x501   :  { %6451 = vtanh.f32 %v1089_v12  ;;  %v6232_v12 = vld [vmem:[#allocation9 + $0x38] ss:$12 sps:$4 sm:$0xff]  }
 0x50b   :  { %v6452_v15 = vpop.eup %6451 }
 0x50c   :  { %v1092_v61 = vmul.f32 %v6452_v15, %v1091_v60  ;;  %v6233_v60 = vld [vmem:[#allocation9 + $0x48] ss:$12 sps:$4 sm:$0xff]   ;;  %v6236_v15 = vld [vmem:[#allocation9 + $0x50] ss:$12 sps:$4 sm:$0xff]  }
 0x50e   :  { %v7607_v53 = vadd.f32 %v1093_v24, %v1092_v61  ;;  %v6239_v61 = vld [vmem:[#allocation9 + $0x64] ss:$12 sps:$4 sm:$0xff]   ;;  %v6237_v24 = vld [vmem:[#allocation9 + $0x60] ss:$12 sps:$4 sm:$0xff]  }
 0x510   :  { %v1095_v25 = vpack.c.bf16 %v7607_v53, %v7607_v53 }
 0x512   :  { %1129 = vmatmul.mubr.bf16.vlgmr.msra.gmra.mrb[28].mxu0 %v1095_v25  ;;  %5655 = vmatmul.mubr.bf16.vlgmr.msra.gmra.mrb[28].mxu1 %v1095_v25  ;;  %v6243_v25 = vld [vmem:[#allocation9 + $0x7c] ss:$12 sps:$4 sm:$0xff]  }
 0x513   :  { %1200 = vmatpush1.bf16.msra.mxu0 %v7523_v7  ;;  %5659 = vmatpush3.bf16.msra.mxu1 %v7529_v32 }
 0x514   :  { %1201 = vmatprep.subr.bf16.mxu0 %v7535_v1  ;;  %5660 = vmatprep.subr.bf16.mxu1 %v9013_v55 }
 0x515   :  { %1231 = vmatprep.mubr.bf16.mxu0 %v9014_v8  ;;  %5674 = vmatprep.mubr.msk.bf16.mxu1 %vm6843_vm0, %v9013_v55 }
 0x517   :  { %1202 = vmatpush1.bf16.msra.mxu0 %v7545_v13  ;;  %5661 = vmatpush3.bf16.msra.mxu1 %v6493_v62  ;;  %v6241_v62 = vld [vmem:[#allocation9 + $0x78] ss:$12 sps:$4 sm:$0xff]  }
 0x518   :  { %1203 = vmatprep.subr.bf16.mxu0 %v7552_v14  ;;  %5662 = vmatprep.subr.bf16.mxu1 %v9013_v55 }
 0x51b   :  { %1204 = vmatpush1.bf16.msra.mxu0 %v7559_v19  ;;  %5663 = vmatpush3.bf16.msra.mxu1 %v6494_v2  ;;  %v6244_v2 = vld [vmem:[#allocation9 + $0x80] ss:$12 sps:$4 sm:$0xff]  }
 0x51c   :  { %1205 = vmatprep.subr.bf16.mxu0 %v7566_v38  ;;  %5664 = vmatprep.subr.bf16.mxu1 %v9013_v55 }
 0x51f   :  { %1206 = vmatpush1.bf16.msra.mxu0 %v7573_v58  ;;  %5665 = vmatpush3.bf16.msra.mxu1 %v6495_v23  ;;  %v6247_v23 = vld [vmem:[#allocation9 + $0x94] ss:$12 sps:$4 sm:$0xff]  }
 0x520   :  { %1207 = vmatprep.subr.bf16.mxu0 %v7580_v42  ;;  %5666 = vmatprep.subr.bf16.mxu1 %v9013_v55 }
 0x523   :  { %1208 = vmatpush1.bf16.msra.mxu0 %v6496_v3  ;;  %5667 = vmatpush3.bf16.msra.mxu1 %v6497_v31  ;;  %v6245_v3 = vld [vmem:[#allocation9 + $0x90] ss:$12 sps:$4 sm:$0xff]   ;;  %v6248_v31 = vld [vmem:[#allocation9 + $0x98] ss:$12 sps:$4 sm:$0xff]  }
 0x524   :  { %1209 = vmatprep.subr.bf16.mxu0 %v6498_v18  ;;  %5668 = vmatprep.subr.bf16.mxu1 %v9013_v55  ;;  %v6251_v18 = vld [vmem:[#allocation9 + $0xac] ss:$12 sps:$4 sm:$0xff]  }
 0x527   :  { %1210 = vmatpush1.bf16.msra.mxu0 %v6499_v6  ;;  %5669 = vmatpush3.bf16.msra.mxu1 %v6500_v57  ;;  %v6249_v6 = vld [vmem:[#allocation9 + $0xa8] ss:$12 sps:$4 sm:$0xff]   ;;  %v6252_v57 = vld [vmem:[#allocation9 + $0xb0] ss:$12 sps:$4 sm:$0xff]  }
 0x528   :  { %1211 = vmatprep.subr.bf16.mxu0 %v6501_v39  ;;  %5670 = vmatprep.subr.bf16.mxu1 %v9013_v55  ;;  %v6255_v39 = vld [vmem:[#allocation18 + $0x4] ss:$12 sps:$4 sm:$0xff]  }
 0x52b   :  { %1212 = vmatpush1.bf16.msra.mxu0 %v6502_v9  ;;  %5671 = vmatpush3.bf16.msra.mxu1 %v7313_v51 }
 0x52c   :  { %1213 = vmatprep.subr.bf16.mxu0 %v6503_v56  ;;  %5672 = vmatprep.subr.bf16.mxu1 %v9013_v55 }
 0x52f   :  { %1214 = vmatpush1.bf16.msra.mxu0 %v6504_v5  ;;  %5673 = vmatpush3.bf16.msra.mxu1 %v7322_v52 }
 0x530   :  { %5678 = vmatprep.subr.bf16.mxu1 %v9013_v55 }
 0x5e5   :  { %v1130_v63 = vpop.f32.mrb[28].mxu0  ;;  %v1171_v11 = vpop.f32.mrb[28].mxu1 }
 0x5e6   :  { %v1131_v51 = vadd.f32 %v1130_v63, %v7406_v16  ;;  %v1132_v7 = vpop.f32.mrb[29].mxu0  ;;  %v5656_v32 = vpop.f32.mrb[29].mxu1  ;;  %v1172_v46 = vadd.f32 %v1171_v11, %v7416_v59 }
 0x5e7   :  { %v1133_v1 = vadd.f32 %v1132_v7, %v7411_v21  ;;  %v1134_v13 = vpop.f32.mrb[30].mxu0  ;;  %v1174_v14 = vpop.f32.mrb[30].mxu1 }
 0x5e8   :  { %v1177_v19 = vadd.f32 %v1131_v51, %v7391_v20  ;;  %v1135_v38 = vpop.f32.mrb[31].mxu0  ;;  %v5657_v58 = vpop.f32.mrb[31].mxu1 }
 0x5e9   :  { %v1184_v42 = vadd.f32 %v1133_v1, %v7393_v22 }
 0x5ea   :  { %v4937_v40 = vmul.f32 -1.442695, %v1177_v19  ;;  %v9015_v19 = vld [vmem:[#allocation27_spill] sm:$0xff] }
 0x5eb   :  { %v4938_v52 = vmul.f32 -1.442695, %v1184_v42 }
 0x5ec   :  { %6453 = vpow2.f32 %v4937_v40 }
 0x5ed   :  { %6455 = vpow2.f32 %v4938_v52 }
 0x5f6   :  { %v6454_v41 = vpop.eup %6453 }
 0x5f7   :  { %v1181_v43 = vadd.f32 1.0, %v6454_v41  ;;  %v6456_v44 = vpop.eup %6455 }
 0x5f8   :  { %v1188_v45 = vadd.f32 1.0, %v6456_v44 }
 0x5f9   :  { %6457 = vrcp.f32 %v1181_v43 }
 0x5fa   :  { %6459 = vrcp.f32 %v1188_v45  ;;  %v9016_v45 = vld [vmem:[#allocation28_spill] sm:$0xff] }
 0x603   :  { %v6458_v48 = vpop.eup %6457 }
 0x604   :  { %v1191_v47 = vmul.f32 %v6458_v48, %v1172_v46  ;;  %v6460_v50 = vpop.eup %6459 }
 0x605   :  { %v1194_v27 = vsub.f32 1.0, %v6460_v50  ;;  %v1196_v29 = vmul.f32 %v6460_v50, %v7607_v53  ;;  %v6240_v53 = vld [vmem:[#allocation9 + $0x68] ss:$12 sps:$4 sm:$0xff]  }
 0x606   :  { %v1192_v20 = vadd.f32 %v1191_v47, %v7403_v10  ;;  %v6223_v10 = vld [vmem:[#allocation9 + $0x4] ss:$12 sps:$4 sm:$0xff]  }
 0x607   :  { %1479 = vmatprep.subr.bf16.mxu0 %v6223_v10  ;;  %v6260_v10 = vld [vmem:[#allocation18 + $0x20] ss:$12 sps:$4 sm:$0xff]  }
 0x608   :  { %6461 = vtanh.f32 %v1192_v20 }
 0x612   :  { %v6462_v22 = vpop.eup %6461 }
 0x613   :  { %v1195_v49 = vmul.f32 %v6462_v22, %v1194_v27  ;;  %v6253_v22 = vld [vmem:[#allocation18] ss:$12 sps:$4 sm:$0xff]  }
 0x615   :  { %v7676_v30 = vadd.f32 %v1196_v29, %v1195_v49  ;;  %v6256_v49 = vld [vmem:[#allocation18 + $0x8] ss:$12 sps:$4 sm:$0xff]  }
 0x617   :  { %v1198_v26 = vpack.c.bf16 %v7676_v30, %v7676_v30 }
 0x619   :  { %1232 = vmatmul.mubr.bf16.vlgmr.msra.gmra.mrb[32].mxu0 %v1198_v26  ;;  %5675 = vmatmul.mubr.bf16.vlgmr.msra.gmra.mrb[32].mxu1 %v1198_v26  ;;  %v6257_v26 = vld [vmem:[#allocation18 + $0x18] ss:$12 sps:$4 sm:$0xff]  }
 0x61a   :  { %1511 = vmatprep.mubr.bf16.mxu0 %v9014_v8  ;;  %5694 = vmatprep.mubr.msk.bf16.mxu1 %vm6843_vm0, %v9013_v55 }
 0x61b   :  { %1480 = vmatpush1.bf16.msra.mxu0 %v6221_v33  ;;  %5679 = vmatpush3.bf16.msra.mxu1 %v6224_v34  ;;  %v6261_v33 = vld [vmem:[#allocation18 + $0x30] ss:$12 sps:$4 sm:$0xff]   ;;  %v6264_v34 = vld [vmem:[#allocation18 + $0x38] ss:$12 sps:$4 sm:$0xff]  }
 0x61c   :  { %5680 = vmatprep.subr.bf16.mxu1 %v9013_v55  ;;  %1481 = vmatprep.subr.bf16.mxu0 %v6227_v35  ;;  %v6267_v35 = vld [vmem:[#allocation18 + $0x4c] ss:$12 sps:$4 sm:$0xff]  }
 0x61f   :  { %1482 = vmatpush1.bf16.msra.mxu0 %v6225_v36  ;;  %5681 = vmatpush3.bf16.msra.mxu1 %v6228_v37  ;;  %v6265_v36 = vld [vmem:[#allocation18 + $0x48] ss:$12 sps:$4 sm:$0xff]   ;;  %v6268_v37 = vld [vmem:[#allocation18 + $0x50] ss:$12 sps:$4 sm:$0xff]  }
 0x620   :  { %5682 = vmatprep.subr.bf16.mxu1 %v9013_v55  ;;  %1483 = vmatprep.subr.bf16.mxu0 %v6231_v17  ;;  %v6271_v17 = vld [vmem:[#allocation18 + $0x64] ss:$12 sps:$4 sm:$0xff]  }
 0x623   :  { %1484 = vmatpush1.bf16.msra.mxu0 %v6229_v54  ;;  %5683 = vmatpush3.bf16.msra.mxu1 %v6232_v12  ;;  %v6269_v54 = vld [vmem:[#allocation18 + $0x60] ss:$12 sps:$4 sm:$0xff]   ;;  %v6272_v12 = vld [vmem:[#allocation18 + $0x68] ss:$12 sps:$4 sm:$0xff]  }
 0x624   :  { %5684 = vmatprep.subr.bf16.mxu1 %v9013_v55  ;;  %1485 = vmatprep.subr.bf16.mxu0 %v6235_v0  ;;  %v6275_v0 = vld [vmem:[#allocation18 + $0x7c] ss:$12 sps:$4 sm:$0xff]  }
 0x627   :  { %1486 = vmatpush1.bf16.msra.mxu0 %v6233_v60  ;;  %5685 = vmatpush3.bf16.msra.mxu1 %v6236_v15  ;;  %v6273_v60 = vld [vmem:[#allocation18 + $0x78] ss:$12 sps:$4 sm:$0xff]   ;;  %v6276_v15 = vld [vmem:[#allocation18 + $0x80] ss:$12 sps:$4 sm:$0xff]  }
 0x628   :  { %5686 = vmatprep.subr.bf16.mxu1 %v9013_v55  ;;  %1487 = vmatprep.subr.bf16.mxu0 %v6239_v61  ;;  %v6279_v61 = vld [vmem:[#allocation18 + $0x94] ss:$12 sps:$4 sm:$0xff]  }
 0x62b   :  { %1488 = vmatpush1.bf16.msra.mxu0 %v6237_v24  ;;  %5687 = vmatpush3.bf16.msra.mxu1 %v6240_v53  ;;  %v6277_v24 = vld [vmem:[#allocation18 + $0x90] ss:$12 sps:$4 sm:$0xff]   ;;  %v6280_v53 = vld [vmem:[#allocation18 + $0x98] ss:$12 sps:$4 sm:$0xff]  }
 0x62c   :  { %5688 = vmatprep.subr.bf16.mxu1 %v9013_v55  ;;  %1489 = vmatprep.subr.bf16.mxu0 %v6243_v25  ;;  %v6283_v25 = vld [vmem:[#allocation18 + $0xac] ss:$12 sps:$4 sm:$0xff]  }
 0x62f   :  { %1490 = vmatpush1.bf16.msra.mxu0 %v6241_v62  ;;  %5689 = vmatpush3.bf16.msra.mxu1 %v6244_v2  ;;  %v6281_v62 = vld [vmem:[#allocation18 + $0xa8] ss:$12 sps:$4 sm:$0xff]   ;;  %v6284_v2 = vld [vmem:[#allocation18 + $0xb0] ss:$12 sps:$4 sm:$0xff]  }
 0x630   :  { %5690 = vmatprep.subr.bf16.mxu1 %v9013_v55  ;;  %1491 = vmatprep.subr.bf16.mxu0 %v6247_v23  ;;  %v7716_v23 = vld [vmem:[#allocation7 + $0x4] ss:$12 sps:$4 sm:$0xff]  }
 0x633   :  { %1492 = vmatpush1.bf16.msra.mxu0 %v6245_v3  ;;  %5691 = vmatpush3.bf16.msra.mxu1 %v6248_v31  ;;  %v7718_v3 = vld [vmem:[#allocation7] ss:$12 sps:$4 sm:$0xff]   ;;  %v7720_v31 = vld [vmem:[#allocation7 + $0x8] ss:$12 sps:$4 sm:$0xff]  }
 0x634   :  { %5692 = vmatprep.subr.bf16.mxu1 %v9013_v55  ;;  %1493 = vmatprep.subr.bf16.mxu0 %v6251_v18  ;;  %v7724_v18 = vld [vmem:[#allocation7 + $0x1c] ss:$12 sps:$4 sm:$0xff]  }
 0x637   :  { %1494 = vmatpush1.bf16.msra.mxu0 %v6249_v6  ;;  %5693 = vmatpush3.bf16.msra.mxu1 %v6252_v57  ;;  %v7730_v6 = vld [vmem:[#allocation7 + $0x18] ss:$12 sps:$4 sm:$0xff]   ;;  %v7732_v57 = vld [vmem:[#allocation7 + $0x20] ss:$12 sps:$4 sm:$0xff]  }
 0x638   :  { %1737 = vmatprep.subr.bf16.mxu0 %v6255_v39  ;;  %5698 = vmatprep.subr.bf16.mxu1 %v9013_v55  ;;  %v7736_v39 = vld [vmem:[#allocation7 + $0x34] ss:$12 sps:$4 sm:$0xff]  }
 0x6ec   :  { %v1233_v9 = vpop.f32.mrb[32].mxu0  ;;  %v1274_v56 = vpop.f32.mrb[32].mxu1 }
 0x6ed   :  { %v1234_v5 = vadd.f32 %v1233_v9, %v7406_v16  ;;  %v1235_v63 = vpop.f32.mrb[33].mxu0  ;;  %v5676_v11 = vpop.f32.mrb[33].mxu1  ;;  %v1275_v43 = vadd.f32 %v1274_v56, %v7416_v59  ;;  %v6259_v59 = vld [vmem:[#allocation18 + $0x1c] ss:$12 sps:$4 sm:$0xff]  }
 0x6ee   :  { %v1236_v51 = vadd.f32 %v1235_v63, %v7411_v21  ;;  %v1237_v7 = vpop.f32.mrb[34].mxu0  ;;  %v1277_v32 = vpop.f32.mrb[34].mxu1  ;;  %v7743_v9 = vld [vmem:[#allocation7 + $0x30] ss:$12 sps:$4 sm:$0xff]   ;;  %v7745_v56 = vld [vmem:[#allocation7 + $0x38] ss:$12 sps:$4 sm:$0xff]  }
 0x6ef   :  { %v1280_v1 = vadd.f32 %v1234_v5, %v7395_v28  ;;  %v1238_v13 = vpop.f32.mrb[35].mxu0  ;;  %v5677_v14 = vpop.f32.mrb[35].mxu1  ;;  %v7749_v5 = vld [vmem:[#allocation7 + $0x4c] ss:$12 sps:$4 sm:$0xff]   ;;  %v7753_v63 = vld [vmem:[#allocation7 + $0x48] ss:$12 sps:$4 sm:$0xff]  }
 0x6f0   :  { %v1287_v38 = vadd.f32 %v1236_v51, %v9015_v19  ;;  %v7755_v11 = vld [vmem:[#allocation7 + $0x50] ss:$12 sps:$4 sm:$0xff]   ;;  %v7763_v7 = vld [vmem:[#allocation7 + $0x60] ss:$12 sps:$4 sm:$0xff]   ;;  %v7765_v32 = vld [vmem:[#allocation7 + $0x68] ss:$12 sps:$4 sm:$0xff]  }
 0x6f1   :  { %v4939_v58 = vmul.f32 -1.442695, %v1280_v1  ;;  %v7759_v51 = vld [vmem:[#allocation7 + $0x64] ss:$12 sps:$4 sm:$0xff]   ;;  %v7769_v1 = vld [vmem:[#allocation7 + $0x7c] ss:$12 sps:$4 sm:$0xff]  }
 0x6f2   :  { %v4940_v42 = vmul.f32 -1.442695, %v1287_v38  ;;  %v7773_v13 = vld [vmem:[#allocation7 + $0x78] ss:$12 sps:$4 sm:$0xff]   ;;  %v7775_v14 = vld [vmem:[#allocation7 + $0x80] ss:$12 sps:$4 sm:$0xff]  }
 0x6f3   :  { %6463 = vpow2.f32 %v4939_v58  ;;  %v7779_v19 = vld [vmem:[#allocation7 + $0x94] ss:$12 sps:$4 sm:$0xff]   ;;  %v7783_v38 = vld [vmem:[#allocation7 + $0x90] ss:$12 sps:$4 sm:$0xff]   ;;  %v7785_v58 = vld [vmem:[#allocation7 + $0x98] ss:$12 sps:$4 sm:$0xff]  }
 0x6f4   :  { %6465 = vpow2.f32 %v4940_v42  ;;  %v7789_v42 = vld [vmem:[#allocation7 + $0xac] ss:$12 sps:$4 sm:$0xff]  }
 0x6fd   :  { %v6464_v40 = vpop.eup %6463 }
 0x6fe   :  { %v1284_v52 = vadd.f32 1.0, %v6464_v40  ;;  %v6466_v16 = vpop.eup %6465  ;;  %v7793_v40 = vld [vmem:[#allocation7 + $0xa8] ss:$12 sps:$4 sm:$0xff]  }
 0x6ff   :  { %v1291_v41 = vadd.f32 1.0, %v6466_v16  ;;  %v7799_v16 = vld [vmem:[#allocation10 + $0x4] ss:$12 sps:$4 sm:$0xff]  }
 0x700   :  { %6467 = vrcp.f32 %v1284_v52  ;;  %v7795_v52 = vld [vmem:[#allocation7 + $0xb0] ss:$12 sps:$4 sm:$0xff]  }
 0x701   :  { %6469 = vrcp.f32 %v1291_v41  ;;  %v7806_v41 = vld [vmem:[%s8907_s2] sm:$0xf] }
 0x70a   :  { %v6468_v21 = vpop.eup %6467 }
 0x70b   :  { %v1294_v44 = vmul.f32 %v6468_v21, %v1275_v43  ;;  %v6470_v46 = vpop.eup %6469  ;;  %v7808_v43 = vld [vmem:[#allocation10] ss:$12 sps:$4 sm:$0xff]   ;;  %v7810_v21 = vld [vmem:[#allocation10 + $0x8] ss:$12 sps:$4 sm:$0xff]  }
 0x70c   :  { %v1297_v48 = vsub.f32 1.0, %v6470_v46  ;;  %v1299_v50 = vmul.f32 %v6470_v46, %v7676_v30  ;;  %v6263_v30 = vld [vmem:[#allocation18 + $0x34] ss:$12 sps:$4 sm:$0xff]   ;;  %v7826_v46 = vld [vmem:[#allocation10 + $0x34] ss:$12 sps:$4 sm:$0xff]  }
 0x70d   :  { %v1295_v28 = vadd.f32 %v1294_v44, %v9016_v45  ;;  %v7814_v44 = vld [vmem:[#allocation10 + $0x1c] ss:$12 sps:$4 sm:$0xff]   ;;  %v7820_v45 = vld [vmem:[#allocation10 + $0x18] ss:$12 sps:$4 sm:$0xff]  }
 0x70f   :  { %6471 = vtanh.f32 %v1295_v28  ;;  %v7822_v28 = vld [vmem:[#allocation10 + $0x20] ss:$12 sps:$4 sm:$0xff]  }
 0x719   :  { %v6472_v47 = vpop.eup %6471 }
 0x71a   :  { %v1298_v20 = vmul.f32 %v6472_v47, %v1297_v48  ;;  %v7833_v48 = vld [vmem:[#allocation10 + $0x30] ss:$12 sps:$4 sm:$0xff]   ;;  %v7835_v47 = vld [vmem:[#allocation10 + $0x38] ss:$12 sps:$4 sm:$0xff]  }
 0x71c   :  { %v7698_v27 = vadd.f32 %v1299_v50, %v1298_v20  ;;  %v7839_v20 = vld [vmem:[#allocation10 + $0x4c] ss:$12 sps:$4 sm:$0xff]   ;;  %v7843_v50 = vld [vmem:[#allocation10 + $0x48] ss:$12 sps:$4 sm:$0xff]  }
 0x71d   :  { %9017 = vst [vmem:[#allocation27_spill] sm:$0xff] %v7839_v20  ;;  %9018 = vst [vmem:[#allocation28_spill] sm:$0xff] %v7843_v50 }
 0x71e   :  { %v7702_v29 = vpack.c.bf16 %v7698_v27, %v7698_v27 }
 0x720   :  { %1512 = vmatmul.mubr.bf16.vlgmr.msra.gmra.mrb[36].mxu0 %v7702_v29  ;;  %5695 = vmatmul.mubr.bf16.vlgmr.msra.gmra.mrb[36].mxu1 %v7702_v29 }
 0x721   :  { %1738 = vmatpush1.bf16.msra.mxu0 %v6253_v22  ;;  %5699 = vmatpush3.bf16.msra.mxu1 %v6256_v49  ;;  %v7845_v22 = vld [vmem:[#allocation10 + $0x50] ss:$12 sps:$4 sm:$0xff]  }
 0x722   :  { %1739 = vmatprep.subr.bf16.mxu0 %v6259_v59  ;;  %5700 = vmatprep.subr.bf16.mxu1 %v9013_v55  ;;  %9019 = vst [vmem:[#allocation29_spill] sm:$0xff] %v7845_v22  ;;  %v7849_v49 = vld [vmem:[#allocation10 + $0x64] ss:$12 sps:$4 sm:$0xff]   ;;  %v7853_v59 = vld [vmem:[#allocation10 + $0x60] ss:$12 sps:$4 sm:$0xff]  }
 0x723   :  { %1769 = vmatprep.mubr.bf16.mxu0 %v9014_v8  ;;  %5714 = vmatprep.mubr.msk.bf16.mxu1 %vm6843_vm0, %v9013_v55  ;;  %9020 = vst [vmem:[#allocation30_spill] sm:$0xff] %v7849_v49  ;;  %9021 = vst [vmem:[#allocation31_spill] sm:$0xff] %v7853_v59 }
 0x725   :  { %1740 = vmatpush1.bf16.msra.mxu0 %v6257_v26  ;;  %5701 = vmatpush3.bf16.msra.mxu1 %v6260_v10  ;;  %v7855_v26 = vld [vmem:[#allocation10 + $0x68] ss:$12 sps:$4 sm:$0xff]  }
 0x726   :  { %1741 = vmatprep.subr.bf16.mxu0 %v6263_v30  ;;  %5702 = vmatprep.subr.bf16.mxu1 %v9013_v55  ;;  %9022 = vst [vmem:[#allocation32_spill] sm:$0xff] %v7855_v26  ;;  %v7859_v10 = vld [vmem:[#allocation10 + $0x7c] ss:$12 sps:$4 sm:$0xff]   ;;  %v7863_v30 = vld [vmem:[#allocation10 + $0x78] ss:$12 sps:$4 sm:$0xff]  }
 0x727   :  { %9023 = vst [vmem:[#allocation33_spill] sm:$0xff] %v7859_v10  ;;  %9024 = vst [vmem:[#allocation34_spill] sm:$0xff] %v7863_v30 }
 0x729   :  { %1742 = vmatpush1.bf16.msra.mxu0 %v6261_v33  ;;  %5703 = vmatpush3.bf16.msra.mxu1 %v6264_v34  ;;  %v7865_v33 = vld [vmem:[#allocation10 + $0x80] ss:$12 sps:$4 sm:$0xff]  }
 0x72a   :  { %1743 = vmatprep.subr.bf16.mxu0 %v6267_v35  ;;  %5704 = vmatprep.subr.bf16.mxu1 %v9013_v55  ;;  %9025 = vst [vmem:[#allocation35_spill] sm:$0xff] %v7865_v33  ;;  %v7869_v34 = vld [vmem:[#allocation10 + $0x94] ss:$12 sps:$4 sm:$0xff]   ;;  %v7873_v35 = vld [vmem:[#allocation10 + $0x90] ss:$12 sps:$4 sm:$0xff]  }
 0x72b   :  { %9026 = vst [vmem:[#allocation36_spill] sm:$0xff] %v7869_v34  ;;  %9027 = vst [vmem:[#allocation37_spill] sm:$0xff] %v7873_v35 }
 0x72d   :  { %1744 = vmatpush1.bf16.msra.mxu0 %v6265_v36  ;;  %5705 = vmatpush3.bf16.msra.mxu1 %v6268_v37  ;;  %v7875_v36 = vld [vmem:[#allocation10 + $0x98] ss:$12 sps:$4 sm:$0xff]  }
 0x72e   :  { %1745 = vmatprep.subr.bf16.mxu0 %v6271_v17  ;;  %5706 = vmatprep.subr.bf16.mxu1 %v9013_v55  ;;  %9028 = vst [vmem:[#allocation38_spill] sm:$0xff] %v7875_v36  ;;  %v7879_v37 = vld [vmem:[#allocation10 + $0xac] ss:$12 sps:$4 sm:$0xff]   ;;  %v7883_v17 = vld [vmem:[#allocation10 + $0xa8] ss:$12 sps:$4 sm:$0xff]  }
 0x72f   :  { %9029 = vst [vmem:[#allocation39_spill] sm:$0xff] %v7879_v37  ;;  %9030 = vst [vmem:[#allocation40_spill] sm:$0xff] %v7883_v17 }
 0x731   :  { %1746 = vmatpush1.bf16.msra.mxu0 %v6269_v54  ;;  %5707 = vmatpush3.bf16.msra.mxu1 %v6272_v12  ;;  %v7885_v54 = vld [vmem:[#allocation10 + $0xb0] ss:$12 sps:$4 sm:$0xff]   ;;  %v7897_v12 = vld [vmem:[#allocation16 + $0x4] ss:$12 sps:$4 sm:$0xff]  }
 0x732   :  { %1747 = vmatprep.subr.bf16.mxu0 %v6275_v0  ;;  %5708 = vmatprep.subr.bf16.mxu1 %v9013_v55  ;;  %9031 = vst [vmem:[#allocation41_spill] sm:$0xff] %v7885_v54  ;;  %9032 = vst [vmem:[#allocation42_spill] sm:$0xff] %v7897_v12  ;;  %v7899_v0 = vld [vmem:[#allocation16] ss:$12 sps:$4 sm:$0xff]  }
 0x733   :  { %9033 = vst [vmem:[#allocation43_spill] sm:$0xff] %v7899_v0 }
 0x735   :  { %1748 = vmatpush1.bf16.msra.mxu0 %v6273_v60  ;;  %5709 = vmatpush3.bf16.msra.mxu1 %v6276_v15  ;;  %v7901_v60 = vld [vmem:[#allocation16 + $0x8] ss:$12 sps:$4 sm:$0xff]  }
 0x736   :  { %1749 = vmatprep.subr.bf16.mxu0 %v6279_v61  ;;  %5710 = vmatprep.subr.bf16.mxu1 %v9013_v55  ;;  %9034 = vst [vmem:[#allocation44_spill] sm:$0xff] %v7901_v60  ;;  %v7906_v15 = vld [vmem:[#allocation16 + $0x1c] ss:$12 sps:$4 sm:$0xff]   ;;  %v7911_v61 = vld [vmem:[#allocation16 + $0x20] ss:$12 sps:$4 sm:$0xff]  }
 0x737   :  { %9035 = vst [vmem:[#allocation45_spill] sm:$0xff] %v7906_v15  ;;  %9037 = vst [vmem:[#allocation47_spill] sm:$0xff] %v7911_v61 }
 0x739   :  { %1750 = vmatpush1.bf16.msra.mxu0 %v6277_v24  ;;  %5711 = vmatpush3.bf16.msra.mxu1 %v6280_v53  ;;  %v7916_v24 = vld [vmem:[#allocation16 + $0x34] ss:$12 sps:$4 sm:$0xff]   ;;  %v7919_v53 = vld [vmem:[#allocation16 + $0x30] ss:$12 sps:$4 sm:$0xff]  }
 0x73a   :  { %1751 = vmatprep.subr.bf16.mxu0 %v6283_v25  ;;  %5712 = vmatprep.subr.bf16.mxu1 %v9013_v55  ;;  %9038 = vst [vmem:[#allocation48_spill] sm:$0xff] %v7916_v24  ;;  %9039 = vst [vmem:[#allocation49_spill] sm:$0xff] %v7919_v53  ;;  %v7921_v25 = vld [vmem:[#allocation16 + $0x38] ss:$12 sps:$4 sm:$0xff]  }
 0x73b   :  { %9040 = vst [vmem:[#allocation50_spill] sm:$0xff] %v7921_v25 }
 0x73d   :  { %1752 = vmatpush1.bf16.msra.mxu0 %v6281_v62  ;;  %5713 = vmatpush3.bf16.msra.mxu1 %v6284_v2  ;;  %v7926_v62 = vld [vmem:[#allocation16 + $0x4c] ss:$12 sps:$4 sm:$0xff]   ;;  %v7929_v2 = vld [vmem:[#allocation16 + $0x48] ss:$12 sps:$4 sm:$0xff]  }
 0x73e   :  { %2092 = vmatprep.subr.bf16.mxu0 %v7716_v23  ;;  %5718 = vmatprep.subr.bf16.mxu1 %v9013_v55  ;;  %9041 = vst [vmem:[#allocation51_spill] sm:$0xff] %v7926_v62  ;;  %9042 = vst [vmem:[#allocation52_spill] sm:$0xff] %v7929_v2 }
 0x740   :  { %1770 = vmatmul.mubr.bf16.vlgmr.msra.gmra.mrb[40].mxu0 %v7702_v29  ;;  %5715 = vmatmul.mubr.bf16.vlgmr.msra.gmra.mrb[40].mxu1 %v7702_v29 }
 0x741   :  { %2093 = vmatpush1.bf16.msra.mxu0 %v7718_v3  ;;  %5719 = vmatpush3.bf16.msra.mxu1 %v7720_v31 }
 0x742   :  { %2094 = vmatprep.subr.bf16.mxu0 %v7724_v18  ;;  %5720 = vmatprep.subr.bf16.mxu1 %v9013_v55 }
 0x743   :  { %5734 = vmatprep.mubr.msk.bf16.mxu1 %vm6843_vm0, %v9013_v55  ;;  %2124 = vmatprep.mubr.bf16.mxu0 %v9014_v8 }
 0x745   :  { %2095 = vmatpush1.bf16.msra.mxu0 %v7730_v6  ;;  %5721 = vmatpush3.bf16.msra.mxu1 %v7732_v57 }
 0x746   :  { %2096 = vmatprep.subr.bf16.mxu0 %v7736_v39  ;;  %5722 = vmatprep.subr.bf16.mxu1 %v9013_v55 }
 0x749   :  { %2097 = vmatpush1.bf16.msra.mxu0 %v7743_v9  ;;  %5723 = vmatpush3.bf16.msra.mxu1 %v7745_v56 }
 0x74a   :  { %2098 = vmatprep.subr.bf16.mxu0 %v7749_v5  ;;  %5724 = vmatprep.subr.bf16.mxu1 %v9013_v55 }
 0x74d   :  { %2099 = vmatpush1.bf16.msra.mxu0 %v7753_v63  ;;  %5725 = vmatpush3.bf16.msra.mxu1 %v7755_v11 }
 0x74e   :  { %2100 = vmatprep.subr.bf16.mxu0 %v7759_v51  ;;  %5726 = vmatprep.subr.bf16.mxu1 %v9013_v55 }
 0x751   :  { %2101 = vmatpush1.bf16.msra.mxu0 %v7763_v7  ;;  %5727 = vmatpush3.bf16.msra.mxu1 %v7765_v32 }
 0x752   :  { %2102 = vmatprep.subr.bf16.mxu0 %v7769_v1  ;;  %5728 = vmatprep.subr.bf16.mxu1 %v9013_v55 }
 0x755   :  { %2103 = vmatpush1.bf16.msra.mxu0 %v7773_v13  ;;  %5729 = vmatpush3.bf16.msra.mxu1 %v7775_v14 }
 0x756   :  { %2104 = vmatprep.subr.bf16.mxu0 %v7779_v19  ;;  %5730 = vmatprep.subr.bf16.mxu1 %v9013_v55 }
 0x759   :  { %2105 = vmatpush1.bf16.msra.mxu0 %v7783_v38  ;;  %5731 = vmatpush3.bf16.msra.mxu1 %v7785_v58 }
 0x75a   :  { %2106 = vmatprep.subr.bf16.mxu0 %v7789_v42  ;;  %5732 = vmatprep.subr.bf16.mxu1 %v9013_v55 }
 0x75d   :  { %2107 = vmatpush1.bf16.msra.mxu0 %v7793_v40  ;;  %5733 = vmatpush3.bf16.msra.mxu1 %v7795_v52 }
 0x75e   :  { %2301 = vmatprep.subr.bf16.mxu0 %v7799_v16  ;;  %5738 = vmatprep.subr.bf16.mxu1 %v9013_v55 }
 0x760   :  { %5735 = vmatmul.mubr.bf16.vlgmr.msra.gmra.mrb[44].mxu1 %v7806_v41  ;;  %2125 = vmatmul.mubr.bf16.vlgmr.msra.gmra.mrb[44].mxu0 %v7806_v41 }
 0x761   :  { %2302 = vmatpush1.bf16.msra.mxu0 %v7808_v43  ;;  %5739 = vmatpush3.bf16.msra.mxu1 %v7810_v21 }
 0x762   :  { %2303 = vmatprep.subr.bf16.mxu0 %v7814_v44  ;;  %5740 = vmatprep.subr.bf16.mxu1 %v9013_v55 }
 0x763   :  { %2333 = vmatprep.mubr.bf16.mxu0 %v9014_v8  ;;  %5754 = vmatprep.mubr.msk.bf16.mxu1 %vm6843_vm0, %v9013_v55 }
 0x765   :  { %2304 = vmatpush1.bf16.msra.mxu0 %v7820_v45  ;;  %5741 = vmatpush3.bf16.msra.mxu1 %v7822_v28 }
 0x766   :  { %2305 = vmatprep.subr.bf16.mxu0 %v7826_v46  ;;  %5742 = vmatprep.subr.bf16.mxu1 %v9013_v55 }
 0x769   :  { %2306 = vmatpush1.bf16.msra.mxu0 %v7833_v48  ;;  %5743 = vmatpush3.bf16.msra.mxu1 %v7835_v47 }
 0x76a   :  { %2307 = vmatprep.subr.bf16.mxu0 %v7839_v20  ;;  %5744 = vmatprep.subr.bf16.mxu1 %v9013_v55 }
 0x76d   :  { %2308 = vmatpush1.bf16.msra.mxu0 %v7843_v50  ;;  %5745 = vmatpush3.bf16.msra.mxu1 %v7845_v22 }
 0x76e   :  { %2309 = vmatprep.subr.bf16.mxu0 %v7849_v49  ;;  %5746 = vmatprep.subr.bf16.mxu1 %v9013_v55 }
 0x771   :  { %2310 = vmatpush1.bf16.msra.mxu0 %v7853_v59  ;;  %5747 = vmatpush3.bf16.msra.mxu1 %v7855_v26  ;;  %v9059_v59 = vld [vmem:[#allocation26_spill] sm:$0xff] }
 0x772   :  { %2311 = vmatprep.subr.bf16.mxu0 %v7859_v10  ;;  %5748 = vmatprep.subr.bf16.mxu1 %v9013_v55  ;;  %v9058_v10 = vld [vmem:[#allocation25_spill] sm:$0xff] }
 0x775   :  { %2312 = vmatpush1.bf16.msra.mxu0 %v7863_v30  ;;  %5749 = vmatpush3.bf16.msra.mxu1 %v7865_v33 }
 0x776   :  { %2313 = vmatprep.subr.bf16.mxu0 %v7869_v34  ;;  %5750 = vmatprep.subr.bf16.mxu1 %v9013_v55 }
 0x779   :  { %2314 = vmatpush1.bf16.msra.mxu0 %v7873_v35  ;;  %5751 = vmatpush3.bf16.msra.mxu1 %v7875_v36  ;;  %v1334_v36 = vld [vmem:[#allocation12] sm:$0x7] }
 0x77a   :  { %2315 = vmatprep.subr.bf16.mxu0 %v7879_v37  ;;  %5752 = vmatprep.subr.bf16.mxu1 %v9013_v55  ;;  %v1339_v26 = vrot.slane %v1334_v36, %v9058_v10  ;;  %v1343_v49 = vrot.slane %v1334_v36, %v9059_v59 }
 0x77d   :  { %2316 = vmatpush1.bf16.msra.mxu0 %v7883_v17  ;;  %5753 = vmatpush3.bf16.msra.mxu1 %v7885_v54  ;;  %v7950_v54 = vld [vmem:[#allocation16 + $0x80] ss:$12 sps:$4 sm:$0xff]  }
 0x77e   :  { %5758 = vmatprep.subr.bf16.mxu1 %v9013_v55  ;;  %2532 = vmatprep.subr.bf16.mxu0 %v7897_v12  ;;  %v7944_v12 = vld [vmem:[#allocation16 + $0x7c] ss:$12 sps:$4 sm:$0xff]   ;;  %9049 = vst [vmem:[#allocation59_spill] sm:$0xff] %v7950_v54 }
 0x77f   :  { %9047 = vst [vmem:[#allocation57_spill] sm:$0xff] %v7944_v12 }
 0x780   :  { %2334 = vmatmul.mubr.bf16.vlgmr.msra.gmra.mrb[44].mxu0 %v7702_v29  ;;  %5755 = vmatmul.mubr.bf16.vlgmr.msra.gmra.mrb[48].mxu1 %v7702_v29  ;;  %v7909_v29 = vld [vmem:[#allocation16 + $0x18] ss:$12 sps:$4 sm:$0xff]  }
 0x781   :  { %2564 = vmatprep.mubr.bf16.mxu0 %v9014_v8  ;;  %5774 = vmatprep.mubr.msk.bf16.mxu1 %vm6843_vm0, %v9013_v55  ;;  %9036 = vst [vmem:[#allocation46_spill] sm:$0xff] %v7909_v29 }
 0x782   :  { %2533 = vmatpush1.bf16.msra.mxu0 %v7899_v0  ;;  %5759 = vmatpush3.bf16.msra.mxu1 %v7901_v60 }
 0x783   :  { %5760 = vmatprep.subr.bf16.mxu1 %v9013_v55  ;;  %2534 = vmatprep.subr.bf16.mxu0 %v7906_v15  ;;  %v7941_v15 = vld [vmem:[#allocation16 + $0x68] ss:$12 sps:$4 sm:$0xff]  }
 0x784   :  { %9046 = vst [vmem:[#allocation56_spill] sm:$0xff] %v7941_v15 }
 0x786   :  { %2535 = vmatpush1.bf16.msra.mxu0 %v7909_v29  ;;  %5761 = vmatpush3.bf16.msra.mxu1 %v7911_v61  ;;  %v7931_v61 = vld [vmem:[#allocation16 + $0x50] ss:$12 sps:$4 sm:$0xff]  }
 0x787   :  { %5762 = vmatprep.subr.bf16.mxu1 %v9013_v55  ;;  %2536 = vmatprep.subr.bf16.mxu0 %v7916_v24  ;;  %9043 = vst [vmem:[#allocation53_spill] sm:$0xff] %v7931_v61  ;;  %v7936_v29 = vld [vmem:[#allocation16 + $0x64] ss:$12 sps:$4 sm:$0xff]   ;;  %v7939_v24 = vld [vmem:[#allocation16 + $0x60] ss:$12 sps:$4 sm:$0xff]  }
 0x788   :  { %9044 = vst [vmem:[#allocation54_spill] sm:$0xff] %v7936_v29  ;;  %9045 = vst [vmem:[#allocation55_spill] sm:$0xff] %v7939_v24 }
 0x78a   :  { %2537 = vmatpush1.bf16.msra.mxu0 %v7919_v53  ;;  %5763 = vmatpush3.bf16.msra.mxu1 %v7921_v25 }
 0x78b   :  { %5764 = vmatprep.subr.bf16.mxu1 %v9013_v55  ;;  %2538 = vmatprep.subr.bf16.mxu0 %v7926_v62 }
 0x78e   :  { %2539 = vmatpush1.bf16.msra.mxu0 %v7929_v2  ;;  %5765 = vmatpush3.bf16.msra.mxu1 %v7931_v61  ;;  %v7948_v61 = vld [vmem:[#allocation16 + $0x78] ss:$12 sps:$4 sm:$0xff]  }
 0x78f   :  { %5766 = vmatprep.subr.bf16.mxu1 %v9013_v55  ;;  %2540 = vmatprep.subr.bf16.mxu0 %v7936_v29  ;;  %9048 = vst [vmem:[#allocation58_spill] sm:$0xff] %v7948_v61 }
 0x792   :  { %2541 = vmatpush1.bf16.msra.mxu0 %v7939_v24  ;;  %5767 = vmatpush3.bf16.msra.mxu1 %v7941_v15 }
 0x793   :  { %2542 = vmatprep.subr.bf16.mxu0 %v7944_v12  ;;  %5768 = vmatprep.subr.bf16.mxu1 %v9013_v55  ;;  %v7970_v12 = vld [vmem:[#allocation16 + $0xb0] ss:$12 sps:$4 sm:$0xff]  }
 0x794   :  { %9055 = vst [vmem:[#allocation65_spill] sm:$0xff] %v7970_v12 }
 0x796   :  { %2543 = vmatpush1.bf16.msra.mxu0 %v7948_v61  ;;  %5769 = vmatpush3.bf16.msra.mxu1 %v7950_v54  ;;  %v7974_v54 = vld [vmem:[#allocation15 + $0x4] ss:$12 sps:$4 sm:$0xff]  }
 0x797   :  { %5770 = vmatprep.subr.bf16.mxu1 %v9013_v55  ;;  %9056 = vst [vmem:[#allocation66_spill] sm:$0xff] %v7974_v54 }
 0x7f3   :  { %v1513_v53 = vpop.f32.mrb[36].mxu0  ;;  %v1554_v25 = vpop.f32.mrb[36].mxu1 }
 0x7f4   :  { %v1515_v60 = vpop.f32.mrb[37].mxu0  ;;  %v5696_v0 = vpop.f32.mrb[37].mxu1 }
 0x7f5   :  { %v1517_v62 = vpop.f32.mrb[38].mxu0  ;;  %v1557_v2 = vpop.f32.mrb[38].mxu1  ;;  %v7954_v0 = vld [vmem:[#allocation16 + $0x94] ss:$12 sps:$4 sm:$0xff]  }
 0x7f6   :  { %v1518_v17 = vpop.f32.mrb[39].mxu0  ;;  %v5697_v37 = vpop.f32.mrb[39].mxu1  ;;  %9050 = vst [vmem:[#allocation60_spill] sm:$0xff] %v7954_v0  ;;  %v7958_v62 = vld [vmem:[#allocation16 + $0x90] ss:$12 sps:$4 sm:$0xff]   ;;  %2544 = vmatprep.subr.bf16.mxu0 %v7954_v0 }
 0x7f7   :  { %9051 = vst [vmem:[#allocation61_spill] sm:$0xff] %v7958_v62  ;;  %v7960_v2 = vld [vmem:[#allocation16 + $0x98] ss:$12 sps:$4 sm:$0xff]   ;;  %2545 = vmatpush1.bf16.msra.mxu0 %v7958_v62  ;;  %v7968_v37 = vld [vmem:[#allocation16 + $0xa8] ss:$12 sps:$4 sm:$0xff]  }
 0x7f8   :  { %9052 = vst [vmem:[#allocation62_spill] sm:$0xff] %v7960_v2  ;;  %v7964_v17 = vld [vmem:[#allocation16 + $0xac] ss:$12 sps:$4 sm:$0xff]   ;;  %5771 = vmatpush3.bf16.msra.mxu1 %v7960_v2  ;;  %9054 = vst [vmem:[#allocation64_spill] sm:$0xff] %v7968_v37 }
 0x7f9   :  { %9053 = vst [vmem:[#allocation63_spill] sm:$0xff] %v7964_v17  ;;  %2546 = vmatprep.subr.bf16.mxu0 %v7964_v17  ;;  %5772 = vmatprep.subr.bf16.mxu1 %v9013_v55 }
 0x7fb   :  { %2547 = vmatpush1.bf16.msra.mxu0 %v7968_v37  ;;  %v1347_v37 = vrot.slane %v1334_v36, %v7378_v4 }
 0x7fc   :  { %5773 = vmatpush3.bf16.msra.mxu1 %v7970_v12  ;;  %2741 = vmatprep.subr.bf16.mxu0 %v7974_v54 }
 0x7fd   :  { %5778 = vmatprep.subr.bf16.mxu1 %v9013_v55  ;;  %v7987_v35 = vadd.f32 %v1554_v25, %v1347_v37 }
 0x7ff   :  { %9057 = vst [vmem:[#allocation67_spill] sm:$0xff] %v7987_v35 }
 0x813   :  { %v7980_v62 = vpop.f32.mrb[40].mxu0  ;;  %v7982_v2 = vpop.f32.mrb[40].mxu1 }
 0x814   :  { %v7984_v0 = vpop.f32.mrb[41].mxu0  ;;  %v5716_v61 = vpop.f32.mrb[41].mxu1 }
 0x815   :  { %v1775_v17 = vpop.f32.mrb[42].mxu0  ;;  %v1815_v15 = vpop.f32.mrb[42].mxu1  ;;  %v1882_v61 = vld [vmem:[#allocation13] sm:$0x7] }
 0x816   :  { %v1776_v24 = vpop.f32.mrb[43].mxu0  ;;  %v5717_v29 = vpop.f32.mrb[43].mxu1  ;;  %v1514_v17 = vadd.f32 %v1513_v53, %v1339_v26  ;;  %v1887_v15 = vrot.slane %v1882_v61, %v9058_v10 }
 0x817   :  { %v1516_v29 = vadd.f32 %v1515_v60, %v1343_v49  ;;  %v1891_v24 = vrot.slane %v1882_v61, %v9059_v59 }
 0x818   :  { %v7994_v22 = vadd.f32 %v1887_v15, %v1514_v17 }
 0x819   :  { %v7996_v50 = vadd.f32 %v1891_v24, %v1516_v29  ;;  %v8001_v29 = vrot.slane %v1882_v61, %v7378_v4  ;;  %v8009_v61 = vld [vmem:[#allocation15 + $0x8] ss:$12 sps:$4 sm:$0xff]  }
 0x833   :  { %v2167_v12 = vpop.f32.mrb[44].mxu1 }
 0x834   :  { %v2168_v54 = vadd.f32 %v2167_v12, %v7987_v35  ;;  %v5736_v34 = vpop.f32.mrb[45].mxu1 }
 0x835   :  { %v2170_v33 = vpop.f32.mrb[46].mxu1 }
 0x836   :  { %v5737_v30 = vpop.f32.mrb[47].mxu1 }
 0x853   :  { %v2335_v25 = vpop.f32.mrb[44].mxu0  ;;  %v2376_v37 = vpop.f32.mrb[48].mxu1 }
 0x854   :  { %v6099_v33 = vadd.f32 %v7994_v22, %v2335_v25  ;;  %v2337_v30 = vpop.f32.mrb[45].mxu0  ;;  %v5756_v34 = vpop.f32.mrb[49].mxu1  ;;  %v2377_v25 = vadd.f32 %v2376_v37, %v8001_v29 }
 0x855   :  { %v6101_v12 = vadd.f32 %v7996_v50, %v2337_v30  ;;  %v2339_v36 = vpop.f32.mrb[46].mxu0  ;;  %v2379_v35 = vpop.f32.mrb[50].mxu1 }
 0x856   :  { %v5037_v26 = vmul.f32 -1.442695, %v6099_v33  ;;  %v2340_v53 = vpop.f32.mrb[47].mxu0  ;;  %v5757_v20 = vpop.f32.mrb[51].mxu1 }
 0x857   :  { %v5038_v49 = vmul.f32 -1.442695, %v6101_v12 }
 0x858   :  { %6473 = vpow2.f32 %v5037_v26 }
 0x859   :  { %6475 = vpow2.f32 %v5038_v49  ;;  %v8007_v49 = vld [vmem:[#allocation15] ss:$12 sps:$4 sm:$0xff]  }
 0x862   :  { %v6474_v60 = vpop.eup %6473 }
 0x863   :  { %v2386_v17 = vadd.f32 1.0, %v6474_v60  ;;  %v6476_v15 = vpop.eup %6475  ;;  %v8015_v60 = vld [vmem:[#allocation15 + $0x1c] ss:$12 sps:$4 sm:$0xff]  }
 0x864   :  { %v2393_v24 = vadd.f32 1.0, %v6476_v15  ;;  %9060 = vst [vmem:[#allocation25_spill] sm:$0xff] %v8015_v60  ;;  %v8034_v15 = vld [vmem:[#allocation15 + $0x30] ss:$12 sps:$4 sm:$0xff]  }
 0x865   :  { %6477 = vrcp.f32 %v2386_v17  ;;  %v8027_v17 = vld [vmem:[#allocation15 + $0x34] ss:$12 sps:$4 sm:$0xff]   ;;  %9064 = vst [vmem:[#allocation70_spill] sm:$0xff] %v8034_v15 }
 0x866   :  { %6479 = vrcp.f32 %v2393_v24  ;;  %9063 = vst [vmem:[#allocation69_spill] sm:$0xff] %v8027_v17  ;;  %v8036_v24 = vld [vmem:[#allocation15 + $0x38] ss:$12 sps:$4 sm:$0xff]  }
 0x867   :  { %9065 = vst [vmem:[#allocation71_spill] sm:$0xff] %v8036_v24 }
 0x86f   :  { %v6478_v34 = vpop.eup %6477 }
 0x870   :  { %v2396_v30 = vmul.f32 %v6478_v34, %v2377_v25  ;;  %v6480_v33 = vpop.eup %6479  ;;  %v8040_v25 = vld [vmem:[#allocation15 + $0x4c] ss:$12 sps:$4 sm:$0xff]   ;;  %v8046_v34 = vld [vmem:[#allocation15 + $0x50] ss:$12 sps:$4 sm:$0xff]  }
 0x871   :  { %v2399_v20 = vsub.f32 1.0, %v6480_v33  ;;  %v2401_v26 = vmul.f32 %v6480_v33, %v7698_v27  ;;  %v8021_v27 = vld [vmem:[#allocation15 + $0x18] ss:$12 sps:$4 sm:$0xff]   ;;  %9066 = vst [vmem:[#allocation72_spill] sm:$0xff] %v8040_v25  ;;  %9068 = vst [vmem:[#allocation74_spill] sm:$0xff] %v8046_v34 }
 0x872   :  { %v2397_v35 = vadd.f32 %v2396_v30, %v2168_v54  ;;  %9061 = vst [vmem:[#allocation26_spill] sm:$0xff] %v8021_v27  ;;  %v8023_v54 = vld [vmem:[#allocation15 + $0x20] ss:$12 sps:$4 sm:$0xff]   ;;  %v8050_v30 = vld [vmem:[#allocation15 + $0x64] ss:$12 sps:$4 sm:$0xff]  }
 0x873   :  { %9062 = vst [vmem:[#allocation68_spill] sm:$0xff] %v8023_v54  ;;  %9069 = vst [vmem:[#allocation75_spill] sm:$0xff] %v8050_v30  ;;  %v8056_v33 = vld [vmem:[#allocation15 + $0x68] ss:$12 sps:$4 sm:$0xff]  }
 0x874   :  { %6481 = vtanh.f32 %v2397_v35  ;;  %v8054_v35 = vld [vmem:[#allocation15 + $0x60] ss:$12 sps:$4 sm:$0xff]   ;;  %9071 = vst [vmem:[#allocation77_spill] sm:$0xff] %v8056_v33 }
 0x875   :  { %9070 = vst [vmem:[#allocation76_spill] sm:$0xff] %v8054_v35 }
 0x87e   :  { %v6482_v36 = vpop.eup %6481 }
 0x87f   :  { %v2400_v12 = vmul.f32 %v6482_v36, %v2399_v20  ;;  %v8060_v20 = vld [vmem:[#allocation15 + $0x7c] ss:$12 sps:$4 sm:$0xff]   ;;  %v8064_v36 = vld [vmem:[#allocation15 + $0x78] ss:$12 sps:$4 sm:$0xff]  }
 0x880   :  { %9072 = vst [vmem:[#allocation78_spill] sm:$0xff] %v8060_v20  ;;  %9073 = vst [vmem:[#allocation79_spill] sm:$0xff] %v8064_v36 }
 0x881   :  { %v8005_v53 = vadd.f32 %v2401_v26, %v2400_v12  ;;  %v8066_v12 = vld [vmem:[#allocation15 + $0x80] ss:$12 sps:$4 sm:$0xff]  }
 0x882   :  { %9074 = vst [vmem:[#allocation80_spill] sm:$0xff] %v8066_v12  ;;  %v8070_v26 = vld [vmem:[#allocation15 + $0x94] ss:$12 sps:$4 sm:$0xff]  }
 0x883   :  { %v8013_v37 = vpack.c.bf16 %v8005_v53, %v8005_v53  ;;  %9075 = vst [vmem:[#allocation81_spill] sm:$0xff] %v8070_v26 }
 0x885   :  { %2565 = vmatmul.mubr.bf16.vlgmr.msra.gmra.mrb[48].mxu0 %v8013_v37  ;;  %5775 = vmatmul.mubr.bf16.vlgmr.msra.gmra.mrb[52].mxu1 %v8013_v37 }
 0x886   :  { %2742 = vmatpush1.bf16.msra.mxu0 %v8007_v49  ;;  %5779 = vmatpush3.bf16.msra.mxu1 %v8009_v61 }
 0x887   :  { %2743 = vmatprep.subr.bf16.mxu0 %v8015_v60  ;;  %5780 = vmatprep.subr.bf16.mxu1 %v9013_v55 }
 0x888   :  { %2773 = vmatprep.mubr.bf16.mxu0 %v9014_v8  ;;  %5794 = vmatprep.mubr.msk.bf16.mxu1 %vm6843_vm0, %v9013_v55  ;;  %v8044_v8 = vld [vmem:[#allocation15 + $0x48] ss:$12 sps:$4 sm:$0xff]  }
 0x889   :  { %9067 = vst [vmem:[#allocation73_spill] sm:$0xff] %v8044_v8 }
 0x88a   :  { %2744 = vmatpush1.bf16.msra.mxu0 %v8021_v27  ;;  %5781 = vmatpush3.bf16.msra.mxu1 %v8023_v54 }
 0x88b   :  { %2745 = vmatprep.subr.bf16.mxu0 %v8027_v17  ;;  %5782 = vmatprep.subr.bf16.mxu1 %v9013_v55 }
 0x88e   :  { %2746 = vmatpush1.bf16.msra.mxu0 %v8034_v15  ;;  %5783 = vmatpush3.bf16.msra.mxu1 %v8036_v24 }
 0x88f   :  { %2747 = vmatprep.subr.bf16.mxu0 %v8040_v25  ;;  %5784 = vmatprep.subr.bf16.mxu1 %v9013_v55 }
 0x892   :  { %2748 = vmatpush1.bf16.msra.mxu0 %v8044_v8  ;;  %5785 = vmatpush3.bf16.msra.mxu1 %v8046_v34  ;;  %v8076_v34 = vld [vmem:[#allocation15 + $0x98] ss:$12 sps:$4 sm:$0xff]  }
 0x893   :  { %2749 = vmatprep.subr.bf16.mxu0 %v8050_v30  ;;  %5786 = vmatprep.subr.bf16.mxu1 %v9013_v55  ;;  %v8074_v30 = vld [vmem:[#allocation15 + $0x90] ss:$12 sps:$4 sm:$0xff]   ;;  %9077 = vst [vmem:[#allocation83_spill] sm:$0xff] %v8076_v34 }
 0x894   :  { %9076 = vst [vmem:[#allocation82_spill] sm:$0xff] %v8074_v30 }
 0x896   :  { %2750 = vmatpush1.bf16.msra.mxu0 %v8054_v35  ;;  %5787 = vmatpush3.bf16.msra.mxu1 %v8056_v33  ;;  %v8080_v33 = vld [vmem:[#allocation15 + $0xac] ss:$12 sps:$4 sm:$0xff]   ;;  %v8086_v35 = vld [vmem:[#allocation15 + $0xb0] ss:$12 sps:$4 sm:$0xff]  }
 0x897   :  { %2751 = vmatprep.subr.bf16.mxu0 %v8060_v20  ;;  %5788 = vmatprep.subr.bf16.mxu1 %v9013_v55  ;;  %9078 = vst [vmem:[#allocation84_spill] sm:$0xff] %v8080_v33  ;;  %v8084_v20 = vld [vmem:[#allocation15 + $0xa8] ss:$12 sps:$4 sm:$0xff]   ;;  %9080 = vst [vmem:[#allocation86_spill] sm:$0xff] %v8086_v35 }
 0x898   :  { %9079 = vst [vmem:[#allocation85_spill] sm:$0xff] %v8084_v20 }
 0x89a   :  { %2752 = vmatpush1.bf16.msra.mxu0 %v8064_v36  ;;  %5789 = vmatpush3.bf16.msra.mxu1 %v8066_v12 }
 0x89b   :  { %2753 = vmatprep.subr.bf16.mxu0 %v8070_v26  ;;  %5790 = vmatprep.subr.bf16.mxu1 %v9013_v55 }
 0x89e   :  { %2754 = vmatpush1.bf16.msra.mxu0 %v8074_v30  ;;  %5791 = vmatpush3.bf16.msra.mxu1 %v8076_v34  ;;  %v5087_v34 = vld [vmem:[%s8907_s2 + $0x4] sm:$0xf] }
 0x89f   :  { %2755 = vmatprep.subr.bf16.mxu0 %v8080_v33  ;;  %5792 = vmatprep.subr.bf16.mxu1 %v9013_v55  ;;  %2830 = vst [vmem:[#allocation2] sm:$0xf] %v5087_v34 }
 0x8a2   :  { %2756 = vmatpush1.bf16.msra.mxu0 %v8084_v20  ;;  %5793 = vmatpush3.bf16.msra.mxu1 %v8086_v35  ;;  %v1592_v35 = vld [vmem:[%s8921_s16] sm:$0x7] }
 0x8a3   :  { %v1605_v25 = vrot.slane %v1592_v35, %v7378_v4  ;;  %v1601_v34 = vrot.slane %v1592_v35, %v9059_v59 }
 0x8a5   :  { %2774 = vmatmul.mubr.bf16.vlgmr.msra.gmra.mrb[52].mxu0 %v7806_v41  ;;  %5795 = vmatmul.mubr.bf16.vlgmr.msra.gmra.mrb[56].mxu1 %v7806_v41  ;;  %v1597_v41 = vrot.slane %v1592_v35, %v9058_v10  ;;  %v8112_v54 = vadd.f32 %v7984_v0, %v1601_v34 }
 0x8a7   :  { %v8106_v17 = vadd.f32 %v7980_v62, %v1597_v41 }
 0x958   :  { %v2566_v30 = vpop.f32.mrb[48].mxu0  ;;  %v2607_v26 = vpop.f32.mrb[52].mxu1 }
 0x959   :  { %v2568_v33 = vpop.f32.mrb[49].mxu0  ;;  %v5776_v12 = vpop.f32.mrb[53].mxu1 }
 0x95a   :  { %v2570_v55 = vpop.f32.mrb[50].mxu0  ;;  %v2610_v36 = vpop.f32.mrb[54].mxu1  ;;  %v8109_v12 = vadd.f32 %v7982_v2, %v1605_v25 }
 0x95b   :  { %v2571_v20 = vpop.f32.mrb[51].mxu0  ;;  %v5777_v8 = vpop.f32.mrb[55].mxu1 }
 0x978   :  { %v2775_v24 = vpop.f32.mrb[52].mxu0  ;;  %v2816_v15 = vpop.f32.mrb[56].mxu1  ;;  %2835 = sbr.rel (%p5089_p7) target bundleno = 3100 (0xc1c), region = 113 }
 0x979   :  { %v2776_v20 = vadd.f32 %v2775_v24, %v2566_v30  ;;  %v2817_v8 = vadd.f32 %v2816_v15, %v2607_v26  ;;  %v2777_v36 = vpop.f32.mrb[53].mxu0  ;;  %v5796_v55 = vpop.f32.mrb[57].mxu1 }
 0x97a   :  { %v2778_v10 = vadd.f32 %v2777_v36, %v2568_v33  ;;  %v2779_v27 = vpop.f32.mrb[54].mxu0  ;;  %v2819_v4 = vpop.f32.mrb[58].mxu1  ;;  %v6505_v55 = vld [vmem:[%s9082_s13 + $0x40] sm:$0xff] (!%p5089_p7)  }
 0x97b   :  { %v2822_v59 = vadd.f32 %v2776_v20, %v8106_v17  ;;  %v2824_v35 = vadd.f32 %v2817_v8, %v8109_v12  ;;  %v2780_v60 = vpop.f32.mrb[55].mxu0  ;;  %v5797_v62 = vpop.f32.mrb[59].mxu1  ;;  %v6507_v4 = vld [vmem:[%s9082_s13] sm:$0xff] (!%p5089_p7)   ;;  %5329 = vmatprep.subr.bf16.mxu0 (!%p5089_p7), %v6505_v55  ;;  %v6520_v55 = vld [vmem:[%s9082_s13 + $0x68] sm:$0xff] (!%p5089_p7)  }
 0x97c   :  { %v2823_v41 = vadd.f32 %v2778_v10, %v8112_v54  ;;  %v9081_v60 = vlaneseq (!%p5089_p7)  ;;  %v6506_v10 = vld [vmem:[%s9082_s13 + $0x80] sm:$0xff] (!%p5089_p7)   ;;  %v6509_v62 = vld [vmem:[%s9082_s13 + $0x88] sm:$0xff] (!%p5089_p7)   ;;  %5330 = vmatpush3.bf16.msra.mxu0 (!%p5089_p7), %v6507_v4 }
 0x97d   :  { %2825 = vst [vmem:[%s8922_s17] sm:$0xff] %v2822_v59  ;;  %2827 = vst [vmem:[%s8922_s17 + $0x10] sm:$0xff] %v2824_v35  ;;  %v6522_v4 = vld [vmem:[%s9082_s13 + $0x28] sm:$0xff] (!%p5089_p7)  }
 0x97e   :  { %2826 = vst [vmem:[%s8922_s17 + $0x8] sm:$0xff] %v2823_v41  ;;  %v2836_v0 = vmax.f32 (!%p5089_p7), %v2822_v59, %v2823_v41  ;;  %v8128_v27 = vand.u32 (!%p5089_p7), 127, %v9081_v60  ;;  %v6513_v60 = vld [vmem:[%s9082_s13 + $0x10] sm:$0xff] (!%p5089_p7)  }
 0x980   :  { %v2837_v2 = vmax.f32 %v2836_v0, %v2824_v35  ;;  %v8131_v15 = vadd.s32 128, %v8128_v27  ;;  %v8134_v24 = vadd.s32 256, %v8128_v27  ;;  %v6511_v0 = vld [vmem:[%s9082_s13 + $0x50] sm:$0xff]  }
 0x982   :  { %2838 = vmax.xlane.f32.xlu0 %v2837_v2  ;;  %v6512_v2 = vld [vmem:[%s9082_s13 + $0x90] sm:$0xff]  }
 0xa0f   :  { %v2839_v25 = vpop.xlane.xlu0 %2838 }
 0xa10   :  { %vm2844_vm1 = vcmp.eq.f32.partialorder %v2822_v59, %v2839_v25  ;;  %vm2845_vm2 = vcmp.eq.f32.partialorder %v2823_v41, %v2839_v25  ;;  %vm2846_vm3 = vcmp.eq.f32.partialorder %v2824_v35, %v2839_v25  ;;  %v6844_v59 = vmov 0.0   ;;  %v6508_v35 = vld [vmem:[%s9082_s13 + $0x48] sm:$0xff]   ;;  %v6514_v25 = vld [vmem:[%s9082_s13 + $0x58] sm:$0xff]  }
 0xa11   :  { %v2847_v30 = vsel %vm2844_vm1, %v8128_v27, 384  ;;  %v2848_v33 = vsel %vm2845_vm2, %v8131_v15, 384  ;;  %v2849_v26 = vsel %vm2846_vm3, %v8134_v24, 384  ;;  %5798 = vmatprep.subr.bf16.mxu1 %v6844_v59  ;;  %v6510_v41 = vld [vmem:[%s9082_s13 + $0x8] sm:$0xff]   ;;  %5331 = vmatprep.subr.bf16.mxu0 %v6508_v35  ;;  %v6523_v35 = vld [vmem:[%s9082_s13 + $0x70] sm:$0xff]  }
 0xa12   :  { %vm2850_vm4 = vcmp.lt.s32.totalorder %v2847_v30, %v2848_v33  ;;  %5799 = vmatpush3.bf16.msra.mxu1 %v6506_v10  ;;  %5332 = vmatpush3.bf16.msra.mxu0 %v6510_v41  ;;  %v6521_v10 = vld [vmem:[%s9082_s13 + $0xa8] sm:$0xff]  }
 0xa13   :  { %v2851_v34 = vsel %vm2850_vm4, %v2847_v30, %v2848_v33  ;;  %5800 = vmatprep.subr.bf16.mxu1 %v6844_v59  ;;  %5333 = vmatprep.subr.bf16.mxu0 %v6511_v0  ;;  %v6515_v30 = vld [vmem:[%s9082_s13 + $0x98] sm:$0xff]  }
 0xa14   :  { %vm2852_vm5 = vcmp.lt.s32.totalorder %v2851_v34, %v2849_v26  ;;  %v6516_v33 = vld [vmem:[%s9082_s13 + $0x18] sm:$0xff]   ;;  %5814 = vmatprep.mubr.msk.bf16.mxu1 %vm6845_vm7, %v6844_v59 }
 0xa15   :  { %v2853_v20 = vsel %vm2852_vm5, %v2851_v34, %v2849_v26  ;;  %v6517_v26 = vld [vmem:[%s9082_s13 + $0x60] sm:$0xff]  }
 0xa16   :  { %v2855_v8 = vshra.s32 %v2853_v20, 16  ;;  %5801 = vmatpush3.bf16.msra.mxu1 %v6509_v62  ;;  %5334 = vmatpush3.bf16.msra.mxu0 %v6513_v60  ;;  %v6518_v34 = vld [vmem:[%s9082_s13 + $0xa0] sm:$0xff]   ;;  %v6524_v62 = vld [vmem:[%s9082_s13 + $0xb0] sm:$0xff]   ;;  %v2854_v41 = vand.u32 65535, %v2853_v20  ;;  %v6528_v20 = vld [vmem:[%s9082_s13 + $0x38] sm:$0xff]  }
 0xa17   :  { %5802 = vmatprep.subr.bf16.mxu1 %v6844_v59  ;;  %5335 = vmatprep.subr.bf16.mxu0 %v6514_v25  ;;  %v6525_v25 = vld [vmem:[%s9082_s13 + $0x30] sm:$0xff]  }
 0xa18   :  { %v2857_v36 = vcvt.s32.f32 %v2855_v8  ;;  %v6519_v8 = vld [vmem:[%s9082_s13 + $0x20] sm:$0xff]  }
 0xa1a   :  { %2858 = vmin.xlane.f32.xlu0 %v2857_v36  ;;  %5803 = vmatpush3.bf16.msra.mxu1 %v6512_v2  ;;  %v2856_v2 = vcvt.s32.f32 %v2854_v41 }
 0xa1b   :  { %5804 = vmatprep.subr.bf16.mxu1 %v6844_v59  ;;  %5336 = vmatpush3.bf16.msra.mxu0 %v6516_v33  ;;  %v6527_v33 = vld [vmem:[%s9082_s13 + $0xb8] sm:$0xff]  }
 0xa1c   :  { %5337 = vmatprep.subr.bf16.mxu0 %v6517_v26 }
 0xa1e   :  { %5805 = vmatpush3.bf16.msra.mxu1 %v6515_v30  ;;  %v6526_v30 = vld [vmem:[%s9082_s13 + $0x78] sm:$0xff]  }
 0xa1f   :  { %5806 = vmatprep.subr.bf16.mxu1 %v6844_v59  ;;  %5338 = vmatpush3.bf16.msra.mxu0 %v6519_v8 }
 0xa20   :  { %5339 = vmatprep.subr.bf16.mxu0 %v6520_v55 }
 0xa22   :  { %5807 = vmatpush3.bf16.msra.mxu1 %v6518_v34 }
 0xa23   :  { %5808 = vmatprep.subr.bf16.mxu1 %v6844_v59  ;;  %5340 = vmatpush3.bf16.msra.mxu0 %v6522_v4 }
 0xa24   :  { %5341 = vmatprep.subr.bf16.mxu0 %v6523_v35 }
 0xa26   :  { %5809 = vmatpush3.bf16.msra.mxu1 %v6521_v10  ;;  %v6846_v10 = vmov 1.0|1.0  }
 0xa27   :  { %5810 = vmatprep.subr.bf16.mxu1 %v6844_v59  ;;  %5342 = vmatpush3.bf16.msra.mxu0 %v6525_v25 }
 0xa28   :  { %5343 = vmatprep.subr.bf16.mxu0 %v6526_v30 }
 0xa2a   :  { %5811 = vmatpush3.bf16.msra.mxu1 %v6524_v62 }
 0xa2b   :  { %5812 = vmatprep.subr.bf16.mxu1 %v6844_v59  ;;  %5344 = vmatpush3.bf16.msra.mxu0 %v6528_v20 }
 0xa2e   :  { %5813 = vmatpush3.bf16.msra.mxu1 %v6527_v33 }
 0xaa7   :  { %v2859_v0 = vpop.xlane.xlu0 %2858 }
 0xaa8   :  { %vm2860_vm6 = vcmp.eq.f32.partialorder %v2857_v36, %v2859_v0  ;;  %v2865_v36 = vcvt.f32.s32 %v2859_v0 }
 0xaa9   :  { %v2861_v60 = vsel %vm2860_vm6, %v2856_v2, inf }
 0xaaa   :  { %2862 = vmin.xlane.f32.xlu1 %v2861_v60  ;;  %v2866_v34 = vshll.u32 %v2865_v36, 16 }
 0xb37   :  { %v2863_v26 = vpop.xlane.xlu1 %2862 }
 0xb38   :  { %v2864_v8 = vcvt.f32.s32 %v2863_v26 }
 0xb3a   :  { %v2867_v55 = vadd.s32 %v2866_v34, %v2864_v8 }
 0xb3c   :  { %vm2869_vm8 = vcmp.eq.s32.totalorder %v8131_v15, %v2867_v55  ;;  %vm2870_vm9 = vcmp.eq.s32.totalorder %v8134_v24, %v2867_v55  ;;  %vm2868_vm10 = vcmp.eq.s32.totalorder %v8128_v27, %v2867_v55 }
 0xb3d   :  { %vm5117_vm11 = vmpackc.low %vm2869_vm8, %vm2869_vm8 }
 0xb3e   :  { %5118 = vmatprep.mubr.msk.bf16.mxu0 %vm5117_vm11, %v6846_v10  ;;  %vm5121_vm12 = vmpackc.low %vm2870_vm9, %vm2870_vm9 }
 0xb3f   :  { %5815 = vmatmul.mubr.msk.bf16.vlgmr.msra.gmra.mrb[0].mxu1 %vm5121_vm12, %v6846_v10  ;;  %vm5119_vm13 = vmpackc.low %vm2868_vm10, %vm2868_vm10 }
 0xb40   :  { %5120 = vmatmul.mubr.msk.bf16.vlgmr.msra.gmra.mrb[0].mxu0 %vm5119_vm13, %v6846_v10 }
 0xc12   :  { %v3146_v4 = vpop.f32.mrb[0].mxu1 }
 0xc13   :  { %v5345_v59 = vpop.f32.mrb[0].mxu0  ;;  %v5816_v35 = vpop.f32.mrb[1].mxu1 }
 0xc14   :  { %v5346_v62 = vpop.f32.mrb[1].mxu0  ;;  %v3149_v41 = vpop.f32.mrb[2].mxu1 }
 0xc15   :  { %v5347_v0 = vadd.f32 %v5346_v62, %v5345_v59  ;;  %v5348_v2 = vpop.f32.mrb[2].mxu0  ;;  %v5817_v60 = vpop.f32.mrb[3].mxu1 }
 0xc16   :  { %v5349_v15 = vpop.f32.mrb[3].mxu0 }
 0xc17   :  { %v3147_v25 = vadd.f32 %v5347_v0, %v3146_v4 }
 0xc19   :  { %v3152_v24 = vpack.c.bf16 %v3147_v25, %v3147_v25 }
 0xc1b   :  { %3153 = vst [vmem:[#allocation2] sm:$0xf] %v3152_v24 }
 0xc1c PF:  { %3155 = vmatprep.subr.bf16.mxu0 %v7716_v23  ;;  %v9083_v27 = vmov 0.0   ;;  %v5128_v33 = vld [vmem:[%s8907_s2 + $0x8] sm:$0xf]  ;;  %v9084_v20 = vmov 0   ;;  %v9085_v36 = vld [vmem:[#allocation27_spill] sm:$0xff]  ;;  %v9087_v34 = vld [vmem:[#allocation29_spill] sm:$0xff] }
 0xc1d   :  { %5818 = vmatprep.subr.bf16.mxu1 %v9083_v27  ;;  %3156 = vmatpush1.bf16.msra.mxu0 %v7718_v3  ;;  %v9086_v26 = vld [vmem:[#allocation28_spill] sm:$0xff]  ;;  %v9088_v8 = vld [vmem:[#allocation30_spill] sm:$0xff]  ;;  %v9089_v55 = vld [vmem:[#allocation31_spill] sm:$0xff]  ;;  %s5129_s30 = sld [smem:[#allocation3 + $0x2]] }
 0xc1e   :  { %5819 = vmatpush3.bf16.msra.mxu1 %v7720_v31  ;;  %3157 = vmatprep.subr.bf16.mxu0 %v7724_v18  ;;  %v9090_v10 = vld [vmem:[#allocation32_spill] sm:$0xff]  ;;  %v9091_v4 = vld [vmem:[#allocation33_spill] sm:$0xff]  ;;  %v9092_v59 = vld [vmem:[#allocation34_spill] sm:$0xff] }
 0xc1f   :  { %5820 = vmatprep.subr.bf16.mxu1 %v9083_v27  ;;  %3187 = vmatprep.mubr.bf16.mxu0 %v9084_v20  ;;  %v9093_v35 = vld [vmem:[#allocation35_spill] sm:$0xff]  ;;  %v9094_v62 = vld [vmem:[#allocation36_spill] sm:$0xff]  ;;  %v9095_v41 = vld [vmem:[#allocation37_spill] sm:$0xff] }
 0xc20   :  { %5834 = vmatprep.mubr.msk.bf16.mxu1 %vm6843_vm0, %v9083_v27  ;;  %v9096_v0 = vld [vmem:[#allocation38_spill] sm:$0xff]  ;;  %v9097_v2 = vld [vmem:[#allocation39_spill] sm:$0xff]  ;;  %v9098_v60 = vld [vmem:[#allocation40_spill] sm:$0xff] }
 0xc21   :  { %3158 = vmatpush1.bf16.msra.mxu0 %v7730_v6  ;;  %v9099_v15 = vld [vmem:[#allocation41_spill] sm:$0xff]  ;;  %v9100_v25 = vld [vmem:[#allocation42_spill] sm:$0xff]  ;;  %v9101_v24 = vld [vmem:[#allocation43_spill] sm:$0xff] }
 0xc22   :  { %v8216_v30 = vld [vmem:[#allocation2] sm:$0xf]  ;;  %5821 = vmatpush3.bf16.msra.mxu1 %v7732_v57  ;;  %3159 = vmatprep.subr.bf16.mxu0 %v7736_v39 }
 0xc23   :  { %3510 = vst [vmem:[#allocation2] sm:$0xf] %v5128_v33  ;;  %5822 = vmatprep.subr.bf16.mxu1 %v9083_v27  ;;  %v9102_v33 = vld [vmem:[#allocation44_spill] sm:$0xff]  ;;  %p5130_p8 = scmp.ne.s32.totalorder %s5129_s30, 0 }
 0xc24   :  { %s9148_s20 = sld [smem:[#allocation89_spill]] (!%p5130_p8)  ;;  %vm6848_vm5 = vmmov (!%p5130_p8), 0  }
 0xc25   :  { %3160 = vmatpush1.bf16.msra.mxu0 %v7743_v9 }
 0xc26   :  { %5823 = vmatpush3.bf16.msra.mxu1 %v7745_v56  ;;  %3161 = vmatprep.subr.bf16.mxu0 %v7749_v5 }
 0xc27   :  { %5824 = vmatprep.subr.bf16.mxu1 %v9083_v27 }
 0xc29   :  { %3162 = vmatpush1.bf16.msra.mxu0 %v7753_v63 }
 0xc2a   :  { %5825 = vmatpush3.bf16.msra.mxu1 %v7755_v11  ;;  %3163 = vmatprep.subr.bf16.mxu0 %v7759_v51 }
 0xc2b   :  { %5826 = vmatprep.subr.bf16.mxu1 %v9083_v27 }
 0xc2d   :  { %3164 = vmatpush1.bf16.msra.mxu0 %v7763_v7 }
 0xc2e   :  { %5827 = vmatpush3.bf16.msra.mxu1 %v7765_v32  ;;  %3165 = vmatprep.subr.bf16.mxu0 %v7769_v1 }
 0xc2f   :  { %5828 = vmatprep.subr.bf16.mxu1 %v9083_v27 }
 0xc31   :  { %3166 = vmatpush1.bf16.msra.mxu0 %v7773_v13 }
 0xc32   :  { %5829 = vmatpush3.bf16.msra.mxu1 %v7775_v14  ;;  %3167 = vmatprep.subr.bf16.mxu0 %v7779_v19 }
 0xc33   :  { %5830 = vmatprep.subr.bf16.mxu1 %v9083_v27 }
 0xc35   :  { %3168 = vmatpush1.bf16.msra.mxu0 %v7783_v38 }
 0xc36   :  { %5831 = vmatpush3.bf16.msra.mxu1 %v7785_v58  ;;  %3169 = vmatprep.subr.bf16.mxu0 %v7789_v42 }
 0xc37   :  { %5832 = vmatprep.subr.bf16.mxu1 %v9083_v27 }
 0xc39   :  { %3170 = vmatpush1.bf16.msra.mxu0 %v7793_v40 }
 0xc3a   :  { %5833 = vmatpush3.bf16.msra.mxu1 %v7795_v52  ;;  %3236 = vmatprep.subr.bf16.mxu0 %v7799_v16 }
 0xc3b   :  { %5838 = vmatprep.subr.bf16.mxu1 %v9083_v27 }
 0xc3c   :  { %3188 = vmatmul.mubr.bf16.vlgmr.msra.gmra.mrb[0].mxu0 %v8216_v30 }
 0xc3d   :  { %5835 = vmatmul.mubr.bf16.vlgmr.msra.gmra.mrb[0].mxu1 %v8216_v30  ;;  %3237 = vmatpush1.bf16.msra.mxu0 %v7808_v43 }
 0xc3e   :  { %5839 = vmatpush3.bf16.msra.mxu1 %v7810_v21  ;;  %3238 = vmatprep.subr.bf16.mxu0 %v7814_v44 }
 0xc3f   :  { %5840 = vmatprep.subr.bf16.mxu1 %v9083_v27  ;;  %3268 = vmatprep.mubr.bf16.mxu0 %v9084_v20 }
 0xc40   :  { %5854 = vmatprep.mubr.msk.bf16.mxu1 %vm6843_vm0, %v9083_v27 }
 0xc41   :  { %3239 = vmatpush1.bf16.msra.mxu0 %v7820_v45 }
 0xc42   :  { %5841 = vmatpush3.bf16.msra.mxu1 %v7822_v28  ;;  %3240 = vmatprep.subr.bf16.mxu0 %v7826_v46 }
 0xc43   :  { %5842 = vmatprep.subr.bf16.mxu1 %v9083_v27 }
 0xc45   :  { %3241 = vmatpush1.bf16.msra.mxu0 %v7833_v48 }
 0xc46   :  { %5843 = vmatpush3.bf16.msra.mxu1 %v7835_v47  ;;  %3242 = vmatprep.subr.bf16.mxu0 %v9085_v36  ;;  %v9103_v36 = vld [vmem:[#allocation45_spill] sm:$0xff] }
 0xc47   :  { %5844 = vmatprep.subr.bf16.mxu1 %v9083_v27 }
 0xc49   :  { %3243 = vmatpush1.bf16.msra.mxu0 %v9086_v26  ;;  %v9104_v26 = vld [vmem:[#allocation46_spill] sm:$0xff] }
 0xc4a   :  { %5845 = vmatpush3.bf16.msra.mxu1 %v9087_v34  ;;  %3244 = vmatprep.subr.bf16.mxu0 %v9088_v8  ;;  %v9105_v34 = vld [vmem:[#allocation47_spill] sm:$0xff]  ;;  %v9106_v8 = vld [vmem:[#allocation48_spill] sm:$0xff] }
 0xc4b   :  { %5846 = vmatprep.subr.bf16.mxu1 %v9083_v27 }
 0xc4d   :  { %3245 = vmatpush1.bf16.msra.mxu0 %v9089_v55  ;;  %v9108_v55 = vld [vmem:[#allocation50_spill] sm:$0xff] }
 0xc4e   :  { %5847 = vmatpush3.bf16.msra.mxu1 %v9090_v10  ;;  %3246 = vmatprep.subr.bf16.mxu0 %v9091_v4  ;;  %v9109_v10 = vld [vmem:[#allocation51_spill] sm:$0xff]  ;;  %v9110_v4 = vld [vmem:[#allocation52_spill] sm:$0xff] }
 0xc4f   :  { %5848 = vmatprep.subr.bf16.mxu1 %v9083_v27 }
 0xc51   :  { %3247 = vmatpush1.bf16.msra.mxu0 %v9092_v59  ;;  %v9111_v59 = vld [vmem:[#allocation53_spill] sm:$0xff] }
 0xc52   :  { %5849 = vmatpush3.bf16.msra.mxu1 %v9093_v35  ;;  %3248 = vmatprep.subr.bf16.mxu0 %v9094_v62  ;;  %v9112_v35 = vld [vmem:[#allocation54_spill] sm:$0xff]  ;;  %v9113_v62 = vld [vmem:[#allocation55_spill] sm:$0xff] }
 0xc53   :  { %5850 = vmatprep.subr.bf16.mxu1 %v9083_v27 }
 0xc55   :  { %3249 = vmatpush1.bf16.msra.mxu0 %v9095_v41  ;;  %v9114_v41 = vld [vmem:[#allocation56_spill] sm:$0xff] }
 0xc56   :  { %5851 = vmatpush3.bf16.msra.mxu1 %v9096_v0  ;;  %3250 = vmatprep.subr.bf16.mxu0 %v9097_v2  ;;  %v9115_v0 = vld [vmem:[#allocation57_spill] sm:$0xff]  ;;  %v9116_v2 = vld [vmem:[#allocation58_spill] sm:$0xff] }
 0xc57   :  { %5852 = vmatprep.subr.bf16.mxu1 %v9083_v27 }
 0xc59   :  { %3251 = vmatpush1.bf16.msra.mxu0 %v9098_v60  ;;  %v9117_v60 = vld [vmem:[#allocation59_spill] sm:$0xff] }
 0xc5a   :  { %5853 = vmatpush3.bf16.msra.mxu1 %v9099_v15  ;;  %3339 = vmatprep.subr.bf16.mxu0 %v9100_v25  ;;  %v9118_v15 = vld [vmem:[#allocation60_spill] sm:$0xff]  ;;  %v9119_v25 = vld [vmem:[#allocation61_spill] sm:$0xff] }
 0xc5b   :  { %5858 = vmatprep.subr.bf16.mxu1 %v9083_v27 }
 0xc5c   :  { %3269 = vmatmul.mubr.bf16.vlgmr.msra.gmra.mrb[0].mxu0 %v8013_v37 }
 0xc5d   :  { %5855 = vmatmul.mubr.bf16.vlgmr.msra.gmra.mrb[4].mxu1 %v8013_v37  ;;  %3340 = vmatpush1.bf16.msra.mxu0 %v9101_v24  ;;  %v9107_v37 = vld [vmem:[#allocation49_spill] sm:$0xff]  ;;  %v9120_v24 = vld [vmem:[#allocation62_spill] sm:$0xff] }
 0xc5e   :  { %5859 = vmatpush3.bf16.msra.mxu1 %v9102_v33  ;;  %3341 = vmatprep.subr.bf16.mxu0 %v9103_v36  ;;  %v9121_v33 = vld [vmem:[#allocation63_spill] sm:$0xff]  ;;  %v9122_v36 = vld [vmem:[#allocation64_spill] sm:$0xff] }
 0xc5f   :  { %5860 = vmatprep.subr.bf16.mxu1 %v9083_v27  ;;  %3371 = vmatprep.mubr.bf16.mxu0 %v9084_v20 }
 0xc60   :  { %5874 = vmatprep.mubr.msk.bf16.mxu1 %vm6843_vm0, %v9083_v27 }
 0xc61   :  { %3342 = vmatpush1.bf16.msra.mxu0 %v9104_v26  ;;  %v9123_v26 = vld [vmem:[#allocation65_spill] sm:$0xff] }
 0xc62   :  { %5861 = vmatpush3.bf16.msra.mxu1 %v9105_v34  ;;  %3343 = vmatprep.subr.bf16.mxu0 %v9106_v8  ;;  %v9124_v34 = vld [vmem:[#allocation66_spill] sm:$0xff] }
 0xc63   :  { %5862 = vmatprep.subr.bf16.mxu1 %v9083_v27 }
 0xc65   :  { %3344 = vmatpush1.bf16.msra.mxu0 %v9107_v37 }
 0xc66   :  { %5863 = vmatpush3.bf16.msra.mxu1 %v9108_v55  ;;  %3345 = vmatprep.subr.bf16.mxu0 %v9109_v10 }
 0xc67   :  { %5864 = vmatprep.subr.bf16.mxu1 %v9083_v27 }
 0xc69   :  { %3346 = vmatpush1.bf16.msra.mxu0 %v9110_v4 }
 0xc6a   :  { %5865 = vmatpush3.bf16.msra.mxu1 %v9111_v59  ;;  %3347 = vmatprep.subr.bf16.mxu0 %v9112_v35 }
 0xc6b   :  { %5866 = vmatprep.subr.bf16.mxu1 %v9083_v27 }
 0xc6d   :  { %3348 = vmatpush1.bf16.msra.mxu0 %v9113_v62 }
 0xc6e   :  { %5867 = vmatpush3.bf16.msra.mxu1 %v9114_v41  ;;  %3349 = vmatprep.subr.bf16.mxu0 %v9115_v0 }
 0xc6f   :  { %5868 = vmatprep.subr.bf16.mxu1 %v9083_v27 }
 0xc71   :  { %3350 = vmatpush1.bf16.msra.mxu0 %v9116_v2 }
 0xc72   :  { %5869 = vmatpush3.bf16.msra.mxu1 %v9117_v60  ;;  %3351 = vmatprep.subr.bf16.mxu0 %v9118_v15 }
 0xc73   :  { %5870 = vmatprep.subr.bf16.mxu1 %v9083_v27 }
 0xc75   :  { %3352 = vmatpush1.bf16.msra.mxu0 %v9119_v25 }
 0xc76   :  { %5871 = vmatpush3.bf16.msra.mxu1 %v9120_v24  ;;  %3353 = vmatprep.subr.bf16.mxu0 %v9121_v33 }
 0xc77   :  { %5872 = vmatprep.subr.bf16.mxu1 %v9083_v27 }
 0xc79   :  { %3354 = vmatpush1.bf16.msra.mxu0 %v9122_v36 }
 0xc7a   :  { %5873 = vmatpush3.bf16.msra.mxu1 %v9123_v26  ;;  %3420 = vmatprep.subr.bf16.mxu0 %v9124_v34 }
 0xc7b   :  { %5878 = vmatprep.subr.bf16.mxu1 %v9083_v27 }
 0xd10   :  { %v3230_v8 = vpop.f32.mrb[0].mxu1 }
 0xd11   :  { %v5836_v37 = vpop.f32.mrb[1].mxu1 }
 0xd12   :  { %v3233_v55 = vpop.f32.mrb[2].mxu1 }
 0xd13   :  { %v5837_v10 = vpop.f32.mrb[3].mxu1 }
 0xd2f   :  { %v3270_v4 = vpop.f32.mrb[0].mxu0 }
 0xd30   :  { %v3311_v59 = vpop.f32.mrb[4].mxu1  ;;  %v6107_v35 = vadd.f32 %v7994_v22, %v3270_v4  ;;  %v3272_v62 = vpop.f32.mrb[1].mxu0  ;;  %v9125_v4 = vld [vmem:[#allocation67_spill] sm:$0xff] }
 0xd31   :  { %v5856_v41 = vpop.f32.mrb[5].mxu1  ;;  %v3274_v0 = vpop.f32.mrb[2].mxu0  ;;  %v6109_v24 = vadd.f32 %v7996_v50, %v3272_v62  ;;  %v3312_v55 = vadd.f32 %v3311_v59, %v8001_v29  ;;  %v9128_v59 = vld [vmem:[#allocation68_spill] sm:$0xff] }
 0xd32   :  { %v3314_v2 = vpop.f32.mrb[6].mxu1  ;;  %v5123_v60 = vmul.f32 -1.442695, %v6107_v35  ;;  %v3275_v15 = vpop.f32.mrb[3].mxu0  ;;  %v3231_v41 = vadd.f32 %v3230_v8, %v9125_v4  ;;  %v9126_v8 = vld [vmem:[#allocation25_spill] sm:$0xff]  ;;  %v9136_v4 = vld [vmem:[#allocation76_spill] sm:$0xff] }
 0xd33   :  { %v5857_v25 = vpop.f32.mrb[7].mxu1  ;;  %v5124_v33 = vmul.f32 -1.442695, %v6109_v24 }
 0xd34   :  { %6529 = vpow2.f32 %v5123_v60 }
 0xd35   :  { %6531 = vpow2.f32 %v5124_v33 }
 0xd3e   :  { %v6530_v36 = vpop.eup %6529 }
 0xd3f   :  { %v3321_v26 = vadd.f32 1.0, %v6530_v36  ;;  %v6532_v34 = vpop.eup %6531  ;;  %v9129_v36 = vld [vmem:[#allocation69_spill] sm:$0xff] }
 0xd40   :  { %v3328_v37 = vadd.f32 1.0, %v6532_v34  ;;  %v9131_v34 = vld [vmem:[#allocation71_spill] sm:$0xff] }
 0xd41   :  { %6533 = vrcp.f32 %v3321_v26  ;;  %v9130_v26 = vld [vmem:[#allocation70_spill] sm:$0xff] }
 0xd42   :  { %6535 = vrcp.f32 %v3328_v37  ;;  %v9132_v37 = vld [vmem:[#allocation72_spill] sm:$0xff] }
 0xd4b   :  { %v6534_v10 = vpop.eup %6533 }
 0xd4c   :  { %v3331_v0 = vmul.f32 %v6534_v10, %v3312_v55  ;;  %v6536_v2 = vpop.eup %6535  ;;  %v9134_v55 = vld [vmem:[#allocation74_spill] sm:$0xff]  ;;  %v9135_v10 = vld [vmem:[#allocation75_spill] sm:$0xff] }
 0xd4d   :  { %v3334_v15 = vsub.f32 1.0, %v6536_v2  ;;  %v3336_v25 = vmul.f32 %v6536_v2, %v8005_v53  ;;  %v9127_v53 = vld [vmem:[#allocation26_spill] sm:$0xff]  ;;  %v9140_v2 = vld [vmem:[#allocation80_spill] sm:$0xff] }
 0xd4e   :  { %v3332_v35 = vadd.f32 %v3331_v0, %v3231_v41  ;;  %v9137_v41 = vld [vmem:[#allocation77_spill] sm:$0xff]  ;;  %v9138_v0 = vld [vmem:[#allocation78_spill] sm:$0xff] }
 0xd50   :  { %6537 = vtanh.f32 %v3332_v35  ;;  %v9139_v35 = vld [vmem:[#allocation79_spill] sm:$0xff] }
 0xd5a   :  { %v6538_v62 = vpop.eup %6537 }
 0xd5b   :  { %v3335_v60 = vmul.f32 %v6538_v62, %v3334_v15  ;;  %v9141_v15 = vld [vmem:[#allocation81_spill] sm:$0xff]  ;;  %v9142_v62 = vld [vmem:[#allocation82_spill] sm:$0xff] }
 0xd5d   :  { %v8335_v24 = vadd.f32 %v3336_v25, %v3335_v60  ;;  %v9143_v60 = vld [vmem:[#allocation83_spill] sm:$0xff]  ;;  %v9144_v25 = vld [vmem:[#allocation84_spill] sm:$0xff] }
 0xd5f   :  { %v8339_v33 = vpack.c.bf16 %v8335_v24, %v8335_v24 }
 0xd61   :  { %3372 = vmatmul.mubr.bf16.vlgmr.msra.gmra.mrb[4].mxu0 %v8339_v33  ;;  %5875 = vmatmul.mubr.bf16.vlgmr.msra.gmra.mrb[8].mxu1 %v8339_v33 }
 0xd62   :  { %3421 = vmatpush1.bf16.msra.mxu0 %v8007_v49  ;;  %5879 = vmatpush3.bf16.msra.mxu1 %v8009_v61 }
 0xd63   :  { %3422 = vmatprep.subr.bf16.mxu0 %v9126_v8  ;;  %5880 = vmatprep.subr.bf16.mxu1 %v9083_v27  ;;  %v9145_v8 = vld [vmem:[#allocation85_spill] sm:$0xff] }
 0xd64   :  { %3452 = vmatprep.mubr.bf16.mxu0 %v9084_v20  ;;  %5894 = vmatprep.mubr.msk.bf16.mxu1 %vm6843_vm0, %v9083_v27  ;;  %v9133_v20 = vld [vmem:[#allocation73_spill] sm:$0xff] }
 0xd66   :  { %3423 = vmatpush1.bf16.msra.mxu0 %v9127_v53  ;;  %5881 = vmatpush3.bf16.msra.mxu1 %v9128_v59  ;;  %v9146_v53 = vld [vmem:[#allocation86_spill] sm:$0xff] }
 0xd67   :  { %3424 = vmatprep.subr.bf16.mxu0 %v9129_v36  ;;  %5882 = vmatprep.subr.bf16.mxu1 %v9083_v27 }
 0xd6a   :  { %3425 = vmatpush1.bf16.msra.mxu0 %v9130_v26  ;;  %5883 = vmatpush3.bf16.msra.mxu1 %v9131_v34 }
 0xd6b   :  { %3426 = vmatprep.subr.bf16.mxu0 %v9132_v37  ;;  %5884 = vmatprep.subr.bf16.mxu1 %v9083_v27 }
 0xd6e   :  { %3427 = vmatpush1.bf16.msra.mxu0 %v9133_v20  ;;  %5885 = vmatpush3.bf16.msra.mxu1 %v9134_v55 }
 0xd6f   :  { %3428 = vmatprep.subr.bf16.mxu0 %v9135_v10  ;;  %5886 = vmatprep.subr.bf16.mxu1 %v9083_v27 }
 0xd72   :  { %3429 = vmatpush1.bf16.msra.mxu0 %v9136_v4  ;;  %5887 = vmatpush3.bf16.msra.mxu1 %v9137_v41 }
 0xd73   :  { %3430 = vmatprep.subr.bf16.mxu0 %v9138_v0  ;;  %5888 = vmatprep.subr.bf16.mxu1 %v9083_v27 }
 0xd76   :  { %3431 = vmatpush1.bf16.msra.mxu0 %v9139_v35  ;;  %5889 = vmatpush3.bf16.msra.mxu1 %v9140_v2 }
 0xd77   :  { %3432 = vmatprep.subr.bf16.mxu0 %v9141_v15  ;;  %5890 = vmatprep.subr.bf16.mxu1 %v9083_v27 }
 0xd7a   :  { %3433 = vmatpush1.bf16.msra.mxu0 %v9142_v62  ;;  %5891 = vmatpush3.bf16.msra.mxu1 %v9143_v60 }
 0xd7b   :  { %3434 = vmatprep.subr.bf16.mxu0 %v9144_v25  ;;  %5892 = vmatprep.subr.bf16.mxu1 %v9083_v27 }
 0xd7e   :  { %3435 = vmatpush1.bf16.msra.mxu0 %v9145_v8  ;;  %5893 = vmatpush3.bf16.msra.mxu1 %v9146_v53 }
 0xd81   :  { %3453 = vmatmul.mubr.bf16.vlgmr.msra.gmra.mrb[8].mxu0 %v8216_v30  ;;  %5895 = vmatmul.mubr.bf16.vlgmr.msra.gmra.mrb[12].mxu1 %v8216_v30 }
 0xe34   :  { %v3373_v59 = vpop.f32.mrb[4].mxu0  ;;  %v3414_v36 = vpop.f32.mrb[8].mxu1 }
 0xe35   :  { %v3375_v26 = vpop.f32.mrb[5].mxu0  ;;  %v5876_v34 = vpop.f32.mrb[9].mxu1 }
 0xe36   :  { %v3377_v37 = vpop.f32.mrb[6].mxu0  ;;  %v3417_v20 = vpop.f32.mrb[10].mxu1 }
 0xe37   :  { %v3378_v55 = vpop.f32.mrb[7].mxu0  ;;  %v5877_v10 = vpop.f32.mrb[11].mxu1 }
 0xe54   :  { %v3454_v4 = vpop.f32.mrb[8].mxu0  ;;  %v3495_v41 = vpop.f32.mrb[12].mxu1  ;;  %3515 = sbr.rel (%p5130_p8) target bundleno = 4344 (0x10f8), region = 117 }
 0xe55   :  { %v3455_v27 = vadd.f32 %v3454_v4, %v3373_v59  ;;  %v3496_v0 = vadd.f32 %v3495_v41, %v3414_v36  ;;  %v3456_v35 = vpop.f32.mrb[9].mxu0  ;;  %v5896_v2 = vpop.f32.mrb[13].mxu1 }
 0xe56   :  { %v3457_v15 = vadd.f32 %v3456_v35, %v3375_v26  ;;  %v3458_v62 = vpop.f32.mrb[10].mxu0  ;;  %v3498_v60 = vpop.f32.mrb[14].mxu1  ;;  %v9147_v26 = vlaneseq (!%p5130_p8) }
 0xe57   :  { %v3501_v30 = vadd.f32 %v3455_v27, %v8106_v17  ;;  %v3503_v25 = vadd.f32 %v3496_v0, %v8109_v12  ;;  %v3459_v8 = vpop.f32.mrb[11].mxu0  ;;  %v5897_v53 = vpop.f32.mrb[15].mxu1  ;;  %v6539_v62 = vld [vmem:[%s9148_s20 + $0x40] sm:$0xff] (!%p5130_p8)  }
 0xe58   :  { %v3502_v34 = vadd.f32 %v3457_v15, %v8112_v54  ;;  %v8391_v37 = vand.u32 (!%p5130_p8), 127, %v9147_v26  ;;  %v6540_v60 = vld [vmem:[%s9148_s20 + $0x80] sm:$0xff] (!%p5130_p8)   ;;  %v6542_v8 = vld [vmem:[%s9148_s20 + $0x48] sm:$0xff] (!%p5130_p8)   ;;  %5396 = vmatprep.subr.bf16.mxu0 (!%p5130_p8), %v6539_v62  ;;  %v6547_v26 = vld [vmem:[%s9148_s20 + $0x10] sm:$0xff] (!%p5130_p8)  }
 0xe59   :  { %5125 = vst [vmem:[%s8922_s17 + $0x18] sm:$0xff] %v3501_v30  ;;  %5127 = vst [vmem:[%s8922_s17 + $0x28] sm:$0xff] %v3503_v25  ;;  %v6543_v53 = vld [vmem:[%s9148_s20 + $0x88] sm:$0xff] (!%p5130_p8)  }
 0xe5a   :  { %5126 = vst [vmem:[%s8922_s17 + $0x20] sm:$0xff] %v3502_v34  ;;  %v3516_v59 = vmax.f32 (!%p5130_p8), %v3501_v30, %v3502_v34  ;;  %v8394_v20 = vadd.s32 (!%p5130_p8), 128, %v8391_v37  ;;  %v8397_v55 = vadd.s32 (!%p5130_p8), 256, %v8391_v37  ;;  %v6554_v62 = vld [vmem:[%s9148_s20 + $0x68] sm:$0xff] (!%p5130_p8)  }
 0xe5c   :  { %v3517_v36 = vmax.f32 %v3516_v59, %v3503_v25  ;;  %v6545_v59 = vld [vmem:[%s9148_s20 + $0x50] sm:$0xff]  }
 0xe5e   :  { %3518 = vmax.xlane.f32.xlu0 %v3517_v36  ;;  %v6546_v36 = vld [vmem:[%s9148_s20 + $0x90] sm:$0xff]  }
 0xeeb   :  { %v3519_v10 = vpop.xlane.xlu0 %3518 }
 0xeec   :  { %vm3524_vm14 = vcmp.eq.f32.partialorder %v3501_v30, %v3519_v10  ;;  %vm3525_vm15 = vcmp.eq.f32.partialorder %v3502_v34, %v3519_v10  ;;  %vm3526_vm1 = vcmp.eq.f32.partialorder %v3503_v25, %v3519_v10  ;;  %v6541_v30 = vld [vmem:[%s9148_s20] sm:$0xff]   ;;  %v6847_v25 = vmov 0.0   ;;  %v6544_v34 = vld [vmem:[%s9148_s20 + $0x8] sm:$0xff]   ;;  %v6548_v10 = vld [vmem:[%s9148_s20 + $0x58] sm:$0xff]  }
 0xeed   :  { %v3527_v4 = vsel %vm3524_vm14, %v8391_v37, 384  ;;  %v3528_v41 = vsel %vm3525_vm15, %v8394_v20, 384  ;;  %v3529_v27 = vsel %vm3526_vm1, %v8397_v55, 384  ;;  %5898 = vmatprep.subr.bf16.mxu1 %v6847_v25  ;;  %5397 = vmatpush3.bf16.msra.mxu0 %v6541_v30  ;;  %v6556_v30 = vld [vmem:[%s9148_s20 + $0x28] sm:$0xff]  }
 0xeee   :  { %vm3530_vm2 = vcmp.lt.s32.totalorder %v3527_v4, %v3528_v41  ;;  %5899 = vmatpush3.bf16.msra.mxu1 %v6540_v60  ;;  %5398 = vmatprep.subr.bf16.mxu0 %v6542_v8  ;;  %v6555_v60 = vld [vmem:[%s9148_s20 + $0xa8] sm:$0xff]   ;;  %v6557_v8 = vld [vmem:[%s9148_s20 + $0x70] sm:$0xff]  }
 0xeef   :  { %v3531_v0 = vsel %vm3530_vm2, %v3527_v4, %v3528_v41  ;;  %5900 = vmatprep.subr.bf16.mxu1 %v6847_v25  ;;  %v6549_v4 = vld [vmem:[%s9148_s20 + $0x98] sm:$0xff]   ;;  %5914 = vmatprep.mubr.msk.bf16.mxu1 %vm6848_vm5, %v6847_v25 }
 0xef0   :  { %vm3532_vm3 = vcmp.lt.s32.totalorder %v3531_v0, %v3529_v27  ;;  %v6550_v41 = vld [vmem:[%s9148_s20 + $0x18] sm:$0xff]  }
 0xef1   :  { %v3533_v35 = vsel %vm3532_vm3, %v3531_v0, %v3529_v27  ;;  %5399 = vmatpush3.bf16.msra.mxu0 %v6544_v34  ;;  %v6551_v27 = vld [vmem:[%s9148_s20 + $0x60] sm:$0xff]  }
 0xef2   :  { %v3535_v2 = vshra.s32 %v3533_v35, 16  ;;  %5901 = vmatpush3.bf16.msra.mxu1 %v6543_v53  ;;  %5400 = vmatprep.subr.bf16.mxu0 %v6545_v59  ;;  %v6552_v0 = vld [vmem:[%s9148_s20 + $0xa0] sm:$0xff]   ;;  %v6558_v53 = vld [vmem:[%s9148_s20 + $0xb0] sm:$0xff]   ;;  %v3534_v34 = vand.u32 65535, %v3533_v35  ;;  %v6562_v35 = vld [vmem:[%s9148_s20 + $0x38] sm:$0xff]  }
 0xef3   :  { %5902 = vmatprep.subr.bf16.mxu1 %v6847_v25 }
 0xef4   :  { %v3537_v15 = vcvt.s32.f32 %v3535_v2  ;;  %v6553_v2 = vld [vmem:[%s9148_s20 + $0x20] sm:$0xff]  }
 0xef5   :  { %5401 = vmatpush3.bf16.msra.mxu0 %v6547_v26 }
 0xef6   :  { %3538 = vmin.xlane.f32.xlu0 %v3537_v15  ;;  %5903 = vmatpush3.bf16.msra.mxu1 %v6546_v36  ;;  %v3536_v36 = vcvt.s32.f32 %v3534_v34 }
 0xef7   :  { %5904 = vmatprep.subr.bf16.mxu1 %v6847_v25  ;;  %5402 = vmatprep.subr.bf16.mxu0 %v6548_v10  ;;  %v6559_v10 = vld [vmem:[%s9148_s20 + $0x30] sm:$0xff]  }
 0xef9   :  { %5403 = vmatpush3.bf16.msra.mxu0 %v6550_v41  ;;  %v6561_v41 = vld [vmem:[%s9148_s20 + $0xb8] sm:$0xff]  }
 0xefa   :  { %5905 = vmatpush3.bf16.msra.mxu1 %v6549_v4  ;;  %5404 = vmatprep.subr.bf16.mxu0 %v6551_v27  ;;  %v6560_v4 = vld [vmem:[%s9148_s20 + $0x78] sm:$0xff]  }
 0xefb   :  { %5906 = vmatprep.subr.bf16.mxu1 %v6847_v25 }
 0xefd   :  { %5405 = vmatpush3.bf16.msra.mxu0 %v6553_v2 }
 0xefe   :  { %5907 = vmatpush3.bf16.msra.mxu1 %v6552_v0  ;;  %5406 = vmatprep.subr.bf16.mxu0 %v6554_v62 }
 0xeff   :  { %5908 = vmatprep.subr.bf16.mxu1 %v6847_v25 }
 0xf01   :  { %5407 = vmatpush3.bf16.msra.mxu0 %v6556_v30 }
 0xf02   :  { %5909 = vmatpush3.bf16.msra.mxu1 %v6555_v60  ;;  %5408 = vmatprep.subr.bf16.mxu0 %v6557_v8  ;;  %v6849_v60 = vmov 1.0|1.0  }
 0xf03   :  { %5910 = vmatprep.subr.bf16.mxu1 %v6847_v25 }
 0xf05   :  { %5409 = vmatpush3.bf16.msra.mxu0 %v6559_v10 }
 0xf06   :  { %5911 = vmatpush3.bf16.msra.mxu1 %v6558_v53  ;;  %5410 = vmatprep.subr.bf16.mxu0 %v6560_v4 }
 0xf07   :  { %5912 = vmatprep.subr.bf16.mxu1 %v6847_v25 }
 0xf09   :  { %5411 = vmatpush3.bf16.msra.mxu0 %v6562_v35 }
 0xf0a   :  { %5913 = vmatpush3.bf16.msra.mxu1 %v6561_v41 }
 0xf83   :  { %v3539_v59 = vpop.xlane.xlu0 %3538 }
 0xf84   :  { %vm3540_vm4 = vcmp.eq.f32.partialorder %v3537_v15, %v3539_v59  ;;  %v3545_v15 = vcvt.f32.s32 %v3539_v59 }
 0xf85   :  { %v3541_v26 = vsel %vm3540_vm4, %v3536_v36, inf }
 0xf86   :  { %3542 = vmin.xlane.f32.xlu1 %v3541_v26  ;;  %v3546_v0 = vshll.u32 %v3545_v15, 16 }
0x1013   :  { %v3543_v27 = vpop.xlane.xlu1 %3542 }
0x1014   :  { %v3544_v2 = vcvt.f32.s32 %v3543_v27 }
0x1016   :  { %v3547_v62 = vadd.s32 %v3546_v0, %v3544_v2 }
0x1018   :  { %vm3549_vm6 = vcmp.eq.s32.totalorder %v8394_v20, %v3547_v62  ;;  %vm3550_vm7 = vcmp.eq.s32.totalorder %v8397_v55, %v3547_v62  ;;  %vm3548_vm8 = vcmp.eq.s32.totalorder %v8391_v37, %v3547_v62 }
0x1019   :  { %vm5158_vm9 = vmpackc.low %vm3549_vm6, %vm3549_vm6 }
0x101a   :  { %5159 = vmatprep.mubr.msk.bf16.mxu0 %vm5158_vm9, %v6849_v60  ;;  %vm5162_vm10 = vmpackc.low %vm3550_vm7, %vm3550_vm7 }
0x101b   :  { %5915 = vmatmul.mubr.msk.bf16.vlgmr.msra.gmra.mrb[0].mxu1 %vm5162_vm10, %v6849_v60  ;;  %vm5160_vm11 = vmpackc.low %vm3548_vm8, %vm3548_vm8 }
0x101c   :  { %5161 = vmatmul.mubr.msk.bf16.vlgmr.msra.gmra.mrb[0].mxu0 %vm5160_vm11, %v6849_v60 }
0x10ee   :  { %v3826_v30 = vpop.f32.mrb[0].mxu1 }
0x10ef   :  { %v5412_v25 = vpop.f32.mrb[0].mxu0  ;;  %v5916_v8 = vpop.f32.mrb[1].mxu1 }
0x10f0   :  { %v5413_v53 = vpop.f32.mrb[1].mxu0  ;;  %v3829_v34 = vpop.f32.mrb[2].mxu1 }
0x10f1   :  { %v5414_v59 = vadd.f32 %v5413_v53, %v5412_v25  ;;  %v5415_v36 = vpop.f32.mrb[2].mxu0  ;;  %v5917_v26 = vpop.f32.mrb[3].mxu1 }
0x10f2   :  { %v5416_v20 = vpop.f32.mrb[3].mxu0 }
0x10f3   :  { %v3827_v10 = vadd.f32 %v5414_v59, %v3826_v30 }
0x10f5   :  { %v3832_v55 = vpack.c.bf16 %v3827_v10, %v3827_v10 }
0x10f7   :  { %3833 = vst [vmem:[#allocation2] sm:$0xf] %v3832_v55 }
0x10f8 PF:  { %3835 = vmatprep.subr.bf16.mxu0 %v7716_v23  ;;  %v9149_v37 = vmov 0.0   ;;  %v5169_v41 = vld [vmem:[%s8907_s2 + $0xc] sm:$0xf]  ;;  %v9150_v35 = vmov 0   ;;  %v9151_v15 = vld [vmem:[#allocation27_spill] sm:$0xff]  ;;  %v9153_v0 = vld [vmem:[#allocation29_spill] sm:$0xff] }
0x10f9   :  { %5918 = vmatprep.subr.bf16.mxu1 %v9149_v37  ;;  %3836 = vmatpush1.bf16.msra.mxu0 %v7718_v3  ;;  %v9152_v27 = vld [vmem:[#allocation28_spill] sm:$0xff]  ;;  %v9154_v2 = vld [vmem:[#allocation30_spill] sm:$0xff]  ;;  %v9155_v62 = vld [vmem:[#allocation31_spill] sm:$0xff]  ;;  %s5170_s2 = sld [smem:[#allocation3 + $0x3]] }
0x10fa   :  { %5919 = vmatpush3.bf16.msra.mxu1 %v7720_v31  ;;  %3837 = vmatprep.subr.bf16.mxu0 %v7724_v18  ;;  %v9156_v60 = vld [vmem:[#allocation32_spill] sm:$0xff]  ;;  %v9157_v30 = vld [vmem:[#allocation33_spill] sm:$0xff]  ;;  %v9158_v25 = vld [vmem:[#allocation34_spill] sm:$0xff] }
0x10fb   :  { %5920 = vmatprep.subr.bf16.mxu1 %v9149_v37  ;;  %3867 = vmatprep.mubr.bf16.mxu0 %v9150_v35  ;;  %v9159_v8 = vld [vmem:[#allocation35_spill] sm:$0xff]  ;;  %v9160_v53 = vld [vmem:[#allocation36_spill] sm:$0xff]  ;;  %v9161_v34 = vld [vmem:[#allocation37_spill] sm:$0xff] }
0x10fc   :  { %5934 = vmatprep.mubr.msk.bf16.mxu1 %vm6843_vm0, %v9149_v37  ;;  %v9162_v59 = vld [vmem:[#allocation38_spill] sm:$0xff]  ;;  %v9163_v36 = vld [vmem:[#allocation39_spill] sm:$0xff]  ;;  %v9164_v26 = vld [vmem:[#allocation40_spill] sm:$0xff] }
0x10fd   :  { %3838 = vmatpush1.bf16.msra.mxu0 %v7730_v6  ;;  %v9165_v20 = vld [vmem:[#allocation41_spill] sm:$0xff]  ;;  %v9166_v10 = vld [vmem:[#allocation42_spill] sm:$0xff]  ;;  %v9167_v55 = vld [vmem:[#allocation43_spill] sm:$0xff] }
0x10fe   :  { %v8479_v4 = vld [vmem:[#allocation2] sm:$0xf]  ;;  %5921 = vmatpush3.bf16.msra.mxu1 %v7732_v57  ;;  %3839 = vmatprep.subr.bf16.mxu0 %v7736_v39 }
0x10ff   :  { %4190 = vst [vmem:[#allocation2] sm:$0xf] %v5169_v41  ;;  %5922 = vmatprep.subr.bf16.mxu1 %v9149_v37  ;;  %v9168_v41 = vld [vmem:[#allocation44_spill] sm:$0xff]  ;;  %p5171_p9 = scmp.ne.s32.totalorder %s5170_s2, 0 }
0x1100   :  { %s9214_s1 = sld [smem:[#allocation89_spill]] (!%p5171_p9)  ;;  %vm6851_vm3 = vmmov (!%p5171_p9), 0  }
0x1101   :  { %3840 = vmatpush1.bf16.msra.mxu0 %v7743_v9 }
0x1102   :  { %5923 = vmatpush3.bf16.msra.mxu1 %v7745_v56  ;;  %3841 = vmatprep.subr.bf16.mxu0 %v7749_v5 }
0x1103   :  { %5924 = vmatprep.subr.bf16.mxu1 %v9149_v37 }
0x1105   :  { %3842 = vmatpush1.bf16.msra.mxu0 %v7753_v63 }
0x1106   :  { %5925 = vmatpush3.bf16.msra.mxu1 %v7755_v11  ;;  %3843 = vmatprep.subr.bf16.mxu0 %v7759_v51 }
0x1107   :  { %5926 = vmatprep.subr.bf16.mxu1 %v9149_v37 }
0x1109   :  { %3844 = vmatpush1.bf16.msra.mxu0 %v7763_v7 }
0x110a   :  { %5927 = vmatpush3.bf16.msra.mxu1 %v7765_v32  ;;  %3845 = vmatprep.subr.bf16.mxu0 %v7769_v1 }
0x110b   :  { %5928 = vmatprep.subr.bf16.mxu1 %v9149_v37 }
0x110d   :  { %3846 = vmatpush1.bf16.msra.mxu0 %v7773_v13 }
0x110e   :  { %5929 = vmatpush3.bf16.msra.mxu1 %v7775_v14  ;;  %3847 = vmatprep.subr.bf16.mxu0 %v7779_v19 }
0x110f   :  { %5930 = vmatprep.subr.bf16.mxu1 %v9149_v37 }
0x1111   :  { %3848 = vmatpush1.bf16.msra.mxu0 %v7783_v38 }
0x1112   :  { %5931 = vmatpush3.bf16.msra.mxu1 %v7785_v58  ;;  %3849 = vmatprep.subr.bf16.mxu0 %v7789_v42 }
0x1113   :  { %5932 = vmatprep.subr.bf16.mxu1 %v9149_v37 }
0x1115   :  { %3850 = vmatpush1.bf16.msra.mxu0 %v7793_v40 }
0x1116   :  { %5933 = vmatpush3.bf16.msra.mxu1 %v7795_v52  ;;  %3916 = vmatprep.subr.bf16.mxu0 %v7799_v16 }
0x1117   :  { %5938 = vmatprep.subr.bf16.mxu1 %v9149_v37 }
0x1118   :  { %3868 = vmatmul.mubr.bf16.vlgmr.msra.gmra.mrb[0].mxu0 %v8479_v4 }
0x1119   :  { %5935 = vmatmul.mubr.bf16.vlgmr.msra.gmra.mrb[0].mxu1 %v8479_v4  ;;  %3917 = vmatpush1.bf16.msra.mxu0 %v7808_v43 }
0x111a   :  { %5939 = vmatpush3.bf16.msra.mxu1 %v7810_v21  ;;  %3918 = vmatprep.subr.bf16.mxu0 %v7814_v44 }
0x111b   :  { %5940 = vmatprep.subr.bf16.mxu1 %v9149_v37  ;;  %3948 = vmatprep.mubr.bf16.mxu0 %v9150_v35 }
0x111c   :  { %5954 = vmatprep.mubr.msk.bf16.mxu1 %vm6843_vm0, %v9149_v37 }
0x111d   :  { %3919 = vmatpush1.bf16.msra.mxu0 %v7820_v45 }
0x111e   :  { %5941 = vmatpush3.bf16.msra.mxu1 %v7822_v28  ;;  %3920 = vmatprep.subr.bf16.mxu0 %v7826_v46 }
0x111f   :  { %5942 = vmatprep.subr.bf16.mxu1 %v9149_v37 }
0x1121   :  { %3921 = vmatpush1.bf16.msra.mxu0 %v7833_v48 }
0x1122   :  { %5943 = vmatpush3.bf16.msra.mxu1 %v7835_v47  ;;  %3922 = vmatprep.subr.bf16.mxu0 %v9151_v15  ;;  %v9169_v15 = vld [vmem:[#allocation45_spill] sm:$0xff] }
0x1123   :  { %5944 = vmatprep.subr.bf16.mxu1 %v9149_v37 }
0x1125   :  { %3923 = vmatpush1.bf16.msra.mxu0 %v9152_v27  ;;  %v9170_v27 = vld [vmem:[#allocation46_spill] sm:$0xff] }
0x1126   :  { %5945 = vmatpush3.bf16.msra.mxu1 %v9153_v0  ;;  %3924 = vmatprep.subr.bf16.mxu0 %v9154_v2  ;;  %v9171_v0 = vld [vmem:[#allocation47_spill] sm:$0xff]  ;;  %v9172_v2 = vld [vmem:[#allocation48_spill] sm:$0xff] }
0x1127   :  { %5946 = vmatprep.subr.bf16.mxu1 %v9149_v37 }
0x1129   :  { %3925 = vmatpush1.bf16.msra.mxu0 %v9155_v62  ;;  %v9174_v62 = vld [vmem:[#allocation50_spill] sm:$0xff] }
0x112a   :  { %5947 = vmatpush3.bf16.msra.mxu1 %v9156_v60  ;;  %3926 = vmatprep.subr.bf16.mxu0 %v9157_v30  ;;  %v9175_v60 = vld [vmem:[#allocation51_spill] sm:$0xff]  ;;  %v9176_v30 = vld [vmem:[#allocation52_spill] sm:$0xff] }
0x112b   :  { %5948 = vmatprep.subr.bf16.mxu1 %v9149_v37 }
0x112d   :  { %3927 = vmatpush1.bf16.msra.mxu0 %v9158_v25  ;;  %v9177_v25 = vld [vmem:[#allocation53_spill] sm:$0xff] }
0x112e   :  { %5949 = vmatpush3.bf16.msra.mxu1 %v9159_v8  ;;  %3928 = vmatprep.subr.bf16.mxu0 %v9160_v53  ;;  %v9178_v8 = vld [vmem:[#allocation54_spill] sm:$0xff]  ;;  %v9179_v53 = vld [vmem:[#allocation55_spill] sm:$0xff] }
0x112f   :  { %5950 = vmatprep.subr.bf16.mxu1 %v9149_v37 }
0x1131   :  { %3929 = vmatpush1.bf16.msra.mxu0 %v9161_v34  ;;  %v9180_v34 = vld [vmem:[#allocation56_spill] sm:$0xff] }
0x1132   :  { %5951 = vmatpush3.bf16.msra.mxu1 %v9162_v59  ;;  %3930 = vmatprep.subr.bf16.mxu0 %v9163_v36  ;;  %v9181_v59 = vld [vmem:[#allocation57_spill] sm:$0xff]  ;;  %v9182_v36 = vld [vmem:[#allocation58_spill] sm:$0xff] }
0x1133   :  { %5952 = vmatprep.subr.bf16.mxu1 %v9149_v37 }
0x1135   :  { %3931 = vmatpush1.bf16.msra.mxu0 %v9164_v26  ;;  %v9183_v26 = vld [vmem:[#allocation59_spill] sm:$0xff] }
0x1136   :  { %5953 = vmatpush3.bf16.msra.mxu1 %v9165_v20  ;;  %4019 = vmatprep.subr.bf16.mxu0 %v9166_v10  ;;  %v9184_v20 = vld [vmem:[#allocation60_spill] sm:$0xff]  ;;  %v9185_v10 = vld [vmem:[#allocation61_spill] sm:$0xff] }
0x1137   :  { %5958 = vmatprep.subr.bf16.mxu1 %v9149_v37 }
0x1138   :  { %3949 = vmatmul.mubr.bf16.vlgmr.msra.gmra.mrb[0].mxu0 %v8339_v33 }
0x1139   :  { %5955 = vmatmul.mubr.bf16.vlgmr.msra.gmra.mrb[4].mxu1 %v8339_v33  ;;  %4020 = vmatpush1.bf16.msra.mxu0 %v9167_v55  ;;  %v9173_v33 = vld [vmem:[#allocation49_spill] sm:$0xff]  ;;  %v9186_v55 = vld [vmem:[#allocation62_spill] sm:$0xff] }
0x113a   :  { %5959 = vmatpush3.bf16.msra.mxu1 %v9168_v41  ;;  %4021 = vmatprep.subr.bf16.mxu0 %v9169_v15  ;;  %v9187_v41 = vld [vmem:[#allocation63_spill] sm:$0xff]  ;;  %v9188_v15 = vld [vmem:[#allocation64_spill] sm:$0xff] }
0x113b   :  { %5960 = vmatprep.subr.bf16.mxu1 %v9149_v37  ;;  %4051 = vmatprep.mubr.bf16.mxu0 %v9150_v35 }
0x113c   :  { %5974 = vmatprep.mubr.msk.bf16.mxu1 %vm6843_vm0, %v9149_v37 }
0x113d   :  { %4022 = vmatpush1.bf16.msra.mxu0 %v9170_v27  ;;  %v9189_v27 = vld [vmem:[#allocation65_spill] sm:$0xff] }
0x113e   :  { %5961 = vmatpush3.bf16.msra.mxu1 %v9171_v0  ;;  %4023 = vmatprep.subr.bf16.mxu0 %v9172_v2  ;;  %v9190_v0 = vld [vmem:[#allocation66_spill] sm:$0xff] }
0x113f   :  { %5962 = vmatprep.subr.bf16.mxu1 %v9149_v37 }
0x1141   :  { %4024 = vmatpush1.bf16.msra.mxu0 %v9173_v33 }
0x1142   :  { %5963 = vmatpush3.bf16.msra.mxu1 %v9174_v62  ;;  %4025 = vmatprep.subr.bf16.mxu0 %v9175_v60 }
0x1143   :  { %5964 = vmatprep.subr.bf16.mxu1 %v9149_v37 }
0x1145   :  { %4026 = vmatpush1.bf16.msra.mxu0 %v9176_v30 }
0x1146   :  { %5965 = vmatpush3.bf16.msra.mxu1 %v9177_v25  ;;  %4027 = vmatprep.subr.bf16.mxu0 %v9178_v8 }
0x1147   :  { %5966 = vmatprep.subr.bf16.mxu1 %v9149_v37 }
0x1149   :  { %4028 = vmatpush1.bf16.msra.mxu0 %v9179_v53 }
0x114a   :  { %5967 = vmatpush3.bf16.msra.mxu1 %v9180_v34  ;;  %4029 = vmatprep.subr.bf16.mxu0 %v9181_v59 }
0x114b   :  { %5968 = vmatprep.subr.bf16.mxu1 %v9149_v37 }
0x114d   :  { %4030 = vmatpush1.bf16.msra.mxu0 %v9182_v36 }
0x114e   :  { %5969 = vmatpush3.bf16.msra.mxu1 %v9183_v26  ;;  %4031 = vmatprep.subr.bf16.mxu0 %v9184_v20 }
0x114f   :  { %5970 = vmatprep.subr.bf16.mxu1 %v9149_v37 }
0x1151   :  { %4032 = vmatpush1.bf16.msra.mxu0 %v9185_v10 }
0x1152   :  { %5971 = vmatpush3.bf16.msra.mxu1 %v9186_v55  ;;  %4033 = vmatprep.subr.bf16.mxu0 %v9187_v41 }
0x1153   :  { %5972 = vmatprep.subr.bf16.mxu1 %v9149_v37 }
0x1155   :  { %4034 = vmatpush1.bf16.msra.mxu0 %v9188_v15 }
0x1156   :  { %5973 = vmatpush3.bf16.msra.mxu1 %v9189_v27  ;;  %4100 = vmatprep.subr.bf16.mxu0 %v9190_v0 }
0x1157   :  { %5978 = vmatprep.subr.bf16.mxu1 %v9149_v37 }
0x11ec   :  { %v3910_v2 = vpop.f32.mrb[0].mxu1 }
0x11ed   :  { %v5936_v33 = vpop.f32.mrb[1].mxu1 }
0x11ee   :  { %v3913_v62 = vpop.f32.mrb[2].mxu1 }
0x11ef   :  { %v5937_v60 = vpop.f32.mrb[3].mxu1 }
0x120b   :  { %v3950_v30 = vpop.f32.mrb[0].mxu0 }
0x120c   :  { %v3991_v25 = vpop.f32.mrb[4].mxu1  ;;  %v6115_v8 = vadd.f32 %v7994_v22, %v3950_v30  ;;  %v3952_v53 = vpop.f32.mrb[1].mxu0  ;;  %v9191_v30 = vld [vmem:[#allocation67_spill] sm:$0xff] }
0x120d   :  { %v5956_v34 = vpop.f32.mrb[5].mxu1  ;;  %v3954_v59 = vpop.f32.mrb[2].mxu0  ;;  %v6117_v55 = vadd.f32 %v7996_v50, %v3952_v53  ;;  %v3992_v62 = vadd.f32 %v3991_v25, %v8001_v29  ;;  %v9194_v25 = vld [vmem:[#allocation68_spill] sm:$0xff] }
0x120e   :  { %v3994_v36 = vpop.f32.mrb[6].mxu1  ;;  %v5164_v26 = vmul.f32 -1.442695, %v6115_v8  ;;  %v3955_v20 = vpop.f32.mrb[3].mxu0  ;;  %v3911_v34 = vadd.f32 %v3910_v2, %v9191_v30  ;;  %v9192_v2 = vld [vmem:[#allocation25_spill] sm:$0xff]  ;;  %v9202_v30 = vld [vmem:[#allocation76_spill] sm:$0xff] }
0x120f   :  { %v5957_v10 = vpop.f32.mrb[7].mxu1  ;;  %v5165_v41 = vmul.f32 -1.442695, %v6117_v55 }
0x1210   :  { %6563 = vpow2.f32 %v5164_v26 }
0x1211   :  { %6565 = vpow2.f32 %v5165_v41 }
0x121a   :  { %v6564_v15 = vpop.eup %6563 }
0x121b   :  { %v4001_v27 = vadd.f32 1.0, %v6564_v15  ;;  %v6566_v0 = vpop.eup %6565  ;;  %v9195_v15 = vld [vmem:[#allocation69_spill] sm:$0xff] }
0x121c   :  { %v4008_v33 = vadd.f32 1.0, %v6566_v0  ;;  %v9197_v0 = vld [vmem:[#allocation71_spill] sm:$0xff] }
0x121d   :  { %6567 = vrcp.f32 %v4001_v27  ;;  %v9196_v27 = vld [vmem:[#allocation70_spill] sm:$0xff] }
0x121e   :  { %6569 = vrcp.f32 %v4008_v33  ;;  %v9198_v33 = vld [vmem:[#allocation72_spill] sm:$0xff] }
0x1227   :  { %v6568_v60 = vpop.eup %6567 }
0x1228   :  { %v4011_v59 = vmul.f32 %v6568_v60, %v3992_v62  ;;  %v6570_v36 = vpop.eup %6569  ;;  %v9200_v62 = vld [vmem:[#allocation74_spill] sm:$0xff]  ;;  %v9201_v60 = vld [vmem:[#allocation75_spill] sm:$0xff] }
0x1229   :  { %v4014_v20 = vsub.f32 1.0, %v6570_v36  ;;  %v4016_v10 = vmul.f32 %v6570_v36, %v8335_v24  ;;  %v9193_v24 = vld [vmem:[#allocation26_spill] sm:$0xff]  ;;  %v9206_v36 = vld [vmem:[#allocation80_spill] sm:$0xff] }
0x122a   :  { %v4012_v8 = vadd.f32 %v4011_v59, %v3911_v34  ;;  %v9203_v34 = vld [vmem:[#allocation77_spill] sm:$0xff]  ;;  %v9204_v59 = vld [vmem:[#allocation78_spill] sm:$0xff] }
0x122c   :  { %6571 = vtanh.f32 %v4012_v8  ;;  %v9205_v8 = vld [vmem:[#allocation79_spill] sm:$0xff] }
0x1236   :  { %v6572_v53 = vpop.eup %6571 }
0x1237   :  { %v4015_v26 = vmul.f32 %v6572_v53, %v4014_v20  ;;  %v9207_v20 = vld [vmem:[#allocation81_spill] sm:$0xff]  ;;  %v9208_v53 = vld [vmem:[#allocation82_spill] sm:$0xff] }
0x1239   :  { %v8598_v55 = vadd.f32 %v4016_v10, %v4015_v26  ;;  %v9209_v26 = vld [vmem:[#allocation83_spill] sm:$0xff]  ;;  %v9210_v10 = vld [vmem:[#allocation84_spill] sm:$0xff] }
0x123b   :  { %v8602_v41 = vpack.c.bf16 %v8598_v55, %v8598_v55 }
0x123d   :  { %4052 = vmatmul.mubr.bf16.vlgmr.msra.gmra.mrb[4].mxu0 %v8602_v41  ;;  %5975 = vmatmul.mubr.bf16.vlgmr.msra.gmra.mrb[8].mxu1 %v8602_v41 }
0x123e   :  { %4101 = vmatpush1.bf16.msra.mxu0 %v8007_v49  ;;  %5979 = vmatpush3.bf16.msra.mxu1 %v8009_v61 }
0x123f   :  { %4102 = vmatprep.subr.bf16.mxu0 %v9192_v2  ;;  %5980 = vmatprep.subr.bf16.mxu1 %v9149_v37  ;;  %v9211_v2 = vld [vmem:[#allocation85_spill] sm:$0xff] }
0x1240   :  { %4132 = vmatprep.mubr.bf16.mxu0 %v9150_v35  ;;  %5994 = vmatprep.mubr.msk.bf16.mxu1 %vm6843_vm0, %v9149_v37  ;;  %v9199_v35 = vld [vmem:[#allocation73_spill] sm:$0xff] }
0x1242   :  { %4103 = vmatpush1.bf16.msra.mxu0 %v9193_v24  ;;  %5981 = vmatpush3.bf16.msra.mxu1 %v9194_v25  ;;  %v9212_v24 = vld [vmem:[#allocation86_spill] sm:$0xff] }
0x1243   :  { %4104 = vmatprep.subr.bf16.mxu0 %v9195_v15  ;;  %5982 = vmatprep.subr.bf16.mxu1 %v9149_v37 }
0x1246   :  { %4105 = vmatpush1.bf16.msra.mxu0 %v9196_v27  ;;  %5983 = vmatpush3.bf16.msra.mxu1 %v9197_v0 }
0x1247   :  { %4106 = vmatprep.subr.bf16.mxu0 %v9198_v33  ;;  %5984 = vmatprep.subr.bf16.mxu1 %v9149_v37 }
0x124a   :  { %4107 = vmatpush1.bf16.msra.mxu0 %v9199_v35  ;;  %5985 = vmatpush3.bf16.msra.mxu1 %v9200_v62 }
0x124b   :  { %4108 = vmatprep.subr.bf16.mxu0 %v9201_v60  ;;  %5986 = vmatprep.subr.bf16.mxu1 %v9149_v37 }
0x124e   :  { %4109 = vmatpush1.bf16.msra.mxu0 %v9202_v30  ;;  %5987 = vmatpush3.bf16.msra.mxu1 %v9203_v34 }
0x124f   :  { %4110 = vmatprep.subr.bf16.mxu0 %v9204_v59  ;;  %5988 = vmatprep.subr.bf16.mxu1 %v9149_v37 }
0x1252   :  { %4111 = vmatpush1.bf16.msra.mxu0 %v9205_v8  ;;  %5989 = vmatpush3.bf16.msra.mxu1 %v9206_v36 }
0x1253   :  { %4112 = vmatprep.subr.bf16.mxu0 %v9207_v20  ;;  %5990 = vmatprep.subr.bf16.mxu1 %v9149_v37 }
0x1256   :  { %4113 = vmatpush1.bf16.msra.mxu0 %v9208_v53  ;;  %5991 = vmatpush3.bf16.msra.mxu1 %v9209_v26 }
0x1257   :  { %4114 = vmatprep.subr.bf16.mxu0 %v9210_v10  ;;  %5992 = vmatprep.subr.bf16.mxu1 %v9149_v37 }
0x125a   :  { %4115 = vmatpush1.bf16.msra.mxu0 %v9211_v2  ;;  %5993 = vmatpush3.bf16.msra.mxu1 %v9212_v24 }
0x125d   :  { %4133 = vmatmul.mubr.bf16.vlgmr.msra.gmra.mrb[8].mxu0 %v8479_v4  ;;  %5995 = vmatmul.mubr.bf16.vlgmr.msra.gmra.mrb[12].mxu1 %v8479_v4 }
0x1310   :  { %v4053_v25 = vpop.f32.mrb[4].mxu0  ;;  %v4094_v15 = vpop.f32.mrb[8].mxu1 }
0x1311   :  { %v4055_v27 = vpop.f32.mrb[5].mxu0  ;;  %v5976_v0 = vpop.f32.mrb[9].mxu1 }
0x1312   :  { %v4057_v33 = vpop.f32.mrb[6].mxu0  ;;  %v4097_v35 = vpop.f32.mrb[10].mxu1 }
0x1313   :  { %v4058_v62 = vpop.f32.mrb[7].mxu0  ;;  %v5977_v60 = vpop.f32.mrb[11].mxu1 }
0x1330   :  { %v4134_v30 = vpop.f32.mrb[8].mxu0  ;;  %v4175_v34 = vpop.f32.mrb[12].mxu1  ;;  %4195 = sbr.rel (%p5171_p9) target bundleno = 5588 (0x15d4), region = 121 }
0x1331   :  { %v4135_v37 = vadd.f32 %v4134_v30, %v4053_v25  ;;  %v4176_v59 = vadd.f32 %v4175_v34, %v4094_v15  ;;  %v4136_v8 = vpop.f32.mrb[9].mxu0  ;;  %v5996_v36 = vpop.f32.mrb[13].mxu1 }
0x1332   :  { %v4137_v20 = vadd.f32 %v4136_v8, %v4055_v27  ;;  %v4138_v53 = vpop.f32.mrb[10].mxu0  ;;  %v4178_v26 = vpop.f32.mrb[14].mxu1  ;;  %v9213_v27 = vlaneseq (!%p5171_p9) }
0x1333   :  { %v4181_v4 = vadd.f32 %v4135_v37, %v8106_v17  ;;  %v4183_v10 = vadd.f32 %v4176_v59, %v8109_v12  ;;  %v4139_v2 = vpop.f32.mrb[11].mxu0  ;;  %v5997_v24 = vpop.f32.mrb[15].mxu1  ;;  %v6573_v53 = vld [vmem:[%s9214_s1 + $0x40] sm:$0xff] (!%p5171_p9)  }
0x1334   :  { %v4182_v0 = vadd.f32 %v4137_v20, %v8112_v54  ;;  %v8654_v33 = vand.u32 (!%p5171_p9), 127, %v9213_v27  ;;  %v6574_v26 = vld [vmem:[%s9214_s1 + $0x80] sm:$0xff] (!%p5171_p9)   ;;  %v6576_v2 = vld [vmem:[%s9214_s1 + $0x48] sm:$0xff] (!%p5171_p9)   ;;  %5463 = vmatprep.subr.bf16.mxu0 (!%p5171_p9), %v6573_v53  ;;  %v6581_v27 = vld [vmem:[%s9214_s1 + $0x10] sm:$0xff] (!%p5171_p9)  }
0x1335   :  { %5166 = vst [vmem:[%s8922_s17 + $0x30] sm:$0xff] %v4181_v4  ;;  %5168 = vst [vmem:[%s8922_s17 + $0x40] sm:$0xff] %v4183_v10  ;;  %v6577_v24 = vld [vmem:[%s9214_s1 + $0x88] sm:$0xff] (!%p5171_p9)  }
0x1336   :  { %5167 = vst [vmem:[%s8922_s17 + $0x38] sm:$0xff] %v4182_v0  ;;  %v4196_v25 = vmax.f32 (!%p5171_p9), %v4181_v4, %v4182_v0  ;;  %v8657_v35 = vadd.s32 (!%p5171_p9), 128, %v8654_v33  ;;  %v8660_v62 = vadd.s32 (!%p5171_p9), 256, %v8654_v33  ;;  %v6588_v53 = vld [vmem:[%s9214_s1 + $0x68] sm:$0xff] (!%p5171_p9)  }
0x1338   :  { %v4197_v15 = vmax.f32 %v4196_v25, %v4183_v10  ;;  %v6579_v25 = vld [vmem:[%s9214_s1 + $0x50] sm:$0xff]  }
0x133a   :  { %4198 = vmax.xlane.f32.xlu0 %v4197_v15  ;;  %v6580_v15 = vld [vmem:[%s9214_s1 + $0x90] sm:$0xff]  }
0x13c7   :  { %v4199_v60 = vpop.xlane.xlu0 %4198 }
0x13c8   :  { %vm4204_vm12 = vcmp.eq.f32.partialorder %v4181_v4, %v4199_v60  ;;  %vm4205_vm13 = vcmp.eq.f32.partialorder %v4182_v0, %v4199_v60  ;;  %vm4206_vm14 = vcmp.eq.f32.partialorder %v4183_v10, %v4199_v60  ;;  %v6575_v4 = vld [vmem:[%s9214_s1] sm:$0xff]   ;;  %v6850_v10 = vmov 0.0   ;;  %v6578_v0 = vld [vmem:[%s9214_s1 + $0x8] sm:$0xff]   ;;  %v6582_v60 = vld [vmem:[%s9214_s1 + $0x58] sm:$0xff]  }
0x13c9   :  { %v4207_v30 = vsel %vm4204_vm12, %v8654_v33, 384  ;;  %v4208_v34 = vsel %vm4205_vm13, %v8657_v35, 384  ;;  %v4209_v37 = vsel %vm4206_vm14, %v8660_v62, 384  ;;  %5998 = vmatprep.subr.bf16.mxu1 %v6850_v10  ;;  %5464 = vmatpush3.bf16.msra.mxu0 %v6575_v4  ;;  %v6590_v4 = vld [vmem:[%s9214_s1 + $0x28] sm:$0xff]  }
0x13ca   :  { %vm4210_vm15 = vcmp.lt.s32.totalorder %v4207_v30, %v4208_v34  ;;  %5999 = vmatpush3.bf16.msra.mxu1 %v6574_v26  ;;  %5465 = vmatprep.subr.bf16.mxu0 %v6576_v2  ;;  %v6589_v26 = vld [vmem:[%s9214_s1 + $0xa8] sm:$0xff]   ;;  %v6591_v2 = vld [vmem:[%s9214_s1 + $0x70] sm:$0xff]  }
0x13cb   :  { %v4211_v59 = vsel %vm4210_vm15, %v4207_v30, %v4208_v34  ;;  %6000 = vmatprep.subr.bf16.mxu1 %v6850_v10  ;;  %v6583_v30 = vld [vmem:[%s9214_s1 + $0x98] sm:$0xff]   ;;  %6014 = vmatprep.mubr.msk.bf16.mxu1 %vm6851_vm3, %v6850_v10 }
0x13cc   :  { %vm4212_vm1 = vcmp.lt.s32.totalorder %v4211_v59, %v4209_v37  ;;  %v6584_v34 = vld [vmem:[%s9214_s1 + $0x18] sm:$0xff]  }
0x13cd   :  { %v4213_v8 = vsel %vm4212_vm1, %v4211_v59, %v4209_v37  ;;  %5466 = vmatpush3.bf16.msra.mxu0 %v6578_v0  ;;  %v6585_v37 = vld [vmem:[%s9214_s1 + $0x60] sm:$0xff]  }
0x13ce   :  { %v4215_v36 = vshra.s32 %v4213_v8, 16  ;;  %6001 = vmatpush3.bf16.msra.mxu1 %v6577_v24  ;;  %5467 = vmatprep.subr.bf16.mxu0 %v6579_v25  ;;  %v6586_v59 = vld [vmem:[%s9214_s1 + $0xa0] sm:$0xff]   ;;  %v6592_v24 = vld [vmem:[%s9214_s1 + $0xb0] sm:$0xff]   ;;  %v4214_v0 = vand.u32 65535, %v4213_v8  ;;  %v6596_v8 = vld [vmem:[%s9214_s1 + $0x38] sm:$0xff]  }
0x13cf   :  { %6002 = vmatprep.subr.bf16.mxu1 %v6850_v10 }
0x13d0   :  { %v4217_v20 = vcvt.s32.f32 %v4215_v36  ;;  %v6587_v36 = vld [vmem:[%s9214_s1 + $0x20] sm:$0xff]  }
0x13d1   :  { %5468 = vmatpush3.bf16.msra.mxu0 %v6581_v27 }
0x13d2   :  { %4218 = vmin.xlane.f32.xlu0 %v4217_v20  ;;  %6003 = vmatpush3.bf16.msra.mxu1 %v6580_v15  ;;  %v4216_v15 = vcvt.s32.f32 %v4214_v0 }
0x13d3   :  { %6004 = vmatprep.subr.bf16.mxu1 %v6850_v10  ;;  %5469 = vmatprep.subr.bf16.mxu0 %v6582_v60  ;;  %v6593_v60 = vld [vmem:[%s9214_s1 + $0x30] sm:$0xff]  }
0x13d5   :  { %5470 = vmatpush3.bf16.msra.mxu0 %v6584_v34  ;;  %v6595_v34 = vld [vmem:[%s9214_s1 + $0xb8] sm:$0xff]  }
0x13d6   :  { %6005 = vmatpush3.bf16.msra.mxu1 %v6583_v30  ;;  %5471 = vmatprep.subr.bf16.mxu0 %v6585_v37  ;;  %v6594_v30 = vld [vmem:[%s9214_s1 + $0x78] sm:$0xff]  }
0x13d7   :  { %6006 = vmatprep.subr.bf16.mxu1 %v6850_v10 }
0x13d9   :  { %5472 = vmatpush3.bf16.msra.mxu0 %v6587_v36 }
0x13da   :  { %6007 = vmatpush3.bf16.msra.mxu1 %v6586_v59  ;;  %5473 = vmatprep.subr.bf16.mxu0 %v6588_v53 }
0x13db   :  { %6008 = vmatprep.subr.bf16.mxu1 %v6850_v10 }
0x13dd   :  { %5474 = vmatpush3.bf16.msra.mxu0 %v6590_v4 }
0x13de   :  { %6009 = vmatpush3.bf16.msra.mxu1 %v6589_v26  ;;  %5475 = vmatprep.subr.bf16.mxu0 %v6591_v2  ;;  %v6852_v26 = vmov 1.0|1.0  }
0x13df   :  { %6010 = vmatprep.subr.bf16.mxu1 %v6850_v10 }
0x13e1   :  { %5476 = vmatpush3.bf16.msra.mxu0 %v6593_v60 }
0x13e2   :  { %6011 = vmatpush3.bf16.msra.mxu1 %v6592_v24  ;;  %5477 = vmatprep.subr.bf16.mxu0 %v6594_v30 }
0x13e3   :  { %6012 = vmatprep.subr.bf16.mxu1 %v6850_v10 }
0x13e5   :  { %5478 = vmatpush3.bf16.msra.mxu0 %v6596_v8 }
0x13e6   :  { %6013 = vmatpush3.bf16.msra.mxu1 %v6595_v34 }
0x145f   :  { %v4219_v25 = vpop.xlane.xlu0 %4218 }
0x1460   :  { %vm4220_vm2 = vcmp.eq.f32.partialorder %v4217_v20, %v4219_v25  ;;  %v4225_v20 = vcvt.f32.s32 %v4219_v25 }
0x1461   :  { %v4221_v27 = vsel %vm4220_vm2, %v4216_v15, inf }
0x1462   :  { %4222 = vmin.xlane.f32.xlu1 %v4221_v27  ;;  %v4226_v59 = vshll.u32 %v4225_v20, 16 }
0x14ef   :  { %v4223_v37 = vpop.xlane.xlu1 %4222 }
0x14f0   :  { %v4224_v36 = vcvt.f32.s32 %v4223_v37 }
0x14f2   :  { %v4227_v53 = vadd.s32 %v4226_v59, %v4224_v36 }
0x14f4   :  { %vm4229_vm4 = vcmp.eq.s32.totalorder %v8657_v35, %v4227_v53  ;;  %vm4230_vm5 = vcmp.eq.s32.totalorder %v8660_v62, %v4227_v53  ;;  %vm4228_vm6 = vcmp.eq.s32.totalorder %v8654_v33, %v4227_v53 }
0x14f5   :  { %vm5199_vm7 = vmpackc.low %vm4229_vm4, %vm4229_vm4 }
0x14f6   :  { %5200 = vmatprep.mubr.msk.bf16.mxu0 %vm5199_vm7, %v6852_v26  ;;  %vm5203_vm8 = vmpackc.low %vm4230_vm5, %vm4230_vm5 }
0x14f7   :  { %6015 = vmatmul.mubr.msk.bf16.vlgmr.msra.gmra.mrb[0].mxu1 %vm5203_vm8, %v6852_v26  ;;  %vm5201_vm9 = vmpackc.low %vm4228_vm6, %vm4228_vm6 }
0x14f8   :  { %5202 = vmatmul.mubr.msk.bf16.vlgmr.msra.gmra.mrb[0].mxu0 %vm5201_vm9, %v6852_v26 }
0x15ca   :  { %v4506_v4 = vpop.f32.mrb[0].mxu1 }
0x15cb   :  { %v5479_v10 = vpop.f32.mrb[0].mxu0  ;;  %v6016_v2 = vpop.f32.mrb[1].mxu1 }
0x15cc   :  { %v5480_v24 = vpop.f32.mrb[1].mxu0  ;;  %v4509_v0 = vpop.f32.mrb[2].mxu1 }
0x15cd   :  { %v5481_v25 = vadd.f32 %v5480_v24, %v5479_v10  ;;  %v5482_v15 = vpop.f32.mrb[2].mxu0  ;;  %v6017_v27 = vpop.f32.mrb[3].mxu1 }
0x15ce   :  { %v5483_v35 = vpop.f32.mrb[3].mxu0 }
0x15cf   :  { %v4507_v60 = vadd.f32 %v5481_v25, %v4506_v4 }
0x15d1   :  { %v4512_v62 = vpack.c.bf16 %v4507_v60, %v4507_v60 }
0x15d3   :  { %4513 = vst [vmem:[#allocation2] sm:$0xf] %v4512_v62 }
0x15d4 PF:  { %4515 = vmatprep.subr.bf16.mxu0 %v7716_v23  ;;  %v9215_v33 = vmov 0.0   ;;  %v9216_v30 = vmov 0   ;;  %v9250_v34 = vld [vmem:[#allocation60_spill] sm:$0xff]  ;;  %v9251_v8 = vld [vmem:[#allocation61_spill] sm:$0xff]  ;;  %v9252_v20 = vld [vmem:[#allocation62_spill] sm:$0xff] }
0x15d5   :  { %6018 = vmatprep.subr.bf16.mxu1 %v9215_v33  ;;  %4516 = vmatpush1.bf16.msra.mxu0 %v7718_v3  ;;  %v9217_v3 = vld [vmem:[#allocation27_spill] sm:$0xff]  ;;  %v9254_v59 = vld [vmem:[#allocation64_spill] sm:$0xff]  ;;  %v9255_v36 = vld [vmem:[#allocation65_spill] sm:$0xff] }
0x15d6   :  { %6019 = vmatpush3.bf16.msra.mxu1 %v7720_v31  ;;  %4517 = vmatprep.subr.bf16.mxu0 %v7724_v18  ;;  %v9218_v31 = vld [vmem:[#allocation28_spill] sm:$0xff]  ;;  %v9219_v18 = vld [vmem:[#allocation29_spill] sm:$0xff]  ;;  %v9253_v37 = vld [vmem:[#allocation63_spill] sm:$0xff] }
0x15d7   :  { %6020 = vmatprep.subr.bf16.mxu1 %v9215_v33  ;;  %4547 = vmatprep.mubr.bf16.mxu0 %v9216_v30  ;;  %v9256_v53 = vld [vmem:[#allocation66_spill] sm:$0xff] }
0x15d8   :  { %6034 = vmatprep.mubr.msk.bf16.mxu1 %vm6843_vm0, %v9215_v33 }
0x15d9   :  { %4518 = vmatpush1.bf16.msra.mxu0 %v7730_v6  ;;  %v9220_v6 = vld [vmem:[#allocation30_spill] sm:$0xff] }
0x15da   :  { %6021 = vmatpush3.bf16.msra.mxu1 %v7732_v57  ;;  %4519 = vmatprep.subr.bf16.mxu0 %v7736_v39  ;;  %v8774_v23 = vld [vmem:[#allocation2] sm:$0xf]  ;;  %v9222_v39 = vld [vmem:[#allocation32_spill] sm:$0xff] }
0x15db   :  { %6022 = vmatprep.subr.bf16.mxu1 %v9215_v33  ;;  %v9221_v57 = vld [vmem:[#allocation31_spill] sm:$0xff] }
0x15dd   :  { %4520 = vmatpush1.bf16.msra.mxu0 %v7743_v9  ;;  %v9223_v9 = vld [vmem:[#allocation33_spill] sm:$0xff] }
0x15de   :  { %6023 = vmatpush3.bf16.msra.mxu1 %v7745_v56  ;;  %4521 = vmatprep.subr.bf16.mxu0 %v7749_v5  ;;  %v9224_v56 = vld [vmem:[#allocation34_spill] sm:$0xff]  ;;  %v9225_v5 = vld [vmem:[#allocation35_spill] sm:$0xff] }
0x15df   :  { %6024 = vmatprep.subr.bf16.mxu1 %v9215_v33 }
0x15e1   :  { %4522 = vmatpush1.bf16.msra.mxu0 %v7753_v63  ;;  %v9226_v63 = vld [vmem:[#allocation36_spill] sm:$0xff] }
0x15e2   :  { %6025 = vmatpush3.bf16.msra.mxu1 %v7755_v11  ;;  %4523 = vmatprep.subr.bf16.mxu0 %v7759_v51  ;;  %v9227_v11 = vld [vmem:[#allocation37_spill] sm:$0xff]  ;;  %v9228_v51 = vld [vmem:[#allocation38_spill] sm:$0xff] }
0x15e3   :  { %6026 = vmatprep.subr.bf16.mxu1 %v9215_v33 }
0x15e5   :  { %4524 = vmatpush1.bf16.msra.mxu0 %v7763_v7  ;;  %v9229_v7 = vld [vmem:[#allocation39_spill] sm:$0xff] }
0x15e6   :  { %6027 = vmatpush3.bf16.msra.mxu1 %v7765_v32  ;;  %4525 = vmatprep.subr.bf16.mxu0 %v7769_v1  ;;  %v9230_v32 = vld [vmem:[#allocation40_spill] sm:$0xff]  ;;  %v9231_v1 = vld [vmem:[#allocation41_spill] sm:$0xff] }
0x15e7   :  { %6028 = vmatprep.subr.bf16.mxu1 %v9215_v33 }
0x15e9   :  { %4526 = vmatpush1.bf16.msra.mxu0 %v7773_v13  ;;  %v9232_v13 = vld [vmem:[#allocation42_spill] sm:$0xff] }
0x15ea   :  { %6029 = vmatpush3.bf16.msra.mxu1 %v7775_v14  ;;  %4527 = vmatprep.subr.bf16.mxu0 %v7779_v19  ;;  %v9233_v14 = vld [vmem:[#allocation43_spill] sm:$0xff]  ;;  %v9234_v19 = vld [vmem:[#allocation44_spill] sm:$0xff] }
0x15eb   :  { %6030 = vmatprep.subr.bf16.mxu1 %v9215_v33 }
0x15ed   :  { %4528 = vmatpush1.bf16.msra.mxu0 %v7783_v38  ;;  %v9235_v38 = vld [vmem:[#allocation45_spill] sm:$0xff] }
0x15ee   :  { %6031 = vmatpush3.bf16.msra.mxu1 %v7785_v58  ;;  %4529 = vmatprep.subr.bf16.mxu0 %v7789_v42  ;;  %v9236_v58 = vld [vmem:[#allocation46_spill] sm:$0xff]  ;;  %v9237_v42 = vld [vmem:[#allocation47_spill] sm:$0xff] }
0x15ef   :  { %6032 = vmatprep.subr.bf16.mxu1 %v9215_v33 }
0x15f1   :  { %4530 = vmatpush1.bf16.msra.mxu0 %v7793_v40  ;;  %v9238_v40 = vld [vmem:[#allocation48_spill] sm:$0xff] }
0x15f2   :  { %6033 = vmatpush3.bf16.msra.mxu1 %v7795_v52  ;;  %4596 = vmatprep.subr.bf16.mxu0 %v7799_v16  ;;  %v9239_v52 = vld [vmem:[#allocation49_spill] sm:$0xff]  ;;  %v9240_v16 = vld [vmem:[#allocation50_spill] sm:$0xff] }
0x15f3   :  { %6038 = vmatprep.subr.bf16.mxu1 %v9215_v33 }
0x15f4   :  { %4548 = vmatmul.mubr.bf16.vlgmr.msra.gmra.mrb[0].mxu0 %v8774_v23 }
0x15f5   :  { %6035 = vmatmul.mubr.bf16.vlgmr.msra.gmra.mrb[0].mxu1 %v8774_v23  ;;  %4597 = vmatpush1.bf16.msra.mxu0 %v7808_v43  ;;  %v9241_v43 = vld [vmem:[#allocation51_spill] sm:$0xff] }
0x15f6   :  { %6039 = vmatpush3.bf16.msra.mxu1 %v7810_v21  ;;  %4598 = vmatprep.subr.bf16.mxu0 %v7814_v44  ;;  %v9242_v21 = vld [vmem:[#allocation52_spill] sm:$0xff]  ;;  %v9243_v44 = vld [vmem:[#allocation53_spill] sm:$0xff] }
0x15f7   :  { %6040 = vmatprep.subr.bf16.mxu1 %v9215_v33  ;;  %4628 = vmatprep.mubr.bf16.mxu0 %v9216_v30 }
0x15f8   :  { %6054 = vmatprep.mubr.msk.bf16.mxu1 %vm6843_vm0, %v9215_v33 }
0x15f9   :  { %4599 = vmatpush1.bf16.msra.mxu0 %v7820_v45  ;;  %v9244_v45 = vld [vmem:[#allocation54_spill] sm:$0xff] }
0x15fa   :  { %6041 = vmatpush3.bf16.msra.mxu1 %v7822_v28  ;;  %4600 = vmatprep.subr.bf16.mxu0 %v7826_v46  ;;  %v9245_v28 = vld [vmem:[#allocation55_spill] sm:$0xff]  ;;  %v9246_v46 = vld [vmem:[#allocation56_spill] sm:$0xff] }
0x15fb   :  { %6042 = vmatprep.subr.bf16.mxu1 %v9215_v33 }
0x15fd   :  { %4601 = vmatpush1.bf16.msra.mxu0 %v7833_v48  ;;  %v9247_v48 = vld [vmem:[#allocation57_spill] sm:$0xff] }
0x15fe   :  { %6043 = vmatpush3.bf16.msra.mxu1 %v7835_v47  ;;  %4602 = vmatprep.subr.bf16.mxu0 %v9217_v3  ;;  %v9248_v47 = vld [vmem:[#allocation58_spill] sm:$0xff] }
0x15ff   :  { %6044 = vmatprep.subr.bf16.mxu1 %v9215_v33 }
0x1601   :  { %4603 = vmatpush1.bf16.msra.mxu0 %v9218_v31 }
0x1602   :  { %6045 = vmatpush3.bf16.msra.mxu1 %v9219_v18  ;;  %4604 = vmatprep.subr.bf16.mxu0 %v9220_v6 }
0x1603   :  { %6046 = vmatprep.subr.bf16.mxu1 %v9215_v33 }
0x1605   :  { %4605 = vmatpush1.bf16.msra.mxu0 %v9221_v57 }
0x1606   :  { %6047 = vmatpush3.bf16.msra.mxu1 %v9222_v39  ;;  %4606 = vmatprep.subr.bf16.mxu0 %v9223_v9 }
0x1607   :  { %6048 = vmatprep.subr.bf16.mxu1 %v9215_v33 }
0x1609   :  { %4607 = vmatpush1.bf16.msra.mxu0 %v9224_v56 }
0x160a   :  { %6049 = vmatpush3.bf16.msra.mxu1 %v9225_v5  ;;  %4608 = vmatprep.subr.bf16.mxu0 %v9226_v63  ;;  %v9257_v63 = vld [vmem:[#allocation67_spill] sm:$0xff] }
0x160b   :  { %6050 = vmatprep.subr.bf16.mxu1 %v9215_v33 }
0x160d   :  { %4609 = vmatpush1.bf16.msra.mxu0 %v9227_v11 }
0x160e   :  { %6051 = vmatpush3.bf16.msra.mxu1 %v9228_v51  ;;  %4610 = vmatprep.subr.bf16.mxu0 %v9229_v7 }
0x160f   :  { %6052 = vmatprep.subr.bf16.mxu1 %v9215_v33 }
0x1611   :  { %4611 = vmatpush1.bf16.msra.mxu0 %v9230_v32 }
0x1612   :  { %6053 = vmatpush3.bf16.msra.mxu1 %v9231_v1  ;;  %4699 = vmatprep.subr.bf16.mxu0 %v9232_v13 }
0x1613   :  { %6058 = vmatprep.subr.bf16.mxu1 %v9215_v33 }
0x1614   :  { %4629 = vmatmul.mubr.bf16.vlgmr.msra.gmra.mrb[0].mxu0 %v8602_v41 }
0x1615   :  { %6055 = vmatmul.mubr.bf16.vlgmr.msra.gmra.mrb[4].mxu1 %v8602_v41  ;;  %4700 = vmatpush1.bf16.msra.mxu0 %v9233_v14  ;;  %v9249_v41 = vld [vmem:[#allocation59_spill] sm:$0xff] }
0x1616   :  { %6059 = vmatpush3.bf16.msra.mxu1 %v9234_v19  ;;  %4701 = vmatprep.subr.bf16.mxu0 %v9235_v38 }
0x1617   :  { %6060 = vmatprep.subr.bf16.mxu1 %v9215_v33  ;;  %4731 = vmatprep.mubr.bf16.mxu0 %v9216_v30 }
0x1618   :  { %6074 = vmatprep.mubr.msk.bf16.mxu1 %vm6843_vm0, %v9215_v33 }
0x1619   :  { %4702 = vmatpush1.bf16.msra.mxu0 %v9236_v58  ;;  %v9259_v58 = vld [vmem:[#allocation26_spill] sm:$0xff] }
0x161a   :  { %6061 = vmatpush3.bf16.msra.mxu1 %v9237_v42  ;;  %4703 = vmatprep.subr.bf16.mxu0 %v9238_v40  ;;  %v9261_v42 = vld [vmem:[#allocation69_spill] sm:$0xff]  ;;  %v9264_v40 = vld [vmem:[#allocation72_spill] sm:$0xff] }
0x161b   :  { %6062 = vmatprep.subr.bf16.mxu1 %v9215_v33 }
0x161d   :  { %4704 = vmatpush1.bf16.msra.mxu0 %v9239_v52  ;;  %v9266_v52 = vld [vmem:[#allocation74_spill] sm:$0xff] }
0x161e   :  { %6063 = vmatpush3.bf16.msra.mxu1 %v9240_v16  ;;  %4705 = vmatprep.subr.bf16.mxu0 %v9241_v43  ;;  %v9267_v16 = vld [vmem:[#allocation75_spill] sm:$0xff]  ;;  %v9268_v43 = vld [vmem:[#allocation76_spill] sm:$0xff] }
0x161f   :  { %6064 = vmatprep.subr.bf16.mxu1 %v9215_v33 }
0x1621   :  { %4706 = vmatpush1.bf16.msra.mxu0 %v9242_v21  ;;  %v9269_v21 = vld [vmem:[#allocation77_spill] sm:$0xff] }
0x1622   :  { %6065 = vmatpush3.bf16.msra.mxu1 %v9243_v44  ;;  %4707 = vmatprep.subr.bf16.mxu0 %v9244_v45  ;;  %v9270_v44 = vld [vmem:[#allocation78_spill] sm:$0xff]  ;;  %v9271_v45 = vld [vmem:[#allocation79_spill] sm:$0xff] }
0x1623   :  { %6066 = vmatprep.subr.bf16.mxu1 %v9215_v33 }
0x1625   :  { %4708 = vmatpush1.bf16.msra.mxu0 %v9245_v28  ;;  %v9272_v28 = vld [vmem:[#allocation80_spill] sm:$0xff] }
0x1626   :  { %6067 = vmatpush3.bf16.msra.mxu1 %v9246_v46  ;;  %4709 = vmatprep.subr.bf16.mxu0 %v9247_v48  ;;  %v9273_v46 = vld [vmem:[#allocation81_spill] sm:$0xff]  ;;  %v9274_v48 = vld [vmem:[#allocation82_spill] sm:$0xff] }
0x1627   :  { %6068 = vmatprep.subr.bf16.mxu1 %v9215_v33 }
0x1629   :  { %4710 = vmatpush1.bf16.msra.mxu0 %v9248_v47  ;;  %v9275_v47 = vld [vmem:[#allocation83_spill] sm:$0xff] }
0x162a   :  { %6069 = vmatpush3.bf16.msra.mxu1 %v9249_v41  ;;  %4711 = vmatprep.subr.bf16.mxu0 %v9250_v34  ;;  %v9276_v41 = vld [vmem:[#allocation84_spill] sm:$0xff]  ;;  %v9277_v34 = vld [vmem:[#allocation85_spill] sm:$0xff] }
0x162b   :  { %6070 = vmatprep.subr.bf16.mxu1 %v9215_v33 }
0x162d   :  { %4712 = vmatpush1.bf16.msra.mxu0 %v9251_v8  ;;  %v9278_v8 = vld [vmem:[#allocation86_spill] sm:$0xff] }
0x162e   :  { %6071 = vmatpush3.bf16.msra.mxu1 %v9252_v20  ;;  %4713 = vmatprep.subr.bf16.mxu0 %v9253_v37 }
0x162f   :  { %6072 = vmatprep.subr.bf16.mxu1 %v9215_v33 }
0x1631   :  { %4714 = vmatpush1.bf16.msra.mxu0 %v9254_v59 }
0x1632   :  { %6073 = vmatpush3.bf16.msra.mxu1 %v9255_v36  ;;  %4780 = vmatprep.subr.bf16.mxu0 %v9256_v53 }
0x1633   :  { %6078 = vmatprep.subr.bf16.mxu1 %v9215_v33 }
0x16c8   :  { %v4590_v26 = vpop.f32.mrb[0].mxu1 }
0x16c9   :  { %v6036_v4 = vpop.f32.mrb[1].mxu1  ;;  %v4591_v11 = vadd.f32 %v4590_v26, %v9257_v63 }
0x16ca   :  { %v4593_v10 = vpop.f32.mrb[2].mxu1 }
0x16cb   :  { %v6037_v2 = vpop.f32.mrb[3].mxu1 }
0x16e7   :  { %v4630_v24 = vpop.f32.mrb[0].mxu0 }
0x16e8   :  { %v4671_v0 = vpop.f32.mrb[4].mxu1  ;;  %v6123_v25 = vadd.f32 %v7994_v22, %v4630_v24  ;;  %v4632_v15 = vpop.f32.mrb[1].mxu0 }
0x16e9   :  { %v6056_v27 = vpop.f32.mrb[5].mxu1  ;;  %v4634_v35 = vpop.f32.mrb[2].mxu0  ;;  %v6125_v18 = vadd.f32 %v7996_v50, %v4632_v15  ;;  %v4672_v5 = vadd.f32 %v4671_v0, %v8001_v29  ;;  %v9258_v29 = vld [vmem:[#allocation25_spill] sm:$0xff] }
0x16ea   :  { %v4674_v60 = vpop.f32.mrb[6].mxu1  ;;  %v5205_v62 = vmul.f32 -1.442695, %v6123_v25  ;;  %v4635_v3 = vpop.f32.mrb[3].mxu0 }
0x16eb   :  { %v6057_v31 = vpop.f32.mrb[7].mxu1  ;;  %v5206_v6 = vmul.f32 -1.442695, %v6125_v18 }
0x16ec   :  { %6597 = vpow2.f32 %v5205_v62 }
0x16ed   :  { %6599 = vpow2.f32 %v5206_v6 }
0x16f6   :  { %v6598_v57 = vpop.eup %6597 }
0x16f7   :  { %v4681_v39 = vadd.f32 1.0, %v6598_v57  ;;  %v6600_v9 = vpop.eup %6599 }
0x16f8   :  { %v4688_v56 = vadd.f32 1.0, %v6600_v9 }
0x16f9   :  { %6601 = vrcp.f32 %v4681_v39 }
0x16fa   :  { %6603 = vrcp.f32 %v4688_v56 }
0x1703   :  { %v6602_v22 = vpop.eup %6601 }
0x1704   :  { %v4691_v51 = vmul.f32 %v6602_v22, %v4672_v5  ;;  %v6604_v32 = vpop.eup %6603 }
0x1705   :  { %v4694_v1 = vsub.f32 1.0, %v6604_v32  ;;  %v4696_v14 = vmul.f32 %v6604_v32, %v8598_v55  ;;  %v9260_v55 = vld [vmem:[#allocation68_spill] sm:$0xff] }
0x1706   :  { %v4692_v7 = vadd.f32 %v4691_v51, %v4591_v11 }
0x1708   :  { %6605 = vtanh.f32 %v4692_v7 }
0x1712   :  { %v6606_v50 = vpop.eup %6605 }
0x1713   :  { %v4695_v13 = vmul.f32 %v6606_v50, %v4694_v1 }
0x1715   :  { %v4697_v19 = vadd.f32 %v4696_v14, %v4695_v13 }
0x1717   :  { %v4698_v38 = vpack.c.bf16 %v4697_v19, %v4697_v19 }
0x1719   :  { %4732 = vmatmul.mubr.bf16.vlgmr.msra.gmra.mrb[4].mxu0 %v4698_v38  ;;  %6075 = vmatmul.mubr.bf16.vlgmr.msra.gmra.mrb[8].mxu1 %v4698_v38 }
0x171a   :  { %4781 = vmatpush1.bf16.msra.mxu0 %v8007_v49  ;;  %6079 = vmatpush3.bf16.msra.mxu1 %v8009_v61  ;;  %v9262_v49 = vld [vmem:[#allocation70_spill] sm:$0xff]  ;;  %v9263_v61 = vld [vmem:[#allocation71_spill] sm:$0xff] }
0x171b   :  { %4782 = vmatprep.subr.bf16.mxu0 %v9258_v29  ;;  %6080 = vmatprep.subr.bf16.mxu1 %v9215_v33 }
0x171c   :  { %4812 = vmatprep.mubr.bf16.mxu0 %v9216_v30  ;;  %6094 = vmatprep.mubr.msk.bf16.mxu1 %vm6843_vm0, %v9215_v33  ;;  %v9265_v30 = vld [vmem:[#allocation73_spill] sm:$0xff] }
0x171e   :  { %4783 = vmatpush1.bf16.msra.mxu0 %v9259_v58  ;;  %6081 = vmatpush3.bf16.msra.mxu1 %v9260_v55 }
0x171f   :  { %4784 = vmatprep.subr.bf16.mxu0 %v9261_v42  ;;  %6082 = vmatprep.subr.bf16.mxu1 %v9215_v33 }
0x1722   :  { %4785 = vmatpush1.bf16.msra.mxu0 %v9262_v49  ;;  %6083 = vmatpush3.bf16.msra.mxu1 %v9263_v61 }
0x1723   :  { %4786 = vmatprep.subr.bf16.mxu0 %v9264_v40  ;;  %6084 = vmatprep.subr.bf16.mxu1 %v9215_v33 }
0x1726   :  { %4787 = vmatpush1.bf16.msra.mxu0 %v9265_v30  ;;  %6085 = vmatpush3.bf16.msra.mxu1 %v9266_v52 }
0x1727   :  { %4788 = vmatprep.subr.bf16.mxu0 %v9267_v16  ;;  %6086 = vmatprep.subr.bf16.mxu1 %v9215_v33 }
0x172a   :  { %4789 = vmatpush1.bf16.msra.mxu0 %v9268_v43  ;;  %6087 = vmatpush3.bf16.msra.mxu1 %v9269_v21 }
0x172b   :  { %4790 = vmatprep.subr.bf16.mxu0 %v9270_v44  ;;  %6088 = vmatprep.subr.bf16.mxu1 %v9215_v33 }
0x172e   :  { %4791 = vmatpush1.bf16.msra.mxu0 %v9271_v45  ;;  %6089 = vmatpush3.bf16.msra.mxu1 %v9272_v28 }
0x172f   :  { %4792 = vmatprep.subr.bf16.mxu0 %v9273_v46  ;;  %6090 = vmatprep.subr.bf16.mxu1 %v9215_v33 }
0x1732   :  { %4793 = vmatpush1.bf16.msra.mxu0 %v9274_v48  ;;  %6091 = vmatpush3.bf16.msra.mxu1 %v9275_v47 }
0x1733   :  { %4794 = vmatprep.subr.bf16.mxu0 %v9276_v41  ;;  %6092 = vmatprep.subr.bf16.mxu1 %v9215_v33 }
0x1736   :  { %4795 = vmatpush1.bf16.msra.mxu0 %v9277_v34  ;;  %6093 = vmatpush3.bf16.msra.mxu1 %v9278_v8 }
0x1739   :  { %4813 = vmatmul.mubr.bf16.vlgmr.msra.gmra.mrb[8].mxu0 %v8774_v23  ;;  %6095 = vmatmul.mubr.bf16.vlgmr.msra.gmra.mrb[12].mxu1 %v8774_v23 }
0x17ec   :  { %v4733_v20 = vpop.f32.mrb[4].mxu0  ;;  %v4774_v37 = vpop.f32.mrb[8].mxu1 }
0x17ed   :  { %v4735_v59 = vpop.f32.mrb[5].mxu0  ;;  %v6076_v36 = vpop.f32.mrb[9].mxu1 }
0x17ee   :  { %v4737_v53 = vpop.f32.mrb[6].mxu0  ;;  %v4777_v26 = vpop.f32.mrb[10].mxu1 }
0x17ef   :  { %v4738_v4 = vpop.f32.mrb[7].mxu0  ;;  %v6077_v10 = vpop.f32.mrb[11].mxu1 }
0x180c   :  { %v4814_v2 = vpop.f32.mrb[8].mxu0  ;;  %v4855_v24 = vpop.f32.mrb[12].mxu1 }
0x180d   :  { %v4815_v0 = vadd.f32 %v4814_v2, %v4733_v20  ;;  %v4856_v33 = vadd.f32 %v4855_v24, %v4774_v37  ;;  %v4816_v25 = vpop.f32.mrb[9].mxu0  ;;  %v6096_v15 = vpop.f32.mrb[13].mxu1 }
0x180e   :  { %v4817_v27 = vadd.f32 %v4816_v25, %v4735_v59  ;;  %v4818_v35 = vpop.f32.mrb[10].mxu0  ;;  %v4858_v60 = vpop.f32.mrb[14].mxu1 }
0x180f   :  { %v4861_v62 = vadd.f32 %v4815_v0, %v8106_v17  ;;  %v4863_v23 = vadd.f32 %v4856_v33, %v8109_v12  ;;  %v4819_v3 = vpop.f32.mrb[11].mxu0  ;;  %v6097_v31 = vpop.f32.mrb[15].mxu1 }
0x1810   :  { %v4862_v18 = vadd.f32 %v4817_v27, %v8112_v54 }
0x1811   :  { %5207 = vst [vmem:[%s8922_s17 + $0x48] sm:$0xff] %v4861_v62  ;;  %5209 = vst [vmem:[%s8922_s17 + $0x58] sm:$0xff] %v4863_v23 }
0x1812   :  { %5208 = vst [vmem:[%s8922_s17 + $0x50] sm:$0xff] %v4862_v18 }
0x1813   :  { %4872 = vsyncpa [#allocation4], 1 }
0x1814   :  { %4873 = vsyncpa [#allocation8], 1 }
0x1815   :  { %4874 = vsyncpa [#allocation11], 1 }
0x1816   :  { %4875 = vsyncpa [#allocation14], 1 }
0x1817   :  { %4876 = vsyncpa [#allocation17], 1 }
0x1818   :  { %4877 = vsyncpa [#allocation5], 1 }

</bundles_post_ra>
